<compile_context>
chip_gen: v7x
topology: tpu7x:2x2x1
jax: 0.10.0
libtpu: 0.0.40
codegen_flags: <defaults>
</compile_context>

<pallas_src>
import functools

import numpy as np

import jax
import jax.numpy as jnp
from jax import lax
from jax.experimental import pallas as pl
from jax.experimental.pallas import tpu as pltpu


def _conv_out(size, k, s, p):
    return (size + 2 * p - k) // s + 1


# ----------------------------------------------------------------------------
# Fused Pallas kernel (single invocation, no grid).
# Activation layout everywhere: rows = (n, h), cols = (w, c_padded) = 128 lanes.
# ----------------------------------------------------------------------------
def _fused_kernel(meta, x_ref, *refs):
    n, dfs, stride, pad, layer_dims = meta
    nl = len(layer_dims)
    lrefs = refs[: 3 * nl]                       # per layer: M, P, beta
    u_ref, v_ref = refs[3 * nl], refs[3 * nl + 1]
    o_ref = refs[3 * nl + 2]
    xs_ref = refs[3 * nl + 3]                    # shifted-activation scratch
    buf_refs = refs[3 * nl + 4:]                 # padded inter-layer buffers

    src = x_ref                                  # current (padded) layer input
    act = None
    for l, (hp, ho, ci, co) in enumerate(layer_dims):
        m_ref, p_ref, b_ref = lrefs[3 * l: 3 * l + 3]

        # Vertical stride-2 im2col: strided sublane slices into XS scratch.
        # (No MXU selector matmuls; the padded buffer supplies the zero rows.)
        for kh in range(dfs):
            for nb in range(n):
                start = nb * hp + kh
                if ho > 1:
                    blk = src[pl.ds(start, ho, stride=stride), :]
                else:
                    blk = src[pl.ds(start, 1), :]
                xs_ref[nb * ho:(nb + 1) * ho, kh * ci:(kh + 1) * ci] = blk

        # One wide bf16 matmul per layer does the whole conv (vertical kernel
        # rows + horizontal stride-2 + channel mixing), f32 accumulation.
        xs = xs_ref[0:n * ho, 0:dfs * ci].astype(jnp.bfloat16)
        y = jnp.dot(xs, m_ref[...], preferred_element_type=jnp.float32)

        # MeanSpectralNorm (training-mode batch mean) + beta, f32 elementwise.
        col_sum = jnp.sum(y, axis=0, keepdims=True)             # (1, co)
        mean_row = jnp.dot(col_sum, p_ref[...],
                           preferred_element_type=jnp.float32)  # (1, co)
        y = y - mean_row + b_ref[...]
        act = jnp.maximum(y, 0.2 * y)                           # LeakyReLU(0.2)

        # Stage activations into the next layer's zero-padded input buffer.
        if l + 1 < nl:
            nbuf = buf_refs[l]
            hp_next = layer_dims[l + 1][0]
            nbuf[...] = jnp.zeros_like(nbuf)
            for nb in range(n):
                r0 = nb * hp_next + pad
                nbuf[r0:r0 + ho, :] = act[nb * ho:(nb + 1) * ho, :]
            src = nbuf

    # Final 1x1 stride-2 conv + global mean, folded into u_row / v_col.
    t = jnp.dot(u_ref[...], act, preferred_element_type=jnp.float32)   # (1, co)
    o_ref[...] = jnp.dot(t, v_ref[...], preferred_element_type=jnp.float32)


@functools.partial(jax.jit, static_argnums=(2,))
def sgan2d_d_msn_forward(x_nchw, consts, meta):
    """x_nchw: (N, C, H, W) float32; (consts, meta) from build_fused_consts."""
    dfs, stride, pad, cpad0, layer_dims, buf_shapes = meta
    n, c, h, w = x_nchw.shape
    # NCHW -> (N*(H+2p), W*Cpad): rows=(n, padded h), cols=(w, padded c)=128.
    x = jnp.transpose(x_nchw, (0, 2, 3, 1)).astype(jnp.float32)
    x = jnp.pad(x, ((0, 0), (pad, pad), (0, 0), (0, cpad0 - c)))
    xpad = x.reshape(n * (h + 2 * pad), w * cpad0)

    operands = (xpad,) + tuple(consts)
    xs_rows = max(n * ho for (_, ho, _, _) in layer_dims)
    xs_cols = max(dfs * ci for (_, _, ci, _) in layer_dims)

    out = pl.pallas_call(
        functools.partial(_fused_kernel, (n, dfs, stride, pad, layer_dims)),
        out_shape=jax.ShapeDtypeStruct((1, 1), jnp.float32),
        in_specs=[pl.BlockSpec(memory_space=pltpu.MemorySpace.VMEM)
                  for _ in operands],
        out_specs=pl.BlockSpec(memory_space=pltpu.MemorySpace.VMEM),
        scratch_shapes=[pltpu.VMEM((xs_rows, xs_cols), jnp.float32)]
        + [pltpu.VMEM((rows, cols), jnp.float32) for rows, cols in buf_shapes],
    )(*operands)
    return out.reshape(1)


# ----------------------------------------------------------------------------
# Setup-time glue (outside the jitted hot path): spectral norm, weight packing.
# ----------------------------------------------------------------------------
def spectral_normalize(w, key, n_iter=10):
    """Deterministic power-iteration spectral norm. w: (Cout, Cin, KH, KW)."""
    cout = w.shape[0]
    wm = w.reshape(cout, -1)
    u = jax.random.normal(key, (cout,), jnp.float32)
    u = u / (jnp.linalg.norm(u) + 1e-12)
    v = None
    for _ in range(n_iter):
        v = wm.T @ u
        v = v / (jnp.linalg.norm(v) + 1e-12)
        u = wm @ v
        u = u / (jnp.linalg.norm(u) + 1e-12)
    sigma = u @ (wm @ v)
    return w / sigma


def init_params(key, nc=1, ndf=8, dfs=9):
    chans = [nc, ndf, ndf * 2, ndf * 4, ndf * 8]
    params = []
    for li in range(4):
        key, k1, k2 = jax.random.split(key, 3)
        cin, cout = chans[li], chans[li + 1]
        w = 0.02 * jax.random.normal(k1, (cout, cin, dfs, dfs), jnp.float32)
        w = spectral_normalize(w, k2)
        beta = jnp.zeros((cout,), jnp.float32)  # MSN shift
        params.append((w, beta))
    key, k1, k2 = jax.random.split(key, 3)
    w_last = 0.02 * jax.random.normal(k1, (1, ndf * 8, 1, 1), jnp.float32)
    w_last = spectral_normalize(w_last, k2)
    return params, w_last


def build_fused_consts(params, w_last, *, batch, height, width, dfs=9,
                       stride=2, lane=128):
    """Pack the network once into the constants used by the fused kernel.

    Per conv layer:
      M    (dfs*Ci, Co) bf16 : stacked conv weights, rows=(kh, w_in, cin_pad),
                               cols=(w_out, cout_pad); horizontal padding and
                               channel zero-padding handled by zero entries.
      P    (Co, Co)     f32  : per-channel batch-mean averaging matrix.
      beta (1, Co)      f32  : MSN shift, tiled over w_out (zero in pad lanes).
    Plus u_row / v_col for the final 1x1 stride-2 conv with the global-mean
    divisor folded in.  Ci/Co are lane-dense multiples of 128.
    """
    pad = dfs // 2
    hin, win = height, width
    cin = int(params[0][0].shape[1])
    cpad = max(cin, -(-lane // win))         # pad channels -> lane-dense cols
    cpad0 = cpad
    ci = win * cpad
    consts, layer_dims, buf_shapes = [], [], []
    nl = len(params)
    for li, (wgt, beta) in enumerate(params):
        w_np = np.asarray(wgt, np.float32)
        cout = int(w_np.shape[0])
        assert w_np.shape == (cout, cin, dfs, dfs)
        ho = _conv_out(hin, dfs, stride, pad)
        wo = _conv_out(win, dfs, stride, pad)
        cpad_o = max(cout, -(-lane // wo))
        co = wo * cpad_o
        hp = hin + 2 * pad

        m = np.zeros((dfs * ci, co), np.float32)
        for kh in range(dfs):
            for ow in range(wo):
                for kw in range(dfs):
                    wi = stride * ow + kw - pad
                    if 0 <= wi < win:
                        m[kh * ci + wi * cpad: kh * ci + wi * cpad + cin,
                          ow * cpad_o: ow * cpad_o + cout] = w_np[:, :, kh, kw].T

        p_mat = np.zeros((co, co), np.float32)
        for w1 in range(wo):
            for w2 in range(wo):
                for ch in range(cpad_o):
                    p_mat[w1 * cpad_o + ch, w2 * cpad_o + ch] = 1.0
        p_mat /= float(batch * ho * wo)
        beta_row = np.zeros((1, co), np.float32)
        beta_np = np.asarray(beta, np.float32)
        for ow in range(wo):
            beta_row[0, ow * cpad_o: ow * cpad_o + cout] = beta_np

        consts += [jnp.asarray(m, jnp.bfloat16), jnp.asarray(p_mat),
                   jnp.asarray(beta_row)]
        layer_dims.append((hp, ho, ci, co))
        if li + 1 < nl:
            buf_shapes.append((batch * (ho + 2 * pad), co))
        hin, win, cin, cpad, ci = ho, wo, cout, cpad_o, co

    # Final 1x1 stride-`stride` conv + output.mean() -> u_row / v_col.
    w_last_np = np.asarray(w_last, np.float32).reshape(-1)
    assert w_last_np.shape[0] == cin
    hf = _conv_out(hin, 1, stride, 0)
    wf = _conv_out(win, 1, stride, 0)
    u = np.zeros((1, batch * hin), np.float32)
    for nb in range(batch):
        for of in range(hf):
            u[0, nb * hin + stride * of] = 1.0 / float(batch * hf * wf)
    v = np.zeros((ci, 1), np.float32)
    for of in range(wf):
        wi = stride * of
        v[wi * cpad: wi * cpad + cin, 0] = w_last_np
    consts += [jnp.asarray(u), jnp.asarray(v)]

    meta = (dfs, stride, pad, cpad0, tuple(layer_dims), tuple(buf_shapes))
    return tuple(consts), meta


# ----------------------------------------------------------------------------
# Pure-JAX reference (same math via XLA convs, f32), used as a self-check.
# ----------------------------------------------------------------------------
def reference_forward(x_nchw, params, w_last, dfs=9, stride=2):
    pad = dfs // 2
    x = x_nchw.astype(jnp.float32)
    for w, beta in params:
        y = lax.conv_general_dilated(
            x, w, window_strides=(stride, stride),
            padding=((pad, pad), (pad, pad)),
            dimension_numbers=("NCHW", "OIHW", "NCHW"),
            precision=lax.Precision.HIGHEST)
        y = y - jnp.mean(y, axis=(0, 2, 3), keepdims=True) + beta.reshape(1, -1, 1, 1)
        x = jnp.maximum(y, 0.2 * y)
    y = lax.conv_general_dilated(
        x, w_last, window_strides=(stride, stride), padding=((0, 0), (0, 0)),
        dimension_numbers=("NCHW", "OIHW", "NCHW"),
        precision=lax.Precision.HIGHEST)
    return jnp.mean(y).reshape(1)


if __name__ == "__main__":
    # Small config consistent with the module: nc=1, ndf=8, dfs=9, stride=2.
    nc, ndf, dfs, stride = 1, 8, 9, 2
    n, h, w = 2, 16, 16

    key = jax.random.PRNGKey(0)
    key, kx, kp = jax.random.split(key, 3)
    x = jax.random.normal(kx, (n, nc, h, w), jnp.float32)  # NCHW input

    params, w_last = init_params(kp, nc=nc, ndf=ndf, dfs=dfs)
    # Weight packing / spectral norm hoisted out of the jitted hot path.
    consts, meta = build_fused_consts(params, w_last, batch=n, height=h,
                                      width=w, dfs=dfs, stride=stride)

    out = jax.block_until_ready(sgan2d_d_msn_forward(x, consts, meta))
    assert out.shape == (1,), out.shape

    ref = jax.block_until_ready(
        reference_forward(x, params, w_last, dfs=dfs, stride=stride))
    # Kernel uses bf16 MXU operands with f32 accumulation; compare against the
    # pure-f32 XLA reference with a correspondingly relaxed tolerance.
    assert jnp.allclose(out, ref, rtol=2e-2, atol=2e-2), (out, ref)
    print("KERNEL_OK")
</pallas_src>

<mosaic_0001>
module attributes {stable_mosaic.version = 11 : i64} {
  func.func @_fused_kernel(%arg0: memref<48x128xf32, #tpu.memory_space<vmem>>, %arg1: memref<1152x128xbf16, #tpu.memory_space<vmem>>, %arg2: memref<128x128xf32, #tpu.memory_space<vmem>>, %arg3: memref<1x128xf32, #tpu.memory_space<vmem>>, %arg4: memref<1152x128xbf16, #tpu.memory_space<vmem>>, %arg5: memref<128x128xf32, #tpu.memory_space<vmem>>, %arg6: memref<1x128xf32, #tpu.memory_space<vmem>>, %arg7: memref<1152x128xbf16, #tpu.memory_space<vmem>>, %arg8: memref<128x128xf32, #tpu.memory_space<vmem>>, %arg9: memref<1x128xf32, #tpu.memory_space<vmem>>, %arg10: memref<1152x128xbf16, #tpu.memory_space<vmem>>, %arg11: memref<128x128xf32, #tpu.memory_space<vmem>>, %arg12: memref<1x128xf32, #tpu.memory_space<vmem>>, %arg13: memref<1x2xf32, #tpu.memory_space<vmem>>, %arg14: memref<128x1xf32, #tpu.memory_space<vmem>>, %arg15: memref<1x1xf32, #tpu.memory_space<vmem>>, %arg16: memref<16x1152xf32, #tpu.memory_space<vmem>>, %arg17: memref<32x128xf32, #tpu.memory_space<vmem>>, %arg18: memref<24x128xf32, #tpu.memory_space<vmem>>, %arg19: memref<20x128xf32, #tpu.memory_space<vmem>>) attributes {dimension_semantics = [], scalar_prefetch = 0 : i64, scratch_operands = 4 : i64, tpu.core_type = #tpu.core_type<tc>} {
    %c0 = arith.constant 0 : index
    %c0_0 = arith.constant 0 : index
    %0 = tpu.strided_load %arg0[%c0, %c0_0] {strides = array<i32: 2, 1>} : memref<48x128xf32, #tpu.memory_space<vmem>>, vector<8x128xf32>
    %c0_1 = arith.constant 0 : index
    %c0_2 = arith.constant 0 : index
    %1 = vector.load %arg16[%c0_1, %c0_2] : memref<16x1152xf32, #tpu.memory_space<vmem>>, vector<8x128xf32>
    tpu.vector_store %arg16[%c0_1, %c0_2], %0 {strides = array<i32>} : memref<16x1152xf32, #tpu.memory_space<vmem>>, vector<8x128xf32>,
    %c24 = arith.constant 24 : index
    %c0_3 = arith.constant 0 : index
    %2 = tpu.strided_load %arg0[%c24, %c0_3] {strides = array<i32: 2, 1>} : memref<48x128xf32, #tpu.memory_space<vmem>>, vector<8x128xf32>
    %c8 = arith.constant 8 : index
    %c0_4 = arith.constant 0 : index
    %3 = vector.load %arg16[%c8, %c0_4] : memref<16x1152xf32, #tpu.memory_space<vmem>>, vector<8x128xf32>
    tpu.vector_store %arg16[%c8, %c0_4], %2 {strides = array<i32>} : memref<16x1152xf32, #tpu.memory_space<vmem>>, vector<8x128xf32>,
    %c1 = arith.constant 1 : index
    %c0_5 = arith.constant 0 : index
    %4 = tpu.strided_load %arg0[%c1, %c0_5] {strides = array<i32: 2, 1>} : memref<48x128xf32, #tpu.memory_space<vmem>>, vector<8x128xf32>
    %c0_6 = arith.constant 0 : index
    %c128 = arith.constant 128 : index
    %5 = vector.load %arg16[%c0_6, %c128] : memref<16x1152xf32, #tpu.memory_space<vmem>>, vector<8x128xf32>
    tpu.vector_store %arg16[%c0_6, %c128], %4 {strides = array<i32>} : memref<16x1152xf32, #tpu.memory_space<vmem>>, vector<8x128xf32>,
    %c25 = arith.constant 25 : index
    %c0_7 = arith.constant 0 : index
    %6 = tpu.strided_load %arg0[%c25, %c0_7] {strides = array<i32: 2, 1>} : memref<48x128xf32, #tpu.memory_space<vmem>>, vector<8x128xf32>
    %c8_8 = arith.constant 8 : index
    %c128_9 = arith.constant 128 : index
    %7 = vector.load %arg16[%c8_8, %c128_9] : memref<16x1152xf32, #tpu.memory_space<vmem>>, vector<8x128xf32>
    tpu.vector_store %arg16[%c8_8, %c128_9], %6 {strides = array<i32>} : memref<16x1152xf32, #tpu.memory_space<vmem>>, vector<8x128xf32>,
    %c2 = arith.constant 2 : index
    %c0_10 = arith.constant 0 : index
    %8 = tpu.strided_load %arg0[%c2, %c0_10] {strides = array<i32: 2, 1>} : memref<48x128xf32, #tpu.memory_space<vmem>>, vector<8x128xf32>
    %c0_11 = arith.constant 0 : index
    %c256 = arith.constant 256 : index
    %9 = vector.load %arg16[%c0_11, %c256] : memref<16x1152xf32, #tpu.memory_space<vmem>>, vector<8x128xf32>
    tpu.vector_store %arg16[%c0_11, %c256], %8 {strides = array<i32>} : memref<16x1152xf32, #tpu.memory_space<vmem>>, vector<8x128xf32>,
    %c26 = arith.constant 26 : index
    %c0_12 = arith.constant 0 : index
    %10 = tpu.strided_load %arg0[%c26, %c0_12] {strides = array<i32: 2, 1>} : memref<48x128xf32, #tpu.memory_space<vmem>>, vector<8x128xf32>
    %c8_13 = arith.constant 8 : index
    %c256_14 = arith.constant 256 : index
    %11 = vector.load %arg16[%c8_13, %c256_14] : memref<16x1152xf32, #tpu.memory_space<vmem>>, vector<8x128xf32>
    tpu.vector_store %arg16[%c8_13, %c256_14], %10 {strides = array<i32>} : memref<16x1152xf32, #tpu.memory_space<vmem>>, vector<8x128xf32>,
    %c3 = arith.constant 3 : index
    %c0_15 = arith.constant 0 : index
    %12 = tpu.strided_load %arg0[%c3, %c0_15] {strides = array<i32: 2, 1>} : memref<48x128xf32, #tpu.memory_space<vmem>>, vector<8x128xf32>
    %c0_16 = arith.constant 0 : index
    %c384 = arith.constant 384 : index
    %13 = vector.load %arg16[%c0_16, %c384] : memref<16x1152xf32, #tpu.memory_space<vmem>>, vector<8x128xf32>
    tpu.vector_store %arg16[%c0_16, %c384], %12 {strides = array<i32>} : memref<16x1152xf32, #tpu.memory_space<vmem>>, vector<8x128xf32>,
    %c27 = arith.constant 27 : index
    %c0_17 = arith.constant 0 : index
    %14 = tpu.strided_load %arg0[%c27, %c0_17] {strides = array<i32: 2, 1>} : memref<48x128xf32, #tpu.memory_space<vmem>>, vector<8x128xf32>
    %c8_18 = arith.constant 8 : index
    %c384_19 = arith.constant 384 : index
    %15 = vector.load %arg16[%c8_18, %c384_19] : memref<16x1152xf32, #tpu.memory_space<vmem>>, vector<8x128xf32>
    tpu.vector_store %arg16[%c8_18, %c384_19], %14 {strides = array<i32>} : memref<16x1152xf32, #tpu.memory_space<vmem>>, vector<8x128xf32>,
    %c4 = arith.constant 4 : index
    %c0_20 = arith.constant 0 : index
    %16 = tpu.strided_load %arg0[%c4, %c0_20] {strides = array<i32: 2, 1>} : memref<48x128xf32, #tpu.memory_space<vmem>>, vector<8x128xf32>
    %c0_21 = arith.constant 0 : index
    %c512 = arith.constant 512 : index
    %17 = vector.load %arg16[%c0_21, %c512] : memref<16x1152xf32, #tpu.memory_space<vmem>>, vector<8x128xf32>
    tpu.vector_store %arg16[%c0_21, %c512], %16 {strides = array<i32>} : memref<16x1152xf32, #tpu.memory_space<vmem>>, vector<8x128xf32>,
    %c28 = arith.constant 28 : index
    %c0_22 = arith.constant 0 : index
    %18 = tpu.strided_load %arg0[%c28, %c0_22] {strides = array<i32: 2, 1>} : memref<48x128xf32, #tpu.memory_space<vmem>>, vector<8x128xf32>
    %c8_23 = arith.constant 8 : index
    %c512_24 = arith.constant 512 : index
    %19 = vector.load %arg16[%c8_23, %c512_24] : memref<16x1152xf32, #tpu.memory_space<vmem>>, vector<8x128xf32>
    tpu.vector_store %arg16[%c8_23, %c512_24], %18 {strides = array<i32>} : memref<16x1152xf32, #tpu.memory_space<vmem>>, vector<8x128xf32>,
    %c5 = arith.constant 5 : index
    %c0_25 = arith.constant 0 : index
    %20 = tpu.strided_load %arg0[%c5, %c0_25] {strides = array<i32: 2, 1>} : memref<48x128xf32, #tpu.memory_space<vmem>>, vector<8x128xf32>
    %c0_26 = arith.constant 0 : index
    %c640 = arith.constant 640 : index
    %21 = vector.load %arg16[%c0_26, %c640] : memref<16x1152xf32, #tpu.memory_space<vmem>>, vector<8x128xf32>
    tpu.vector_store %arg16[%c0_26, %c640], %20 {strides = array<i32>} : memref<16x1152xf32, #tpu.memory_space<vmem>>, vector<8x128xf32>,
    %c29 = arith.constant 29 : index
    %c0_27 = arith.constant 0 : index
    %22 = tpu.strided_load %arg0[%c29, %c0_27] {strides = array<i32: 2, 1>} : memref<48x128xf32, #tpu.memory_space<vmem>>, vector<8x128xf32>
    %c8_28 = arith.constant 8 : index
    %c640_29 = arith.constant 640 : index
    %23 = vector.load %arg16[%c8_28, %c640_29] : memref<16x1152xf32, #tpu.memory_space<vmem>>, vector<8x128xf32>
    tpu.vector_store %arg16[%c8_28, %c640_29], %22 {strides = array<i32>} : memref<16x1152xf32, #tpu.memory_space<vmem>>, vector<8x128xf32>,
    %c6 = arith.constant 6 : index
    %c0_30 = arith.constant 0 : index
    %24 = tpu.strided_load %arg0[%c6, %c0_30] {strides = array<i32: 2, 1>} : memref<48x128xf32, #tpu.memory_space<vmem>>, vector<8x128xf32>
    %c0_31 = arith.constant 0 : index
    %c768 = arith.constant 768 : index
    %25 = vector.load %arg16[%c0_31, %c768] : memref<16x1152xf32, #tpu.memory_space<vmem>>, vector<8x128xf32>
    tpu.vector_store %arg16[%c0_31, %c768], %24 {strides = array<i32>} : memref<16x1152xf32, #tpu.memory_space<vmem>>, vector<8x128xf32>,
    %c30 = arith.constant 30 : index
    %c0_32 = arith.constant 0 : index
    %26 = tpu.strided_load %arg0[%c30, %c0_32] {strides = array<i32: 2, 1>} : memref<48x128xf32, #tpu.memory_space<vmem>>, vector<8x128xf32>
    %c8_33 = arith.constant 8 : index
    %c768_34 = arith.constant 768 : index
    %27 = vector.load %arg16[%c8_33, %c768_34] : memref<16x1152xf32, #tpu.memory_space<vmem>>, vector<8x128xf32>
    tpu.vector_store %arg16[%c8_33, %c768_34], %26 {strides = array<i32>} : memref<16x1152xf32, #tpu.memory_space<vmem>>, vector<8x128xf32>,
    %c7 = arith.constant 7 : index
    %c0_35 = arith.constant 0 : index
    %28 = tpu.strided_load %arg0[%c7, %c0_35] {strides = array<i32: 2, 1>} : memref<48x128xf32, #tpu.memory_space<vmem>>, vector<8x128xf32>
    %c0_36 = arith.constant 0 : index
    %c896 = arith.constant 896 : index
    %29 = vector.load %arg16[%c0_36, %c896] : memref<16x1152xf32, #tpu.memory_space<vmem>>, vector<8x128xf32>
    tpu.vector_store %arg16[%c0_36, %c896], %28 {strides = array<i32>} : memref<16x1152xf32, #tpu.memory_space<vmem>>, vector<8x128xf32>,
    %c31 = arith.constant 31 : index
    %c0_37 = arith.constant 0 : index
    %30 = tpu.strided_load %arg0[%c31, %c0_37] {strides = array<i32: 2, 1>} : memref<48x128xf32, #tpu.memory_space<vmem>>, vector<8x128xf32>
    %c8_38 = arith.constant 8 : index
    %c896_39 = arith.constant 896 : index
    %31 = vector.load %arg16[%c8_38, %c896_39] : memref<16x1152xf32, #tpu.memory_space<vmem>>, vector<8x128xf32>
    tpu.vector_store %arg16[%c8_38, %c896_39], %30 {strides = array<i32>} : memref<16x1152xf32, #tpu.memory_space<vmem>>, vector<8x128xf32>,
    %c8_40 = arith.constant 8 : index
    %c0_41 = arith.constant 0 : index
    %32 = tpu.strided_load %arg0[%c8_40, %c0_41] {strides = array<i32: 2, 1>} : memref<48x128xf32, #tpu.memory_space<vmem>>, vector<8x128xf32>
    %c0_42 = arith.constant 0 : index
    %c1024 = arith.constant 1024 : index
    %33 = vector.load %arg16[%c0_42, %c1024] : memref<16x1152xf32, #tpu.memory_space<vmem>>, vector<8x128xf32>
    tpu.vector_store %arg16[%c0_42, %c1024], %32 {strides = array<i32>} : memref<16x1152xf32, #tpu.memory_space<vmem>>, vector<8x128xf32>,
    %c32 = arith.constant 32 : index
    %c0_43 = arith.constant 0 : index
    %34 = tpu.strided_load %arg0[%c32, %c0_43] {strides = array<i32: 2, 1>} : memref<48x128xf32, #tpu.memory_space<vmem>>, vector<8x128xf32>
    %c8_44 = arith.constant 8 : index
    %c1024_45 = arith.constant 1024 : index
    %35 = vector.load %arg16[%c8_44, %c1024_45] : memref<16x1152xf32, #tpu.memory_space<vmem>>, vector<8x128xf32>
    tpu.vector_store %arg16[%c8_44, %c1024_45], %34 {strides = array<i32>} : memref<16x1152xf32, #tpu.memory_space<vmem>>, vector<8x128xf32>,
    %c0_46 = arith.constant 0 : index
    %c0_47 = arith.constant 0 : index
    %36 = vector.load %arg16[%c0_46, %c0_47] : memref<16x1152xf32, #tpu.memory_space<vmem>>, vector<16x1152xf32>
    %37 = arith.truncf %36 : vector<16x1152xf32> to vector<16x1152xbf16>
    %c0_48 = arith.constant 0 : index
    %c0_49 = arith.constant 0 : index
    %38 = vector.load %arg1[%c0_48, %c0_49] : memref<1152x128xbf16, #tpu.memory_space<vmem>>, vector<1152x128xbf16>
    %cst = arith.constant dense<0.000000e+00> : vector<16x128xf32>
    %39 = tpu.matmul %37, %38, %cst {dimension_numbers = #tpu.dot_dimension_numbers<[1], [0], [0], [1], [0, 0, 1, 1], [], []>} : vector<16x1152xbf16>, vector<1152x128xbf16>, vector<16x128xf32> -> vector<16x128xf32>
    %cst_50 = arith.constant dense<0.000000e+00> : vector<128xf32>
    %40 = vector.multi_reduction <add>, %39, %cst_50 [0] : vector<16x128xf32> to vector<128xf32>
    %41 = vector.shape_cast %40 : vector<128xf32> to vector<1x128xf32>
    %c0_51 = arith.constant 0 : index
    %c0_52 = arith.constant 0 : index
    %42 = vector.load %arg2[%c0_51, %c0_52] : memref<128x128xf32, #tpu.memory_space<vmem>>, vector<128x128xf32>
    %cst_53 = arith.constant dense<0.000000e+00> : vector<1x128xf32>
    %43 = tpu.matmul %41, %42, %cst_53 {dimension_numbers = #tpu.dot_dimension_numbers<[1], [0], [0], [1], [0, 0, 1, 1], [], []>} : vector<1x128xf32>, vector<128x128xf32>, vector<1x128xf32> -> vector<1x128xf32>
    %44 = vector.broadcast %43 : vector<1x128xf32> to vector<16x128xf32>
    %45 = arith.subf %39, %44 : vector<16x128xf32>
    %c0_54 = arith.constant 0 : index
    %c0_55 = arith.constant 0 : index
    %46 = vector.load %arg3[%c0_54, %c0_55] : memref<1x128xf32, #tpu.memory_space<vmem>>, vector<1x128xf32>
    %47 = vector.broadcast %46 : vector<1x128xf32> to vector<16x128xf32>
    %48 = arith.addf %45, %47 : vector<16x128xf32>
    %cst_56 = arith.constant 2.000000e-01 : f32
    %49 = vector.broadcast %cst_56 : f32 to vector<16x128xf32>
    %50 = arith.mulf %49, %48 : vector<16x128xf32>
    %51 = arith.maximumf %48, %50 : vector<16x128xf32>
    %cst_57 = arith.constant 0.000000e+00 : f32
    %52 = vector.broadcast %cst_57 : f32 to vector<32x128xf32>
    %c0_58 = arith.constant 0 : index
    %c0_59 = arith.constant 0 : index
    %53 = vector.load %arg17[%c0_58, %c0_59] : memref<32x128xf32, #tpu.memory_space<vmem>>, vector<32x128xf32>
    tpu.vector_store %arg17[%c0_58, %c0_59], %52 {strides = array<i32>} : memref<32x128xf32, #tpu.memory_space<vmem>>, vector<32x128xf32>,
    %54 = vector.extract_strided_slice %51 {offsets = [0, 0], sizes = [8, 128], strides = [1, 1]} : vector<16x128xf32> to vector<8x128xf32>
    %c4_60 = arith.constant 4 : index
    %c0_61 = arith.constant 0 : index
    %55 = vector.load %arg17[%c4_60, %c0_61] : memref<32x128xf32, #tpu.memory_space<vmem>>, vector<8x128xf32>
    tpu.vector_store %arg17[%c4_60, %c0_61], %54 {strides = array<i32>} : memref<32x128xf32, #tpu.memory_space<vmem>>, vector<8x128xf32>,
    %56 = vector.extract_strided_slice %51 {offsets = [8, 0], sizes = [8, 128], strides = [1, 1]} : vector<16x128xf32> to vector<8x128xf32>
    %c20 = arith.constant 20 : index
    %c0_62 = arith.constant 0 : index
    %57 = vector.load %arg17[%c20, %c0_62] : memref<32x128xf32, #tpu.memory_space<vmem>>, vector<8x128xf32>
    tpu.vector_store %arg17[%c20, %c0_62], %56 {strides = array<i32>} : memref<32x128xf32, #tpu.memory_space<vmem>>, vector<8x128xf32>,
    %c0_63 = arith.constant 0 : index
    %c0_64 = arith.constant 0 : index
    %58 = tpu.strided_load %arg17[%c0_63, %c0_64] {strides = array<i32: 2, 1>} : memref<32x128xf32, #tpu.memory_space<vmem>>, vector<4x128xf32>
    %c0_65 = arith.constant 0 : index
    %c0_66 = arith.constant 0 : index
    %59 = vector.load %arg16[%c0_65, %c0_66] : memref<16x1152xf32, #tpu.memory_space<vmem>>, vector<4x128xf32>
    tpu.vector_store %arg16[%c0_65, %c0_66], %58 {strides = array<i32>} : memref<16x1152xf32, #tpu.memory_space<vmem>>, vector<4x128xf32>,
    %c16 = arith.constant 16 : index
    %c0_67 = arith.constant 0 : index
    %60 = tpu.strided_load %arg17[%c16, %c0_67] {strides = array<i32: 2, 1>} : memref<32x128xf32, #tpu.memory_space<vmem>>, vector<4x128xf32>
    %c4_68 = arith.constant 4 : index
    %c0_69 = arith.constant 0 : index
    %61 = vector.load %arg16[%c4_68, %c0_69] : memref<16x1152xf32, #tpu.memory_space<vmem>>, vector<4x128xf32>
    tpu.vector_store %arg16[%c4_68, %c0_69], %60 {strides = array<i32>} : memref<16x1152xf32, #tpu.memory_space<vmem>>, vector<4x128xf32>,
    %c1_70 = arith.constant 1 : index
    %c0_71 = arith.constant 0 : index
    %62 = tpu.strided_load %arg17[%c1_70, %c0_71] {strides = array<i32: 2, 1>} : memref<32x128xf32, #tpu.memory_space<vmem>>, vector<4x128xf32>
    %c0_72 = arith.constant 0 : index
    %c128_73 = arith.constant 128 : index
    %63 = vector.load %arg16[%c0_72, %c128_73] : memref<16x1152xf32, #tpu.memory_space<vmem>>, vector<4x128xf32>
    tpu.vector_store %arg16[%c0_72, %c128_73], %62 {strides = array<i32>} : memref<16x1152xf32, #tpu.memory_space<vmem>>, vector<4x128xf32>,
    %c17 = arith.constant 17 : index
    %c0_74 = arith.constant 0 : index
    %64 = tpu.strided_load %arg17[%c17, %c0_74] {strides = array<i32: 2, 1>} : memref<32x128xf32, #tpu.memory_space<vmem>>, vector<4x128xf32>
    %c4_75 = arith.constant 4 : index
    %c128_76 = arith.constant 128 : index
    %65 = vector.load %arg16[%c4_75, %c128_76] : memref<16x1152xf32, #tpu.memory_space<vmem>>, vector<4x128xf32>
    tpu.vector_store %arg16[%c4_75, %c128_76], %64 {strides = array<i32>} : memref<16x1152xf32, #tpu.memory_space<vmem>>, vector<4x128xf32>,
    %c2_77 = arith.constant 2 : index
    %c0_78 = arith.constant 0 : index
    %66 = tpu.strided_load %arg17[%c2_77, %c0_78] {strides = array<i32: 2, 1>} : memref<32x128xf32, #tpu.memory_space<vmem>>, vector<4x128xf32>
    %c0_79 = arith.constant 0 : index
    %c256_80 = arith.constant 256 : index
    %67 = vector.load %arg16[%c0_79, %c256_80] : memref<16x1152xf32, #tpu.memory_space<vmem>>, vector<4x128xf32>
    tpu.vector_store %arg16[%c0_79, %c256_80], %66 {strides = array<i32>} : memref<16x1152xf32, #tpu.memory_space<vmem>>, vector<4x128xf32>,
    %c18 = arith.constant 18 : index
    %c0_81 = arith.constant 0 : index
    %68 = tpu.strided_load %arg17[%c18, %c0_81] {strides = array<i32: 2, 1>} : memref<32x128xf32, #tpu.memory_space<vmem>>, vector<4x128xf32>
    %c4_82 = arith.constant 4 : index
    %c256_83 = arith.constant 256 : index
    %69 = vector.load %arg16[%c4_82, %c256_83] : memref<16x1152xf32, #tpu.memory_space<vmem>>, vector<4x128xf32>
    tpu.vector_store %arg16[%c4_82, %c256_83], %68 {strides = array<i32>} : memref<16x1152xf32, #tpu.memory_space<vmem>>, vector<4x128xf32>,
    %c3_84 = arith.constant 3 : index
    %c0_85 = arith.constant 0 : index
    %70 = tpu.strided_load %arg17[%c3_84, %c0_85] {strides = array<i32: 2, 1>} : memref<32x128xf32, #tpu.memory_space<vmem>>, vector<4x128xf32>
    %c0_86 = arith.constant 0 : index
    %c384_87 = arith.constant 384 : index
    %71 = vector.load %arg16[%c0_86, %c384_87] : memref<16x1152xf32, #tpu.memory_space<vmem>>, vector<4x128xf32>
    tpu.vector_store %arg16[%c0_86, %c384_87], %70 {strides = array<i32>} : memref<16x1152xf32, #tpu.memory_space<vmem>>, vector<4x128xf32>,
    %c19 = arith.constant 19 : index
    %c0_88 = arith.constant 0 : index
    %72 = tpu.strided_load %arg17[%c19, %c0_88] {strides = array<i32: 2, 1>} : memref<32x128xf32, #tpu.memory_space<vmem>>, vector<4x128xf32>
    %c4_89 = arith.constant 4 : index
    %c384_90 = arith.constant 384 : index
    %73 = vector.load %arg16[%c4_89, %c384_90] : memref<16x1152xf32, #tpu.memory_space<vmem>>, vector<4x128xf32>
    tpu.vector_store %arg16[%c4_89, %c384_90], %72 {strides = array<i32>} : memref<16x1152xf32, #tpu.memory_space<vmem>>, vector<4x128xf32>,
    %c4_91 = arith.constant 4 : index
    %c0_92 = arith.constant 0 : index
    %74 = tpu.strided_load %arg17[%c4_91, %c0_92] {strides = array<i32: 2, 1>} : memref<32x128xf32, #tpu.memory_space<vmem>>, vector<4x128xf32>
    %c0_93 = arith.constant 0 : index
    %c512_94 = arith.constant 512 : index
    %75 = vector.load %arg16[%c0_93, %c512_94] : memref<16x1152xf32, #tpu.memory_space<vmem>>, vector<4x128xf32>
    tpu.vector_store %arg16[%c0_93, %c512_94], %74 {strides = array<i32>} : memref<16x1152xf32, #tpu.memory_space<vmem>>, vector<4x128xf32>,
    %c20_95 = arith.constant 20 : index
    %c0_96 = arith.constant 0 : index
    %76 = tpu.strided_load %arg17[%c20_95, %c0_96] {strides = array<i32: 2, 1>} : memref<32x128xf32, #tpu.memory_space<vmem>>, vector<4x128xf32>
    %c4_97 = arith.constant 4 : index
    %c512_98 = arith.constant 512 : index
    %77 = vector.load %arg16[%c4_97, %c512_98] : memref<16x1152xf32, #tpu.memory_space<vmem>>, vector<4x128xf32>
    tpu.vector_store %arg16[%c4_97, %c512_98], %76 {strides = array<i32>} : memref<16x1152xf32, #tpu.memory_space<vmem>>, vector<4x128xf32>,
    %c5_99 = arith.constant 5 : index
    %c0_100 = arith.constant 0 : index
    %78 = tpu.strided_load %arg17[%c5_99, %c0_100] {strides = array<i32: 2, 1>} : memref<32x128xf32, #tpu.memory_space<vmem>>, vector<4x128xf32>
    %c0_101 = arith.constant 0 : index
    %c640_102 = arith.constant 640 : index
    %79 = vector.load %arg16[%c0_101, %c640_102] : memref<16x1152xf32, #tpu.memory_space<vmem>>, vector<4x128xf32>
    tpu.vector_store %arg16[%c0_101, %c640_102], %78 {strides = array<i32>} : memref<16x1152xf32, #tpu.memory_space<vmem>>, vector<4x128xf32>,
    %c21 = arith.constant 21 : index
    %c0_103 = arith.constant 0 : index
    %80 = tpu.strided_load %arg17[%c21, %c0_103] {strides = array<i32: 2, 1>} : memref<32x128xf32, #tpu.memory_space<vmem>>, vector<4x128xf32>
    %c4_104 = arith.constant 4 : index
    %c640_105 = arith.constant 640 : index
    %81 = vector.load %arg16[%c4_104, %c640_105] : memref<16x1152xf32, #tpu.memory_space<vmem>>, vector<4x128xf32>
    tpu.vector_store %arg16[%c4_104, %c640_105], %80 {strides = array<i32>} : memref<16x1152xf32, #tpu.memory_space<vmem>>, vector<4x128xf32>,
    %c6_106 = arith.constant 6 : index
    %c0_107 = arith.constant 0 : index
    %82 = tpu.strided_load %arg17[%c6_106, %c0_107] {strides = array<i32: 2, 1>} : memref<32x128xf32, #tpu.memory_space<vmem>>, vector<4x128xf32>
    %c0_108 = arith.constant 0 : index
    %c768_109 = arith.constant 768 : index
    %83 = vector.load %arg16[%c0_108, %c768_109] : memref<16x1152xf32, #tpu.memory_space<vmem>>, vector<4x128xf32>
    tpu.vector_store %arg16[%c0_108, %c768_109], %82 {strides = array<i32>} : memref<16x1152xf32, #tpu.memory_space<vmem>>, vector<4x128xf32>,
    %c22 = arith.constant 22 : index
    %c0_110 = arith.constant 0 : index
    %84 = tpu.strided_load %arg17[%c22, %c0_110] {strides = array<i32: 2, 1>} : memref<32x128xf32, #tpu.memory_space<vmem>>, vector<4x128xf32>
    %c4_111 = arith.constant 4 : index
    %c768_112 = arith.constant 768 : index
    %85 = vector.load %arg16[%c4_111, %c768_112] : memref<16x1152xf32, #tpu.memory_space<vmem>>, vector<4x128xf32>
    tpu.vector_store %arg16[%c4_111, %c768_112], %84 {strides = array<i32>} : memref<16x1152xf32, #tpu.memory_space<vmem>>, vector<4x128xf32>,
    %c7_113 = arith.constant 7 : index
    %c0_114 = arith.constant 0 : index
    %86 = tpu.strided_load %arg17[%c7_113, %c0_114] {strides = array<i32: 2, 1>} : memref<32x128xf32, #tpu.memory_space<vmem>>, vector<4x128xf32>
    %c0_115 = arith.constant 0 : index
    %c896_116 = arith.constant 896 : index
    %87 = vector.load %arg16[%c0_115, %c896_116] : memref<16x1152xf32, #tpu.memory_space<vmem>>, vector<4x128xf32>
    tpu.vector_store %arg16[%c0_115, %c896_116], %86 {strides = array<i32>} : memref<16x1152xf32, #tpu.memory_space<vmem>>, vector<4x128xf32>,
    %c23 = arith.constant 23 : index
    %c0_117 = arith.constant 0 : index
    %88 = tpu.strided_load %arg17[%c23, %c0_117] {strides = array<i32: 2, 1>} : memref<32x128xf32, #tpu.memory_space<vmem>>, vector<4x128xf32>
    %c4_118 = arith.constant 4 : index
    %c896_119 = arith.constant 896 : index
    %89 = vector.load %arg16[%c4_118, %c896_119] : memref<16x1152xf32, #tpu.memory_space<vmem>>, vector<4x128xf32>
    tpu.vector_store %arg16[%c4_118, %c896_119], %88 {strides = array<i32>} : memref<16x1152xf32, #tpu.memory_space<vmem>>, vector<4x128xf32>,
    %c8_120 = arith.constant 8 : index
    %c0_121 = arith.constant 0 : index
    %90 = tpu.strided_load %arg17[%c8_120, %c0_121] {strides = array<i32: 2, 1>} : memref<32x128xf32, #tpu.memory_space<vmem>>, vector<4x128xf32>
    %c0_122 = arith.constant 0 : index
    %c1024_123 = arith.constant 1024 : index
    %91 = vector.load %arg16[%c0_122, %c1024_123] : memref<16x1152xf32, #tpu.memory_space<vmem>>, vector<4x128xf32>
    tpu.vector_store %arg16[%c0_122, %c1024_123], %90 {strides = array<i32>} : memref<16x1152xf32, #tpu.memory_space<vmem>>, vector<4x128xf32>,
    %c24_124 = arith.constant 24 : index
    %c0_125 = arith.constant 0 : index
    %92 = tpu.strided_load %arg17[%c24_124, %c0_125] {strides = array<i32: 2, 1>} : memref<32x128xf32, #tpu.memory_space<vmem>>, vector<4x128xf32>
    %c4_126 = arith.constant 4 : index
    %c1024_127 = arith.constant 1024 : index
    %93 = vector.load %arg16[%c4_126, %c1024_127] : memref<16x1152xf32, #tpu.memory_space<vmem>>, vector<4x128xf32>
    tpu.vector_store %arg16[%c4_126, %c1024_127], %92 {strides = array<i32>} : memref<16x1152xf32, #tpu.memory_space<vmem>>, vector<4x128xf32>,
    %c0_128 = arith.constant 0 : index
    %c0_129 = arith.constant 0 : index
    %94 = vector.load %arg16[%c0_128, %c0_129] : memref<16x1152xf32, #tpu.memory_space<vmem>>, vector<8x1152xf32>
    %95 = arith.truncf %94 : vector<8x1152xf32> to vector<8x1152xbf16>
    %c0_130 = arith.constant 0 : index
    %c0_131 = arith.constant 0 : index
    %96 = vector.load %arg4[%c0_130, %c0_131] : memref<1152x128xbf16, #tpu.memory_space<vmem>>, vector<1152x128xbf16>
    %cst_132 = arith.constant dense<0.000000e+00> : vector<8x128xf32>
    %97 = tpu.matmul %95, %96, %cst_132 {dimension_numbers = #tpu.dot_dimension_numbers<[1], [0], [0], [1], [0, 0, 1, 1], [], []>} : vector<8x1152xbf16>, vector<1152x128xbf16>, vector<8x128xf32> -> vector<8x128xf32>
    %cst_133 = arith.constant dense<0.000000e+00> : vector<128xf32>
    %98 = vector.multi_reduction <add>, %97, %cst_133 [0] : vector<8x128xf32> to vector<128xf32>
    %99 = vector.shape_cast %98 : vector<128xf32> to vector<1x128xf32>
    %c0_134 = arith.constant 0 : index
    %c0_135 = arith.constant 0 : index
    %100 = vector.load %arg5[%c0_134, %c0_135] : memref<128x128xf32, #tpu.memory_space<vmem>>, vector<128x128xf32>
    %cst_136 = arith.constant dense<0.000000e+00> : vector<1x128xf32>
    %101 = tpu.matmul %99, %100, %cst_136 {dimension_numbers = #tpu.dot_dimension_numbers<[1], [0], [0], [1], [0, 0, 1, 1], [], []>} : vector<1x128xf32>, vector<128x128xf32>, vector<1x128xf32> -> vector<1x128xf32>
    %102 = vector.broadcast %101 : vector<1x128xf32> to vector<8x128xf32>
    %103 = arith.subf %97, %102 : vector<8x128xf32>
    %c0_137 = arith.constant 0 : index
    %c0_138 = arith.constant 0 : index
    %104 = vector.load %arg6[%c0_137, %c0_138] : memref<1x128xf32, #tpu.memory_space<vmem>>, vector<1x128xf32>
    %105 = vector.broadcast %104 : vector<1x128xf32> to vector<8x128xf32>
    %106 = arith.addf %103, %105 : vector<8x128xf32>
    %cst_139 = arith.constant 2.000000e-01 : f32
    %107 = vector.broadcast %cst_139 : f32 to vector<8x128xf32>
    %108 = arith.mulf %107, %106 : vector<8x128xf32>
    %109 = arith.maximumf %106, %108 : vector<8x128xf32>
    %cst_140 = arith.constant 0.000000e+00 : f32
    %110 = vector.broadcast %cst_140 : f32 to vector<24x128xf32>
    %c0_141 = arith.constant 0 : index
    %c0_142 = arith.constant 0 : index
    %111 = vector.load %arg18[%c0_141, %c0_142] : memref<24x128xf32, #tpu.memory_space<vmem>>, vector<24x128xf32>
    tpu.vector_store %arg18[%c0_141, %c0_142], %110 {strides = array<i32>} : memref<24x128xf32, #tpu.memory_space<vmem>>, vector<24x128xf32>,
    %112 = vector.extract_strided_slice %109 {offsets = [0, 0], sizes = [4, 128], strides = [1, 1]} : vector<8x128xf32> to vector<4x128xf32>
    %c4_143 = arith.constant 4 : index
    %c0_144 = arith.constant 0 : index
    %113 = vector.load %arg18[%c4_143, %c0_144] : memref<24x128xf32, #tpu.memory_space<vmem>>, vector<4x128xf32>
    tpu.vector_store %arg18[%c4_143, %c0_144], %112 {strides = array<i32>} : memref<24x128xf32, #tpu.memory_space<vmem>>, vector<4x128xf32>,
    %114 = vector.extract_strided_slice %109 {offsets = [4, 0], sizes = [4, 128], strides = [1, 1]} : vector<8x128xf32> to vector<4x128xf32>
    %c16_145 = arith.constant 16 : index
    %c0_146 = arith.constant 0 : index
    %115 = vector.load %arg18[%c16_145, %c0_146] : memref<24x128xf32, #tpu.memory_space<vmem>>, vector<4x128xf32>
    tpu.vector_store %arg18[%c16_145, %c0_146], %114 {strides = array<i32>} : memref<24x128xf32, #tpu.memory_space<vmem>>, vector<4x128xf32>,
    %c0_147 = arith.constant 0 : index
    %c0_148 = arith.constant 0 : index
    %116 = tpu.strided_load %arg18[%c0_147, %c0_148] {strides = array<i32: 2, 1>} : memref<24x128xf32, #tpu.memory_space<vmem>>, vector<2x128xf32>
    %c0_149 = arith.constant 0 : index
    %c0_150 = arith.constant 0 : index
    %117 = vector.load %arg16[%c0_149, %c0_150] : memref<16x1152xf32, #tpu.memory_space<vmem>>, vector<2x128xf32>
    tpu.vector_store %arg16[%c0_149, %c0_150], %116 {strides = array<i32>} : memref<16x1152xf32, #tpu.memory_space<vmem>>, vector<2x128xf32>,
    %c12 = arith.constant 12 : index
    %c0_151 = arith.constant 0 : index
    %118 = tpu.strided_load %arg18[%c12, %c0_151] {strides = array<i32: 2, 1>} : memref<24x128xf32, #tpu.memory_space<vmem>>, vector<2x128xf32>
    %c2_152 = arith.constant 2 : index
    %c0_153 = arith.constant 0 : index
    %119 = vector.load %arg16[%c2_152, %c0_153] : memref<16x1152xf32, #tpu.memory_space<vmem>>, vector<2x128xf32>
    tpu.vector_store %arg16[%c2_152, %c0_153], %118 {strides = array<i32>} : memref<16x1152xf32, #tpu.memory_space<vmem>>, vector<2x128xf32>,
    %c1_154 = arith.constant 1 : index
    %c0_155 = arith.constant 0 : index
    %120 = tpu.strided_load %arg18[%c1_154, %c0_155] {strides = array<i32: 2, 1>} : memref<24x128xf32, #tpu.memory_space<vmem>>, vector<2x128xf32>
    %c0_156 = arith.constant 0 : index
    %c128_157 = arith.constant 128 : index
    %121 = vector.load %arg16[%c0_156, %c128_157] : memref<16x1152xf32, #tpu.memory_space<vmem>>, vector<2x128xf32>
    tpu.vector_store %arg16[%c0_156, %c128_157], %120 {strides = array<i32>} : memref<16x1152xf32, #tpu.memory_space<vmem>>, vector<2x128xf32>,
    %c13 = arith.constant 13 : index
    %c0_158 = arith.constant 0 : index
    %122 = tpu.strided_load %arg18[%c13, %c0_158] {strides = array<i32: 2, 1>} : memref<24x128xf32, #tpu.memory_space<vmem>>, vector<2x128xf32>
    %c2_159 = arith.constant 2 : index
    %c128_160 = arith.constant 128 : index
    %123 = vector.load %arg16[%c2_159, %c128_160] : memref<16x1152xf32, #tpu.memory_space<vmem>>, vector<2x128xf32>
    tpu.vector_store %arg16[%c2_159, %c128_160], %122 {strides = array<i32>} : memref<16x1152xf32, #tpu.memory_space<vmem>>, vector<2x128xf32>,
    %c2_161 = arith.constant 2 : index
    %c0_162 = arith.constant 0 : index
    %124 = tpu.strided_load %arg18[%c2_161, %c0_162] {strides = array<i32: 2, 1>} : memref<24x128xf32, #tpu.memory_space<vmem>>, vector<2x128xf32>
    %c0_163 = arith.constant 0 : index
    %c256_164 = arith.constant 256 : index
    %125 = vector.load %arg16[%c0_163, %c256_164] : memref<16x1152xf32, #tpu.memory_space<vmem>>, vector<2x128xf32>
    tpu.vector_store %arg16[%c0_163, %c256_164], %124 {strides = array<i32>} : memref<16x1152xf32, #tpu.memory_space<vmem>>, vector<2x128xf32>,
    %c14 = arith.constant 14 : index
    %c0_165 = arith.constant 0 : index
    %126 = tpu.strided_load %arg18[%c14, %c0_165] {strides = array<i32: 2, 1>} : memref<24x128xf32, #tpu.memory_space<vmem>>, vector<2x128xf32>
    %c2_166 = arith.constant 2 : index
    %c256_167 = arith.constant 256 : index
    %127 = vector.load %arg16[%c2_166, %c256_167] : memref<16x1152xf32, #tpu.memory_space<vmem>>, vector<2x128xf32>
    tpu.vector_store %arg16[%c2_166, %c256_167], %126 {strides = array<i32>} : memref<16x1152xf32, #tpu.memory_space<vmem>>, vector<2x128xf32>,
    %c3_168 = arith.constant 3 : index
    %c0_169 = arith.constant 0 : index
    %128 = tpu.strided_load %arg18[%c3_168, %c0_169] {strides = array<i32: 2, 1>} : memref<24x128xf32, #tpu.memory_space<vmem>>, vector<2x128xf32>
    %c0_170 = arith.constant 0 : index
    %c384_171 = arith.constant 384 : index
    %129 = vector.load %arg16[%c0_170, %c384_171] : memref<16x1152xf32, #tpu.memory_space<vmem>>, vector<2x128xf32>
    tpu.vector_store %arg16[%c0_170, %c384_171], %128 {strides = array<i32>} : memref<16x1152xf32, #tpu.memory_space<vmem>>, vector<2x128xf32>,
    %c15 = arith.constant 15 : index
    %c0_172 = arith.constant 0 : index
    %130 = tpu.strided_load %arg18[%c15, %c0_172] {strides = array<i32: 2, 1>} : memref<24x128xf32, #tpu.memory_space<vmem>>, vector<2x128xf32>
    %c2_173 = arith.constant 2 : index
    %c384_174 = arith.constant 384 : index
    %131 = vector.load %arg16[%c2_173, %c384_174] : memref<16x1152xf32, #tpu.memory_space<vmem>>, vector<2x128xf32>
    tpu.vector_store %arg16[%c2_173, %c384_174], %130 {strides = array<i32>} : memref<16x1152xf32, #tpu.memory_space<vmem>>, vector<2x128xf32>,
    %c4_175 = arith.constant 4 : index
    %c0_176 = arith.constant 0 : index
    %132 = tpu.strided_load %arg18[%c4_175, %c0_176] {strides = array<i32: 2, 1>} : memref<24x128xf32, #tpu.memory_space<vmem>>, vector<2x128xf32>
    %c0_177 = arith.constant 0 : index
    %c512_178 = arith.constant 512 : index
    %133 = vector.load %arg16[%c0_177, %c512_178] : memref<16x1152xf32, #tpu.memory_space<vmem>>, vector<2x128xf32>
    tpu.vector_store %arg16[%c0_177, %c512_178], %132 {strides = array<i32>} : memref<16x1152xf32, #tpu.memory_space<vmem>>, vector<2x128xf32>,
    %c16_179 = arith.constant 16 : index
    %c0_180 = arith.constant 0 : index
    %134 = tpu.strided_load %arg18[%c16_179, %c0_180] {strides = array<i32: 2, 1>} : memref<24x128xf32, #tpu.memory_space<vmem>>, vector<2x128xf32>
    %c2_181 = arith.constant 2 : index
    %c512_182 = arith.constant 512 : index
    %135 = vector.load %arg16[%c2_181, %c512_182] : memref<16x1152xf32, #tpu.memory_space<vmem>>, vector<2x128xf32>
    tpu.vector_store %arg16[%c2_181, %c512_182], %134 {strides = array<i32>} : memref<16x1152xf32, #tpu.memory_space<vmem>>, vector<2x128xf32>,
    %c5_183 = arith.constant 5 : index
    %c0_184 = arith.constant 0 : index
    %136 = tpu.strided_load %arg18[%c5_183, %c0_184] {strides = array<i32: 2, 1>} : memref<24x128xf32, #tpu.memory_space<vmem>>, vector<2x128xf32>
    %c0_185 = arith.constant 0 : index
    %c640_186 = arith.constant 640 : index
    %137 = vector.load %arg16[%c0_185, %c640_186] : memref<16x1152xf32, #tpu.memory_space<vmem>>, vector<2x128xf32>
    tpu.vector_store %arg16[%c0_185, %c640_186], %136 {strides = array<i32>} : memref<16x1152xf32, #tpu.memory_space<vmem>>, vector<2x128xf32>,
    %c17_187 = arith.constant 17 : index
    %c0_188 = arith.constant 0 : index
    %138 = tpu.strided_load %arg18[%c17_187, %c0_188] {strides = array<i32: 2, 1>} : memref<24x128xf32, #tpu.memory_space<vmem>>, vector<2x128xf32>
    %c2_189 = arith.constant 2 : index
    %c640_190 = arith.constant 640 : index
    %139 = vector.load %arg16[%c2_189, %c640_190] : memref<16x1152xf32, #tpu.memory_space<vmem>>, vector<2x128xf32>
    tpu.vector_store %arg16[%c2_189, %c640_190], %138 {strides = array<i32>} : memref<16x1152xf32, #tpu.memory_space<vmem>>, vector<2x128xf32>,
    %c6_191 = arith.constant 6 : index
    %c0_192 = arith.constant 0 : index
    %140 = tpu.strided_load %arg18[%c6_191, %c0_192] {strides = array<i32: 2, 1>} : memref<24x128xf32, #tpu.memory_space<vmem>>, vector<2x128xf32>
    %c0_193 = arith.constant 0 : index
    %c768_194 = arith.constant 768 : index
    %141 = vector.load %arg16[%c0_193, %c768_194] : memref<16x1152xf32, #tpu.memory_space<vmem>>, vector<2x128xf32>
    tpu.vector_store %arg16[%c0_193, %c768_194], %140 {strides = array<i32>} : memref<16x1152xf32, #tpu.memory_space<vmem>>, vector<2x128xf32>,
    %c18_195 = arith.constant 18 : index
    %c0_196 = arith.constant 0 : index
    %142 = tpu.strided_load %arg18[%c18_195, %c0_196] {strides = array<i32: 2, 1>} : memref<24x128xf32, #tpu.memory_space<vmem>>, vector<2x128xf32>
    %c2_197 = arith.constant 2 : index
    %c768_198 = arith.constant 768 : index
    %143 = vector.load %arg16[%c2_197, %c768_198] : memref<16x1152xf32, #tpu.memory_space<vmem>>, vector<2x128xf32>
    tpu.vector_store %arg16[%c2_197, %c768_198], %142 {strides = array<i32>} : memref<16x1152xf32, #tpu.memory_space<vmem>>, vector<2x128xf32>,
    %c7_199 = arith.constant 7 : index
    %c0_200 = arith.constant 0 : index
    %144 = tpu.strided_load %arg18[%c7_199, %c0_200] {strides = array<i32: 2, 1>} : memref<24x128xf32, #tpu.memory_space<vmem>>, vector<2x128xf32>
    %c0_201 = arith.constant 0 : index
    %c896_202 = arith.constant 896 : index
    %145 = vector.load %arg16[%c0_201, %c896_202] : memref<16x1152xf32, #tpu.memory_space<vmem>>, vector<2x128xf32>
    tpu.vector_store %arg16[%c0_201, %c896_202], %144 {strides = array<i32>} : memref<16x1152xf32, #tpu.memory_space<vmem>>, vector<2x128xf32>,
    %c19_203 = arith.constant 19 : index
    %c0_204 = arith.constant 0 : index
    %146 = tpu.strided_load %arg18[%c19_203, %c0_204] {strides = array<i32: 2, 1>} : memref<24x128xf32, #tpu.memory_space<vmem>>, vector<2x128xf32>
    %c2_205 = arith.constant 2 : index
    %c896_206 = arith.constant 896 : index
    %147 = vector.load %arg16[%c2_205, %c896_206] : memref<16x1152xf32, #tpu.memory_space<vmem>>, vector<2x128xf32>
    tpu.vector_store %arg16[%c2_205, %c896_206], %146 {strides = array<i32>} : memref<16x1152xf32, #tpu.memory_space<vmem>>, vector<2x128xf32>,
    %c8_207 = arith.constant 8 : index
    %c0_208 = arith.constant 0 : index
    %148 = tpu.strided_load %arg18[%c8_207, %c0_208] {strides = array<i32: 2, 1>} : memref<24x128xf32, #tpu.memory_space<vmem>>, vector<2x128xf32>
    %c0_209 = arith.constant 0 : index
    %c1024_210 = arith.constant 1024 : index
    %149 = vector.load %arg16[%c0_209, %c1024_210] : memref<16x1152xf32, #tpu.memory_space<vmem>>, vector<2x128xf32>
    tpu.vector_store %arg16[%c0_209, %c1024_210], %148 {strides = array<i32>} : memref<16x1152xf32, #tpu.memory_space<vmem>>, vector<2x128xf32>,
    %c20_211 = arith.constant 20 : index
    %c0_212 = arith.constant 0 : index
    %150 = tpu.strided_load %arg18[%c20_211, %c0_212] {strides = array<i32: 2, 1>} : memref<24x128xf32, #tpu.memory_space<vmem>>, vector<2x128xf32>
    %c2_213 = arith.constant 2 : index
    %c1024_214 = arith.constant 1024 : index
    %151 = vector.load %arg16[%c2_213, %c1024_214] : memref<16x1152xf32, #tpu.memory_space<vmem>>, vector<2x128xf32>
    tpu.vector_store %arg16[%c2_213, %c1024_214], %150 {strides = array<i32>} : memref<16x1152xf32, #tpu.memory_space<vmem>>, vector<2x128xf32>,
    %c0_215 = arith.constant 0 : index
    %c0_216 = arith.constant 0 : index
    %152 = vector.load %arg16[%c0_215, %c0_216] : memref<16x1152xf32, #tpu.memory_space<vmem>>, vector<4x1152xf32>
    %153 = arith.truncf %152 : vector<4x1152xf32> to vector<4x1152xbf16>
    %c0_217 = arith.constant 0 : index
    %c0_218 = arith.constant 0 : index
    %154 = vector.load %arg7[%c0_217, %c0_218] : memref<1152x128xbf16, #tpu.memory_space<vmem>>, vector<1152x128xbf16>
    %cst_219 = arith.constant dense<0.000000e+00> : vector<4x128xf32>
    %155 = tpu.matmul %153, %154, %cst_219 {dimension_numbers = #tpu.dot_dimension_numbers<[1], [0], [0], [1], [0, 0, 1, 1], [], []>} : vector<4x1152xbf16>, vector<1152x128xbf16>, vector<4x128xf32> -> vector<4x128xf32>
    %cst_220 = arith.constant dense<0.000000e+00> : vector<128xf32>
    %156 = vector.multi_reduction <add>, %155, %cst_220 [0] : vector<4x128xf32> to vector<128xf32>
    %157 = vector.shape_cast %156 : vector<128xf32> to vector<1x128xf32>
    %c0_221 = arith.constant 0 : index
    %c0_222 = arith.constant 0 : index
    %158 = vector.load %arg8[%c0_221, %c0_222] : memref<128x128xf32, #tpu.memory_space<vmem>>, vector<128x128xf32>
    %cst_223 = arith.constant dense<0.000000e+00> : vector<1x128xf32>
    %159 = tpu.matmul %157, %158, %cst_223 {dimension_numbers = #tpu.dot_dimension_numbers<[1], [0], [0], [1], [0, 0, 1, 1], [], []>} : vector<1x128xf32>, vector<128x128xf32>, vector<1x128xf32> -> vector<1x128xf32>
    %160 = vector.broadcast %159 : vector<1x128xf32> to vector<4x128xf32>
    %161 = arith.subf %155, %160 : vector<4x128xf32>
    %c0_224 = arith.constant 0 : index
    %c0_225 = arith.constant 0 : index
    %162 = vector.load %arg9[%c0_224, %c0_225] : memref<1x128xf32, #tpu.memory_space<vmem>>, vector<1x128xf32>
    %163 = vector.broadcast %162 : vector<1x128xf32> to vector<4x128xf32>
    %164 = arith.addf %161, %163 : vector<4x128xf32>
    %cst_226 = arith.constant 2.000000e-01 : f32
    %165 = vector.broadcast %cst_226 : f32 to vector<4x128xf32>
    %166 = arith.mulf %165, %164 : vector<4x128xf32>
    %167 = arith.maximumf %164, %166 : vector<4x128xf32>
    %cst_227 = arith.constant 0.000000e+00 : f32
    %168 = vector.broadcast %cst_227 : f32 to vector<20x128xf32>
    %c0_228 = arith.constant 0 : index
    %c0_229 = arith.constant 0 : index
    %169 = vector.load %arg19[%c0_228, %c0_229] : memref<20x128xf32, #tpu.memory_space<vmem>>, vector<20x128xf32>
    tpu.vector_store %arg19[%c0_228, %c0_229], %168 {strides = array<i32>} : memref<20x128xf32, #tpu.memory_space<vmem>>, vector<20x128xf32>,
    %170 = vector.extract_strided_slice %167 {offsets = [0, 0], sizes = [2, 128], strides = [1, 1]} : vector<4x128xf32> to vector<2x128xf32>
    %c4_230 = arith.constant 4 : index
    %c0_231 = arith.constant 0 : index
    %171 = vector.load %arg19[%c4_230, %c0_231] : memref<20x128xf32, #tpu.memory_space<vmem>>, vector<2x128xf32>
    tpu.vector_store %arg19[%c4_230, %c0_231], %170 {strides = array<i32>} : memref<20x128xf32, #tpu.memory_space<vmem>>, vector<2x128xf32>,
    %172 = vector.extract_strided_slice %167 {offsets = [2, 0], sizes = [2, 128], strides = [1, 1]} : vector<4x128xf32> to vector<2x128xf32>
    %c14_232 = arith.constant 14 : index
    %c0_233 = arith.constant 0 : index
    %173 = vector.load %arg19[%c14_232, %c0_233] : memref<20x128xf32, #tpu.memory_space<vmem>>, vector<2x128xf32>
    tpu.vector_store %arg19[%c14_232, %c0_233], %172 {strides = array<i32>} : memref<20x128xf32, #tpu.memory_space<vmem>>, vector<2x128xf32>,
    %c0_234 = arith.constant 0 : index
    %c0_235 = arith.constant 0 : index
    %174 = vector.load %arg19[%c0_234, %c0_235] : memref<20x128xf32, #tpu.memory_space<vmem>>, vector<1x128xf32>
    %c0_236 = arith.constant 0 : index
    %c0_237 = arith.constant 0 : index
    %175 = vector.load %arg16[%c0_236, %c0_237] : memref<16x1152xf32, #tpu.memory_space<vmem>>, vector<1x128xf32>
    tpu.vector_store %arg16[%c0_236, %c0_237], %174 {strides = array<i32>} : memref<16x1152xf32, #tpu.memory_space<vmem>>, vector<1x128xf32>,
    %c10 = arith.constant 10 : index
    %c0_238 = arith.constant 0 : index
    %176 = vector.load %arg19[%c10, %c0_238] : memref<20x128xf32, #tpu.memory_space<vmem>>, vector<1x128xf32>
    %c1_239 = arith.constant 1 : index
    %c0_240 = arith.constant 0 : index
    %177 = vector.load %arg16[%c1_239, %c0_240] : memref<16x1152xf32, #tpu.memory_space<vmem>>, vector<1x128xf32>
    tpu.vector_store %arg16[%c1_239, %c0_240], %176 {strides = array<i32>} : memref<16x1152xf32, #tpu.memory_space<vmem>>, vector<1x128xf32>,
    %c1_241 = arith.constant 1 : index
    %c0_242 = arith.constant 0 : index
    %178 = vector.load %arg19[%c1_241, %c0_242] : memref<20x128xf32, #tpu.memory_space<vmem>>, vector<1x128xf32>
    %c0_243 = arith.constant 0 : index
    %c128_244 = arith.constant 128 : index
    %179 = vector.load %arg16[%c0_243, %c128_244] : memref<16x1152xf32, #tpu.memory_space<vmem>>, vector<1x128xf32>
    tpu.vector_store %arg16[%c0_243, %c128_244], %178 {strides = array<i32>} : memref<16x1152xf32, #tpu.memory_space<vmem>>, vector<1x128xf32>,
    %c11 = arith.constant 11 : index
    %c0_245 = arith.constant 0 : index
    %180 = vector.load %arg19[%c11, %c0_245] : memref<20x128xf32, #tpu.memory_space<vmem>>, vector<1x128xf32>
    %c1_246 = arith.constant 1 : index
    %c128_247 = arith.constant 128 : index
    %181 = vector.load %arg16[%c1_246, %c128_247] : memref<16x1152xf32, #tpu.memory_space<vmem>>, vector<1x128xf32>
    tpu.vector_store %arg16[%c1_246, %c128_247], %180 {strides = array<i32>} : memref<16x1152xf32, #tpu.memory_space<vmem>>, vector<1x128xf32>,
    %c2_248 = arith.constant 2 : index
    %c0_249 = arith.constant 0 : index
    %182 = vector.load %arg19[%c2_248, %c0_249] : memref<20x128xf32, #tpu.memory_space<vmem>>, vector<1x128xf32>
    %c0_250 = arith.constant 0 : index
    %c256_251 = arith.constant 256 : index
    %183 = vector.load %arg16[%c0_250, %c256_251] : memref<16x1152xf32, #tpu.memory_space<vmem>>, vector<1x128xf32>
    tpu.vector_store %arg16[%c0_250, %c256_251], %182 {strides = array<i32>} : memref<16x1152xf32, #tpu.memory_space<vmem>>, vector<1x128xf32>,
    %c12_252 = arith.constant 12 : index
    %c0_253 = arith.constant 0 : index
    %184 = vector.load %arg19[%c12_252, %c0_253] : memref<20x128xf32, #tpu.memory_space<vmem>>, vector<1x128xf32>
    %c1_254 = arith.constant 1 : index
    %c256_255 = arith.constant 256 : index
    %185 = vector.load %arg16[%c1_254, %c256_255] : memref<16x1152xf32, #tpu.memory_space<vmem>>, vector<1x128xf32>
    tpu.vector_store %arg16[%c1_254, %c256_255], %184 {strides = array<i32>} : memref<16x1152xf32, #tpu.memory_space<vmem>>, vector<1x128xf32>,
    %c3_256 = arith.constant 3 : index
    %c0_257 = arith.constant 0 : index
    %186 = vector.load %arg19[%c3_256, %c0_257] : memref<20x128xf32, #tpu.memory_space<vmem>>, vector<1x128xf32>
    %c0_258 = arith.constant 0 : index
    %c384_259 = arith.constant 384 : index
    %187 = vector.load %arg16[%c0_258, %c384_259] : memref<16x1152xf32, #tpu.memory_space<vmem>>, vector<1x128xf32>
    tpu.vector_store %arg16[%c0_258, %c384_259], %186 {strides = array<i32>} : memref<16x1152xf32, #tpu.memory_space<vmem>>, vector<1x128xf32>,
    %c13_260 = arith.constant 13 : index
    %c0_261 = arith.constant 0 : index
    %188 = vector.load %arg19[%c13_260, %c0_261] : memref<20x128xf32, #tpu.memory_space<vmem>>, vector<1x128xf32>
    %c1_262 = arith.constant 1 : index
    %c384_263 = arith.constant 384 : index
    %189 = vector.load %arg16[%c1_262, %c384_263] : memref<16x1152xf32, #tpu.memory_space<vmem>>, vector<1x128xf32>
    tpu.vector_store %arg16[%c1_262, %c384_263], %188 {strides = array<i32>} : memref<16x1152xf32, #tpu.memory_space<vmem>>, vector<1x128xf32>,
    %c4_264 = arith.constant 4 : index
    %c0_265 = arith.constant 0 : index
    %190 = vector.load %arg19[%c4_264, %c0_265] : memref<20x128xf32, #tpu.memory_space<vmem>>, vector<1x128xf32>
    %c0_266 = arith.constant 0 : index
    %c512_267 = arith.constant 512 : index
    %191 = vector.load %arg16[%c0_266, %c512_267] : memref<16x1152xf32, #tpu.memory_space<vmem>>, vector<1x128xf32>
    tpu.vector_store %arg16[%c0_266, %c512_267], %190 {strides = array<i32>} : memref<16x1152xf32, #tpu.memory_space<vmem>>, vector<1x128xf32>,
    %c14_268 = arith.constant 14 : index
    %c0_269 = arith.constant 0 : index
    %192 = vector.load %arg19[%c14_268, %c0_269] : memref<20x128xf32, #tpu.memory_space<vmem>>, vector<1x128xf32>
    %c1_270 = arith.constant 1 : index
    %c512_271 = arith.constant 512 : index
    %193 = vector.load %arg16[%c1_270, %c512_271] : memref<16x1152xf32, #tpu.memory_space<vmem>>, vector<1x128xf32>
    tpu.vector_store %arg16[%c1_270, %c512_271], %192 {strides = array<i32>} : memref<16x1152xf32, #tpu.memory_space<vmem>>, vector<1x128xf32>,
    %c5_272 = arith.constant 5 : index
    %c0_273 = arith.constant 0 : index
    %194 = vector.load %arg19[%c5_272, %c0_273] : memref<20x128xf32, #tpu.memory_space<vmem>>, vector<1x128xf32>
    %c0_274 = arith.constant 0 : index
    %c640_275 = arith.constant 640 : index
    %195 = vector.load %arg16[%c0_274, %c640_275] : memref<16x1152xf32, #tpu.memory_space<vmem>>, vector<1x128xf32>
    tpu.vector_store %arg16[%c0_274, %c640_275], %194 {strides = array<i32>} : memref<16x1152xf32, #tpu.memory_space<vmem>>, vector<1x128xf32>,
    %c15_276 = arith.constant 15 : index
    %c0_277 = arith.constant 0 : index
    %196 = vector.load %arg19[%c15_276, %c0_277] : memref<20x128xf32, #tpu.memory_space<vmem>>, vector<1x128xf32>
    %c1_278 = arith.constant 1 : index
    %c640_279 = arith.constant 640 : index
    %197 = vector.load %arg16[%c1_278, %c640_279] : memref<16x1152xf32, #tpu.memory_space<vmem>>, vector<1x128xf32>
    tpu.vector_store %arg16[%c1_278, %c640_279], %196 {strides = array<i32>} : memref<16x1152xf32, #tpu.memory_space<vmem>>, vector<1x128xf32>,
    %c6_280 = arith.constant 6 : index
    %c0_281 = arith.constant 0 : index
    %198 = vector.load %arg19[%c6_280, %c0_281] : memref<20x128xf32, #tpu.memory_space<vmem>>, vector<1x128xf32>
    %c0_282 = arith.constant 0 : index
    %c768_283 = arith.constant 768 : index
    %199 = vector.load %arg16[%c0_282, %c768_283] : memref<16x1152xf32, #tpu.memory_space<vmem>>, vector<1x128xf32>
    tpu.vector_store %arg16[%c0_282, %c768_283], %198 {strides = array<i32>} : memref<16x1152xf32, #tpu.memory_space<vmem>>, vector<1x128xf32>,
    %c16_284 = arith.constant 16 : index
    %c0_285 = arith.constant 0 : index
    %200 = vector.load %arg19[%c16_284, %c0_285] : memref<20x128xf32, #tpu.memory_space<vmem>>, vector<1x128xf32>
    %c1_286 = arith.constant 1 : index
    %c768_287 = arith.constant 768 : index
    %201 = vector.load %arg16[%c1_286, %c768_287] : memref<16x1152xf32, #tpu.memory_space<vmem>>, vector<1x128xf32>
    tpu.vector_store %arg16[%c1_286, %c768_287], %200 {strides = array<i32>} : memref<16x1152xf32, #tpu.memory_space<vmem>>, vector<1x128xf32>,
    %c7_288 = arith.constant 7 : index
    %c0_289 = arith.constant 0 : index
    %202 = vector.load %arg19[%c7_288, %c0_289] : memref<20x128xf32, #tpu.memory_space<vmem>>, vector<1x128xf32>
    %c0_290 = arith.constant 0 : index
    %c896_291 = arith.constant 896 : index
    %203 = vector.load %arg16[%c0_290, %c896_291] : memref<16x1152xf32, #tpu.memory_space<vmem>>, vector<1x128xf32>
    tpu.vector_store %arg16[%c0_290, %c896_291], %202 {strides = array<i32>} : memref<16x1152xf32, #tpu.memory_space<vmem>>, vector<1x128xf32>,
    %c17_292 = arith.constant 17 : index
    %c0_293 = arith.constant 0 : index
    %204 = vector.load %arg19[%c17_292, %c0_293] : memref<20x128xf32, #tpu.memory_space<vmem>>, vector<1x128xf32>
    %c1_294 = arith.constant 1 : index
    %c896_295 = arith.constant 896 : index
    %205 = vector.load %arg16[%c1_294, %c896_295] : memref<16x1152xf32, #tpu.memory_space<vmem>>, vector<1x128xf32>
    tpu.vector_store %arg16[%c1_294, %c896_295], %204 {strides = array<i32>} : memref<16x1152xf32, #tpu.memory_space<vmem>>, vector<1x128xf32>,
    %c8_296 = arith.constant 8 : index
    %c0_297 = arith.constant 0 : index
    %206 = vector.load %arg19[%c8_296, %c0_297] : memref<20x128xf32, #tpu.memory_space<vmem>>, vector<1x128xf32>
    %c0_298 = arith.constant 0 : index
    %c1024_299 = arith.constant 1024 : index
    %207 = vector.load %arg16[%c0_298, %c1024_299] : memref<16x1152xf32, #tpu.memory_space<vmem>>, vector<1x128xf32>
    tpu.vector_store %arg16[%c0_298, %c1024_299], %206 {strides = array<i32>} : memref<16x1152xf32, #tpu.memory_space<vmem>>, vector<1x128xf32>,
    %c18_300 = arith.constant 18 : index
    %c0_301 = arith.constant 0 : index
    %208 = vector.load %arg19[%c18_300, %c0_301] : memref<20x128xf32, #tpu.memory_space<vmem>>, vector<1x128xf32>
    %c1_302 = arith.constant 1 : index
    %c1024_303 = arith.constant 1024 : index
    %209 = vector.load %arg16[%c1_302, %c1024_303] : memref<16x1152xf32, #tpu.memory_space<vmem>>, vector<1x128xf32>
    tpu.vector_store %arg16[%c1_302, %c1024_303], %208 {strides = array<i32>} : memref<16x1152xf32, #tpu.memory_space<vmem>>, vector<1x128xf32>,
    %c0_304 = arith.constant 0 : index
    %c0_305 = arith.constant 0 : index
    %210 = vector.load %arg16[%c0_304, %c0_305] : memref<16x1152xf32, #tpu.memory_space<vmem>>, vector<2x1152xf32>
    %211 = arith.truncf %210 : vector<2x1152xf32> to vector<2x1152xbf16>
    %c0_306 = arith.constant 0 : index
    %c0_307 = arith.constant 0 : index
    %212 = vector.load %arg10[%c0_306, %c0_307] : memref<1152x128xbf16, #tpu.memory_space<vmem>>, vector<1152x128xbf16>
    %cst_308 = arith.constant dense<0.000000e+00> : vector<2x128xf32>
    %213 = tpu.matmul %211, %212, %cst_308 {dimension_numbers = #tpu.dot_dimension_numbers<[1], [0], [0], [1], [0, 0, 1, 1], [], []>} : vector<2x1152xbf16>, vector<1152x128xbf16>, vector<2x128xf32> -> vector<2x128xf32>
    %cst_309 = arith.constant dense<0.000000e+00> : vector<128xf32>
    %214 = vector.multi_reduction <add>, %213, %cst_309 [0] : vector<2x128xf32> to vector<128xf32>
    %215 = vector.shape_cast %214 : vector<128xf32> to vector<1x128xf32>
    %c0_310 = arith.constant 0 : index
    %c0_311 = arith.constant 0 : index
    %216 = vector.load %arg11[%c0_310, %c0_311] : memref<128x128xf32, #tpu.memory_space<vmem>>, vector<128x128xf32>
    %cst_312 = arith.constant dense<0.000000e+00> : vector<1x128xf32>
    %217 = tpu.matmul %215, %216, %cst_312 {dimension_numbers = #tpu.dot_dimension_numbers<[1], [0], [0], [1], [0, 0, 1, 1], [], []>} : vector<1x128xf32>, vector<128x128xf32>, vector<1x128xf32> -> vector<1x128xf32>
    %218 = vector.broadcast %217 : vector<1x128xf32> to vector<2x128xf32>
    %219 = arith.subf %213, %218 : vector<2x128xf32>
    %c0_313 = arith.constant 0 : index
    %c0_314 = arith.constant 0 : index
    %220 = vector.load %arg12[%c0_313, %c0_314] : memref<1x128xf32, #tpu.memory_space<vmem>>, vector<1x128xf32>
    %221 = vector.broadcast %220 : vector<1x128xf32> to vector<2x128xf32>
    %222 = arith.addf %219, %221 : vector<2x128xf32>
    %cst_315 = arith.constant 2.000000e-01 : f32
    %223 = vector.broadcast %cst_315 : f32 to vector<2x128xf32>
    %224 = arith.mulf %223, %222 : vector<2x128xf32>
    %225 = arith.maximumf %222, %224 : vector<2x128xf32>
    %c0_316 = arith.constant 0 : index
    %c0_317 = arith.constant 0 : index
    %226 = vector.load %arg13[%c0_316, %c0_317] : memref<1x2xf32, #tpu.memory_space<vmem>>, vector<1x2xf32>
    %cst_318 = arith.constant dense<0.000000e+00> : vector<1x128xf32>
    %227 = tpu.matmul %226, %225, %cst_318 {dimension_numbers = #tpu.dot_dimension_numbers<[1], [0], [0], [1], [0, 0, 1, 1], [], []>} : vector<1x2xf32>, vector<2x128xf32>, vector<1x128xf32> -> vector<1x128xf32>
    %c0_319 = arith.constant 0 : index
    %c0_320 = arith.constant 0 : index
    %228 = vector.load %arg14[%c0_319, %c0_320] : memref<128x1xf32, #tpu.memory_space<vmem>>, vector<128x1xf32>
    %cst_321 = arith.constant dense<0.000000e+00> : vector<1x1xf32>
    %229 = tpu.matmul %227, %228, %cst_321 {dimension_numbers = #tpu.dot_dimension_numbers<[1], [0], [0], [1], [0, 0, 1, 1], [], []>} : vector<1x128xf32>, vector<128x1xf32>, vector<1x1xf32> -> vector<1x1xf32>
    %c0_322 = arith.constant 0 : index
    %c0_323 = arith.constant 0 : index
    %230 = vector.load %arg15[%c0_322, %c0_323] : memref<1x1xf32, #tpu.memory_space<vmem>>, vector<1x1xf32>
    tpu.vector_store %arg15[%c0_322, %c0_323], %229 {strides = array<i32>} : memref<1x1xf32, #tpu.memory_space<vmem>>, vector<1x1xf32>,
    return
  }
}

</mosaic_0001>

<bundles_post_ra>
// kernel: sgan2d_d_msn_forward.1
= control target key start
LH: loop header
LB: loop body
LE: loop exit
PB: predicated region body
PF: predicated region fallthrough
CT: control target
= control target key end

     0   :  { %20 = vsyncpa [#allocation7], 0  ;;  %s6694_s0 = inlined_call_operand.vmem [shape: f32[48,128], index: 0, kind: input, shape index: {}]   ;;  %s6695_s1 = inlined_call_operand.vmem [shape: bf16[1152,128], index: 1, kind: input, shape index: {}]   ;;  %s6696_s2 = inlined_call_operand.vmem [shape: f32[128,128], index: 2, kind: input, shape index: {}]   ;;  %s6697_s3 = inlined_call_operand.vmem [shape: f32[1,128], index: 3, kind: input, shape index: {}]   ;;  %s6698_s4 = inlined_call_operand.hbm [shape: bf16[1152,128], index: 4, kind: input, shape index: {}]   ;;  %s6699_s5 = inlined_call_operand.vmem [shape: f32[128,128], index: 5, kind: input, shape index: {}]   ;;  %s6700_s6 = inlined_call_operand.vmem [shape: f32[1,128], index: 6, kind: input, shape index: {}]   ;;  %s6701_s7 = inlined_call_operand.hbm [shape: bf16[1152,128], index: 7, kind: input, shape index: {}]   ;;  %s6702_s8 = inlined_call_operand.vmem [shape: f32[128,128], index: 8, kind: input, shape index: {}]   ;;  %s6703_s9 = inlined_call_operand.hbm [shape: f32[1,128], index: 9, kind: input, shape index: {}]   ;;  %s6704_s10 = inlined_call_operand.hbm [shape: bf16[1152,128], index: 10, kind: input, shape index: {}]   ;;  %s6705_s11 = inlined_call_operand.vmem [shape: f32[128,128], index: 11, kind: input, shape index: {}]   ;;  %s6706_s12 = inlined_call_operand.hbm [shape: f32[1,128], index: 12, kind: input, shape index: {}]   ;;  %s6707_s13 = inlined_call_operand.hbm [shape: f32[1,2], index: 13, kind: input, shape index: {}]   ;;  %s6708_s14 = inlined_call_operand.vmem [shape: f32[128,1], index: 14, kind: input, shape index: {}]   ;;  %s6709_s15 = inlined_call_operand.hbm [shape: f32[1,1], index: 15, kind: output, shape index: {}]  }
   0x1   :  { %21 = vsyncpa [#allocation10], 0 }
   0x2   :  { %22 = vsyncpa [#allocation13], 0 }
   0x3   :  { %23 = vsyncpa [#allocation16], 0 }
   0x4   :  { %24 = vsyncpa [#allocation8], 0  ;;  %s5836_s18 = smov [#allocation9]   ;;  %s5837_s20 = smov [#allocation12]  }
   0x5   :  { %s54_s19 = sshll.u32 %s5836_s18, 4  ;;  %s78_s21 = sshll.u32 %s5837_s20, 4  ;;  %s55_s19 = int_to_ptr.vmem [resolvable:$true] %s54_s19  ;;  %s5928_s21 = int_to_ptr.vmem [resolvable:$true] %s78_s21 }
   0x6   :  { %s5672_s24 = scalar_lea.hbm %s6701_s7, 9216 }
   0x7   :  { %p5673_p0 = scmp.ne.s32.totalorder %s6701_s7, %s5672_s24  ;;  %p5676_p1 = scmp.lt.u32.totalorder %s5672_s24, %s6701_s7 }
   0x9   :  { %p5678_p2 = pnand %p5676_p1, %p5673_p0 }
   0xb   :  { %5681 = shalt.err (!%p5678_p2)
}
   0xc   :  { %s5682_s29 = scalar_lea.vmem %s55_s19, 9216  ;;  %p5687_p4 = scmp.lt.s32.totalorder %s55_s19, %s55_s19 }
   0xd   :  { %p5683_p3 = scmp.ne.s32.totalorder %s55_s19, %s5682_s29  ;;  %p5688_p5 = scmp.lt.s32.totalorder %s5682_s29, %s5682_s29 }
   0xf   :  { %p5689_p6 = por %p5688_p5, %p5687_p4 }
  0x11   :  { %p5690_p7 = pnand %p5689_p6, %p5683_p3 }
  0x13   :  { %5693 = shalt.err (!%p5690_p7)
}
  0x14   :  { %s5838_s30 = smov 64   ;;  %s5839_s16 = smov 4  }
  0x15   :  { %60 = dma.hbm_to_vmem [thread:$0]  %s6701_s7, 9216, %s55_s19, [#allocation10], %s5838_s30, %s5838_s30, %s5839_s16  }
  0x16   :  { %s5694_s23 = scalar_lea.hbm %s6704_s10, 9216 }
  0x17   :  { %p5695_p8 = scmp.ne.s32.totalorder %s6704_s10, %s5694_s23  ;;  %p5698_p9 = scmp.lt.u32.totalorder %s5694_s23, %s6704_s10 }
  0x19   :  { %p5700_p10 = pnand %p5698_p9, %p5695_p8 }
  0x1b   :  { %5703 = shalt.err (!%p5700_p10)
}
  0x1c   :  { %s5704_s28 = scalar_lea.vmem %s5928_s21, 9216  ;;  %p5709_p12 = scmp.lt.s32.totalorder %s5928_s21, %s5928_s21 }
  0x1d   :  { %p5705_p11 = scmp.ne.s32.totalorder %s5928_s21, %s5704_s28  ;;  %p5710_p13 = scmp.lt.s32.totalorder %s5704_s28, %s5704_s28 }
  0x1f   :  { %p5711_p0 = por %p5710_p13, %p5709_p12 }
  0x21   :  { %p5712_p1 = pnand %p5711_p0, %p5705_p11 }
  0x23   :  { %5715 = shalt.err (!%p5712_p1)
}
  0x24   :  { %84 = dma.hbm_to_vmem [thread:$0]  %s6704_s10, 9216, %s5928_s21, [#allocation13], %s5838_s30, %s5838_s30, %s5839_s16  }
  0x25   :  { %s5840_s29 = smov [#allocation6]   ;;  %s5841_s18 = smov [#allocation11]  }
  0x26   :  { %s38_s17 = sshll.u32 %s5840_s29, 4  ;;  %s69_s20 = sshll.u32 %s5841_s18, 4  ;;  %s39_s17 = int_to_ptr.vmem [resolvable:$true] %s38_s17  ;;  %s70_s20 = int_to_ptr.vmem [resolvable:$true] %s69_s20 }
  0x27   :  { %s5716_s24 = scalar_lea.hbm %s6698_s4, 9216 }
  0x28   :  { %p5717_p2 = scmp.ne.s32.totalorder %s6698_s4, %s5716_s24  ;;  %p5720_p3 = scmp.lt.u32.totalorder %s5716_s24, %s6698_s4 }
  0x2a   :  { %p5722_p4 = pnand %p5720_p3, %p5717_p2 }
  0x2c   :  { %5725 = shalt.err (!%p5722_p4)
}
  0x2d   :  { %s5726_s10 = scalar_lea.vmem %s39_s17, 9216  ;;  %p5731_p6 = scmp.lt.s32.totalorder %s39_s17, %s39_s17 }
  0x2e   :  { %p5727_p5 = scmp.ne.s32.totalorder %s39_s17, %s5726_s10  ;;  %p5732_p7 = scmp.lt.s32.totalorder %s5726_s10, %s5726_s10 }
  0x30   :  { %p5733_p8 = por %p5732_p7, %p5731_p6 }
  0x32   :  { %p5734_p9 = pnand %p5733_p8, %p5727_p5 }
  0x34   :  { %5737 = shalt.err (!%p5734_p9)
}
  0x35   :  { %44 = dma.hbm_to_vmem [thread:$0]  %s6698_s4, 9216, %s39_s17, [#allocation7], %s5838_s30, %s5838_s30, %s5839_s16  }
  0x36   :  { %s5738_s18 = scalar_lea.hbm %s6703_s9, 16 }
  0x37   :  { %p5739_p10 = scmp.ne.s32.totalorder %s6703_s9, %s5738_s18  ;;  %p5742_p11 = scmp.lt.u32.totalorder %s5738_s18, %s6703_s9 }
  0x39   :  { %p5744_p12 = pnand %p5742_p11, %p5739_p10 }
  0x3b   :  { %5747 = shalt.err (!%p5744_p12)
}
  0x3c   :  { %s5748_s26 = scalar_lea.vmem %s70_s20, 16  ;;  %s5752_s27 = scalar_lea.vmem %s70_s20, 32 }
  0x3d   :  { %p5749_p13 = scmp.ne.s32.totalorder %s70_s20, %s5748_s26  ;;  %p5753_p0 = scmp.lt.s32.totalorder %s70_s20, %s70_s20 }
  0x3e   :  { %p5754_p1 = scmp.lt.s32.totalorder %s5752_s27, %s5748_s26 }
  0x40   :  { %p5755_p2 = por %p5754_p1, %p5753_p0 }
  0x42   :  { %p5756_p3 = pnand %p5755_p2, %p5749_p13 }
  0x44   :  { %5759 = shalt.err (!%p5756_p3)
}
  0x45   :  { %72 = dma.hbm_to_vmem [thread:$0]  %s6703_s9, 16, %s70_s20, [#allocation10]  }
  0x46   :  { %s5842_s16 = smov [#allocation14]   ;;  %s5843_s28 = smov [#allocation15]  }
  0x47   :  { %s93_s17 = sshll.u32 %s5842_s16, 4  ;;  %s103_s10 = sshll.u32 %s5843_s28, 4  ;;  %s94_s17 = int_to_ptr.vmem [resolvable:$true] %s93_s17  ;;  %s104_s10 = int_to_ptr.vmem [resolvable:$true] %s103_s10 }
  0x48   :  { %s5760_s19 = scalar_lea.hbm %s6706_s12, 16 }
  0x49   :  { %p5761_p4 = scmp.ne.s32.totalorder %s6706_s12, %s5760_s19  ;;  %p5764_p5 = scmp.lt.u32.totalorder %s5760_s19, %s6706_s12 }
  0x4b   :  { %p5766_p6 = pnand %p5764_p5, %p5761_p4 }
  0x4d   :  { %5769 = shalt.err (!%p5766_p6)
}
  0x4e   :  { %s5770_s9 = scalar_lea.vmem %s94_s17, 16  ;;  %s5774_s20 = scalar_lea.vmem %s94_s17, 32 }
  0x4f   :  { %p5771_p7 = scmp.ne.s32.totalorder %s94_s17, %s5770_s9  ;;  %p5775_p8 = scmp.lt.s32.totalorder %s94_s17, %s94_s17 }
  0x50   :  { %p5776_p9 = scmp.lt.s32.totalorder %s5774_s20, %s5770_s9 }
  0x52   :  { %p5777_p10 = por %p5776_p9, %p5775_p8 }
  0x54   :  { %p5778_p11 = pnand %p5777_p10, %p5771_p7 }
  0x56   :  { %5781 = shalt.err (!%p5778_p11)
}
  0x57   :  { %96 = dma.hbm_to_vmem [thread:$0]  %s6706_s12, 16, %s94_s17, [#allocation13]  }
  0x58   :  { %s5782_s4 = scalar_lea.hbm %s6707_s13, 16 }
  0x59   :  { %p5783_p12 = scmp.ne.s32.totalorder %s6707_s13, %s5782_s4  ;;  %p5786_p13 = scmp.lt.u32.totalorder %s5782_s4, %s6707_s13 }
  0x5b   :  { %p5788_p0 = pnand %p5786_p13, %p5783_p12 }
  0x5d   :  { %5791 = shalt.err (!%p5788_p0)
}
  0x5e   :  { %s5792_s7 = scalar_lea.vmem %s104_s10, 16  ;;  %s5796_s19 = scalar_lea.vmem %s104_s10, 32 }
  0x5f   :  { %p5793_p1 = scmp.ne.s32.totalorder %s104_s10, %s5792_s7  ;;  %p5797_p2 = scmp.lt.s32.totalorder %s104_s10, %s104_s10 }
  0x60   :  { %p5798_p3 = scmp.lt.s32.totalorder %s5796_s19, %s5792_s7 }
  0x62   :  { %p5799_p4 = por %p5798_p3, %p5797_p2 }
  0x64   :  { %p5800_p5 = pnand %p5799_p4, %p5793_p1 }
  0x66   :  { %5803 = shalt.err (!%p5800_p5)
}
  0x67   :  { %106 = dma.hbm_to_vmem [thread:$0]  %s6707_s13, 16, %s104_s10, [#allocation16]  }
  0x68   :  { %5826 = dma.done.wait [#allocation7], 9216  }
  0x69   :  { %5827 = vsyncadd [#allocation7], 4294958080 }
  0x6a   :  { %5828 = dma.done.wait [#allocation10], 9232  }
  0x6b   :  { %5829 = vsyncadd [#allocation10], 4294958064 }
  0x6c   :  { %5830 = dma.done.wait [#allocation13], 9232  }
  0x6d   :  { %5831 = vsyncadd [#allocation13], 4294958064 }
  0x6e   :  { %5832 = dma.done.wait [#allocation16], 16  }
  0x6f   :  { %5833 = vsyncadd [#allocation16], 4294967280  ;;  %v5844_v0 = vmov 0.0   ;;  %v5382_v1 = vld [vmem:[%s6695_s1 + $0x40] sm:$0xff]   ;;  %v5386_v5 = vld [vmem:[%s6695_s1 + $0x48] sm:$0xff]   ;;  %vm5845_vm0 = vmmov 0  }
  0x70   :  { %1101 = vst [vmem:[#allocation3] sm:$0xff] %v5844_v0  ;;  %1102 = vst [vmem:[#allocation3 + $0x8] sm:$0xff] %v5844_v0  ;;  %v5383_v2 = vld [vmem:[%s6695_s1 + $0xc0] sm:$0xff]   ;;  %4515 = vmatprep.subr.bf16.mxu0 %v5382_v1  ;;  %v5387_v6 = vld [vmem:[%s6695_s1 + $0xc8] sm:$0xff]   ;;  %vm2967_vm1 = vcmask 1043456   ;;  %vm3911_vm2 = vcmask 1041408  }
  0x71   :  { %1103 = vst [vmem:[#allocation3 + $0x10] sm:$0xff] %v5844_v0  ;;  %1104 = vst [vmem:[#allocation3 + $0x18] sm:$0xff] %v5844_v0  ;;  %v5384_v3 = vld [vmem:[%s6695_s1] sm:$0xff]   ;;  %4537 = vmatprep.subr.bf16.mxu1 %v5383_v2  ;;  %v5388_v7 = vld [vmem:[%s6695_s1 + $0x8] sm:$0xff]   ;;  %vm4021_vm3 = vcmask 15360   ;;  %vm4184_vm4 = vcmask 0  }
  0x72   :  { %2088 = vst [vmem:[#allocation4] sm:$0xff] %v5844_v0  ;;  %2089 = vst [vmem:[#allocation4 + $0x8] sm:$0xff] %v5844_v0  ;;  %v5385_v4 = vld [vmem:[%s6695_s1 + $0x80] sm:$0xff]   ;;  %4516 = vmatpush3.bf16.msra.mxu0 %v5384_v3  ;;  %v5389_v8 = vld [vmem:[%s6695_s1 + $0x88] sm:$0xff]  }
  0x73   :  { %2090 = vst [vmem:[#allocation4 + $0x10] sm:$0xff] %v5844_v0  ;;  %3076 = vst [vmem:[#allocation5] sm:$0xff] %v5844_v0  ;;  %4538 = vmatpush3.bf16.msra.mxu1 %v5385_v4  ;;  %4517 = vmatprep.subr.bf16.mxu0 %v5386_v5  ;;  %v5390_v9 = vld [vmem:[%s6695_s1 + $0x50] sm:$0xff]   ;;  %v5394_v13 = vld [vmem:[%s6695_s1 + $0x58] sm:$0xff]  }
  0x74   :  { %3077 = vst [vmem:[#allocation5 + $0x8] sm:$0xff] %v5844_v0  ;;  %3078 = vst [vmem:[#allocation5 + $0x10] sm:$0xf] %v5844_v0  ;;  %4539 = vmatprep.subr.bf16.mxu1 %v5387_v6  ;;  %v5391_v10 = vld [vmem:[%s6695_s1 + $0xd0] sm:$0xff]   ;;  %v5395_v14 = vld [vmem:[%s6695_s1 + $0xd8] sm:$0xff]  }
  0x75   :  { %v5392_v11 = vld [vmem:[%s6695_s1 + $0x10] sm:$0xff]   ;;  %v5396_v15 = vld [vmem:[%s6695_s1 + $0x18] sm:$0xff]   ;;  %v5398_v17 = vld [vmem:[%s6695_s1 + $0x60] sm:$0xff]  }
  0x76   :  { %4518 = vmatpush3.bf16.msra.mxu0 %v5388_v7  ;;  %v5393_v12 = vld [vmem:[%s6695_s1 + $0x90] sm:$0xff]   ;;  %v5397_v16 = vld [vmem:[%s6695_s1 + $0x98] sm:$0xff]   ;;  %v5399_v18 = vld [vmem:[%s6695_s1 + $0xe0] sm:$0xff]  }
  0x77   :  { %4540 = vmatpush3.bf16.msra.mxu1 %v5389_v8  ;;  %4519 = vmatprep.subr.bf16.mxu0 %v5390_v9  ;;  %v5400_v19 = vld [vmem:[%s6695_s1 + $0x20] sm:$0xff]   ;;  %v5402_v21 = vld [vmem:[%s6695_s1 + $0x68] sm:$0xff]   ;;  %v5406_v25 = vld [vmem:[%s6695_s1 + $0x70] sm:$0xff]  }
  0x78   :  { %4541 = vmatprep.subr.bf16.mxu1 %v5391_v10  ;;  %v5401_v20 = vld [vmem:[%s6695_s1 + $0xa0] sm:$0xff]   ;;  %v5403_v22 = vld [vmem:[%s6695_s1 + $0xe8] sm:$0xff]   ;;  %v5407_v26 = vld [vmem:[%s6695_s1 + $0xf0] sm:$0xff]  }
  0x79   :  { %v5404_v23 = vld [vmem:[%s6695_s1 + $0x28] sm:$0xff]   ;;  %v5408_v27 = vld [vmem:[%s6695_s1 + $0x30] sm:$0xff]   ;;  %v5410_v29 = vld [vmem:[%s6695_s1 + $0x78] sm:$0xff]  }
  0x7a   :  { %4520 = vmatpush3.bf16.msra.mxu0 %v5392_v11  ;;  %v5405_v24 = vld [vmem:[%s6695_s1 + $0xa8] sm:$0xff]   ;;  %v5409_v28 = vld [vmem:[%s6695_s1 + $0xb0] sm:$0xff]   ;;  %v5411_v30 = vld [vmem:[%s6695_s1 + $0xf8] sm:$0xff]  }
  0x7b   :  { %4542 = vmatpush3.bf16.msra.mxu1 %v5393_v12  ;;  %4521 = vmatprep.subr.bf16.mxu0 %v5394_v13  ;;  %v5412_v31 = vld [vmem:[%s6695_s1 + $0x38] sm:$0xff]   ;;  %v4205_v33 = vld [vmem:[%s6694_s0 + $0x1] ss:$2 sm:$0xff]  ;;  %v128_v38 = vld [vmem:[%s6694_s0] ss:$2 sm:$0xff] }
  0x7c   :  { %4543 = vmatprep.subr.bf16.mxu1 %v5395_v14  ;;  %v5413_v32 = vld [vmem:[%s6695_s1 + $0xb8] sm:$0xff]   ;;  %v4209_v35 = vld [vmem:[%s6694_s0 + $0x3] ss:$2 sm:$0xff]  ;;  %135 = vst [vmem:[#allocation2 + $0x8] sm:$0xff] %v4205_v33  ;;  %129 = vst [vmem:[#allocation2] sm:$0xff] %v128_v38 }
  0x7d   :  { %v4206_v34 = vld [vmem:[%s6694_s0 + $0x19] ss:$2 sm:$0xff]  ;;  %147 = vst [vmem:[#allocation2 + $0x18] sm:$0xff] %v4209_v35  ;;  %v4204_v39 = vld [vmem:[%s6694_s0 + $0x18] ss:$2 sm:$0xff]  ;;  %v5418_v49 = vld [vmem:[%s6695_s1 + $0x148] sm:$0xff]  }
  0x7e   :  { %4522 = vmatpush3.bf16.msra.mxu0 %v5396_v15  ;;  %v200_v36 = vpack.c.bf16 %v4206_v34, %v4205_v33  ;;  %v4210_v37 = vld [vmem:[%s6694_s0 + $0x1b] ss:$2 sm:$0xff]  ;;  %v199_v41 = vpack.c.bf16 %v4204_v39, %v128_v38  ;;  %v4207_v42 = vld [vmem:[%s6694_s0 + $0x2] ss:$2 sm:$0xff] }
  0x7f   :  { %4544 = vmatpush3.bf16.msra.mxu1 %v5397_v16  ;;  %4523 = vmatprep.subr.bf16.mxu0 %v5398_v17  ;;  %v202_v40 = vpack.c.bf16 %v4210_v37, %v4209_v35  ;;  %v4208_v43 = vld [vmem:[%s6694_s0 + $0x1a] ss:$2 sm:$0xff]  ;;  %141 = vst [vmem:[#allocation2 + $0x10] sm:$0xff] %v4207_v42  ;;  %v5422_v53 = vld [vmem:[%s6695_s1 + $0x150] sm:$0xff]   ;;  %v4214_v14 = vld [vmem:[%s6694_s0 + $0x1d] ss:$2 sm:$0xff] }
  0x80   :  { %4545 = vmatprep.subr.bf16.mxu1 %v5399_v18  ;;  %816 = vmatprep.mubr.bf16.mxu0 %v200_v36  ;;  %v201_v44 = vpack.c.bf16 %v4208_v43, %v4207_v42  ;;  %v5414_v45 = vld [vmem:[%s6695_s1 + $0x140] sm:$0xff]   ;;  %v5419_v50 = vld [vmem:[%s6695_s1 + $0x108] sm:$0xff]   ;;  %v5423_v54 = vld [vmem:[%s6695_s1 + $0x110] sm:$0xff]  }
  0x81   :  { %857 = vmatprep.mubr.bf16.mxu1 %v202_v40  ;;  %v5415_v46 = vld [vmem:[%s6695_s1 + $0x100] sm:$0xff]   ;;  %v5420_v51 = vld [vmem:[%s6695_s1 + $0x1c8] sm:$0xff]   ;;  %v5424_v55 = vld [vmem:[%s6695_s1 + $0x1d0] sm:$0xff]   ;;  %v5846_v40 = vmov 0.0|0.0  }
  0x82   :  { %4524 = vmatpush3.bf16.msra.mxu0 %v5400_v19  ;;  %v5416_v47 = vld [vmem:[%s6695_s1 + $0x1c0] sm:$0xff]   ;;  %v5421_v52 = vld [vmem:[%s6695_s1 + $0x188] sm:$0xff]   ;;  %v5425_v56 = vld [vmem:[%s6695_s1 + $0x190] sm:$0xff]  }
  0x83   :  { %4546 = vmatpush3.bf16.msra.mxu1 %v5401_v20  ;;  %4525 = vmatprep.subr.bf16.mxu0 %v5402_v21  ;;  %v5417_v48 = vld [vmem:[%s6695_s1 + $0x180] sm:$0xff]   ;;  %v5426_v57 = vld [vmem:[%s6695_s1 + $0x158] sm:$0xff]   ;;  %v5434_v2 = vld [vmem:[%s6695_s1 + $0x168] sm:$0xff]  }
  0x84   :  { %4547 = vmatprep.subr.bf16.mxu1 %v5403_v22  ;;  %v5427_v58 = vld [vmem:[%s6695_s1 + $0x118] sm:$0xff]   ;;  %v5430_v61 = vld [vmem:[%s6695_s1 + $0x160] sm:$0xff]   ;;  %v5435_v3 = vld [vmem:[%s6695_s1 + $0x128] sm:$0xff]  }
  0x85   :  { %v5428_v59 = vld [vmem:[%s6695_s1 + $0x1d8] sm:$0xff]   ;;  %v5431_v62 = vld [vmem:[%s6695_s1 + $0x120] sm:$0xff]   ;;  %v5436_v4 = vld [vmem:[%s6695_s1 + $0x1e8] sm:$0xff]  }
  0x86   :  { %4526 = vmatpush3.bf16.msra.mxu0 %v5404_v23  ;;  %v5429_v60 = vld [vmem:[%s6695_s1 + $0x198] sm:$0xff]   ;;  %v5432_v63 = vld [vmem:[%s6695_s1 + $0x1e0] sm:$0xff]   ;;  %v5437_v5 = vld [vmem:[%s6695_s1 + $0x1a8] sm:$0xff]  }
  0x87   :  { %4548 = vmatpush3.bf16.msra.mxu1 %v5405_v24  ;;  %4527 = vmatprep.subr.bf16.mxu0 %v5406_v25  ;;  %v5433_v1 = vld [vmem:[%s6695_s1 + $0x1a0] sm:$0xff]   ;;  %v5438_v6 = vld [vmem:[%s6695_s1 + $0x170] sm:$0xff]   ;;  %v5442_v10 = vld [vmem:[%s6695_s1 + $0x178] sm:$0xff]  }
  0x88   :  { %4549 = vmatprep.subr.bf16.mxu1 %v5407_v26  ;;  %v5439_v7 = vld [vmem:[%s6695_s1 + $0x130] sm:$0xff]   ;;  %v5443_v11 = vld [vmem:[%s6695_s1 + $0x138] sm:$0xff]   ;;  %v5446_v23 = vld [vmem:[%s6695_s1 + $0x200] sm:$0xff]  }
  0x89   :  { %v5440_v8 = vld [vmem:[%s6695_s1 + $0x1f0] sm:$0xff]   ;;  %v5444_v12 = vld [vmem:[%s6695_s1 + $0x1f8] sm:$0xff]   ;;  %v5451_v33 = vld [vmem:[%s6695_s1 + $0x228] sm:$0xff]  }
  0x8a   :  { %4528 = vmatpush3.bf16.msra.mxu0 %v5408_v27  ;;  %v5441_v9 = vld [vmem:[%s6695_s1 + $0x1b0] sm:$0xff]   ;;  %v5445_v16 = vld [vmem:[%s6695_s1 + $0x1b8] sm:$0xff]   ;;  %v5447_v27 = vld [vmem:[%s6695_s1 + $0x208] sm:$0xff]  }
  0x8b   :  { %4550 = vmatpush3.bf16.msra.mxu1 %v5409_v28  ;;  %4529 = vmatprep.subr.bf16.mxu0 %v5410_v29  ;;  %v4213_v13 = vld [vmem:[%s6694_s0 + $0x5] ss:$2 sm:$0xff]  ;;  %v4211_v17 = vld [vmem:[%s6694_s0 + $0x4] ss:$2 sm:$0xff]  ;;  %v5449_v29 = vld [vmem:[%s6695_s1 + $0x218] sm:$0xff]  }
  0x8c   :  { %4551 = vmatprep.subr.bf16.mxu1 %v5411_v30  ;;  %159 = vst [vmem:[#allocation2 + $0x28] sm:$0xff] %v4213_v13  ;;  %v204_v15 = vpack.c.bf16 %v4214_v14, %v4213_v13  ;;  %v4212_v18 = vld [vmem:[%s6694_s0 + $0x1c] ss:$2 sm:$0xff]  ;;  %153 = vst [vmem:[#allocation2 + $0x20] sm:$0xff] %v4211_v17  ;;  %v4217_v20 = vld [vmem:[%s6694_s0 + $0x7] ss:$2 sm:$0xff] }
  0x8d   :  { %v203_v19 = vpack.c.bf16 %v4212_v18, %v4211_v17  ;;  %v4218_v21 = vld [vmem:[%s6694_s0 + $0x1f] ss:$2 sm:$0xff]  ;;  %171 = vst [vmem:[#allocation2 + $0x38] sm:$0xff] %v4217_v20  ;;  %v4215_v24 = vld [vmem:[%s6694_s0 + $0x6] ss:$2 sm:$0xff] }
  0x8e   :  { %4530 = vmatpush3.bf16.msra.mxu0 %v5412_v31  ;;  %v206_v22 = vpack.c.bf16 %v4218_v21, %v4217_v20  ;;  %165 = vst [vmem:[#allocation2 + $0x30] sm:$0xff] %v4215_v24  ;;  %v4216_v25 = vld [vmem:[%s6694_s0 + $0x1e] ss:$2 sm:$0xff]  ;;  %v5448_v28 = vld [vmem:[%s6695_s1 + $0x210] sm:$0xff]  }
  0x8f   :  { %4552 = vmatpush3.bf16.msra.mxu1 %v5413_v32  ;;  %4559 = vmatprep.subr.bf16.mxu0 %v5414_v45  ;;  %v205_v26 = vpack.c.bf16 %v4216_v25, %v4215_v24  ;;  %v4219_v30 = vld [vmem:[%s6694_s0 + $0x8] ss:$2 sm:$0xff]  ;;  %v5450_v32 = vld [vmem:[%s6695_s1 + $0x220] sm:$0xff]   ;;  %v5453_v35 = vld [vmem:[%s6695_s1 + $0x238] sm:$0xff]  }
  0x90   :  { %4581 = vmatprep.subr.bf16.mxu1 %v5416_v47  ;;  %v4220_v31 = vld [vmem:[%s6694_s0 + $0x20] ss:$2 sm:$0xff]  ;;  %177 = vst [vmem:[#allocation2 + $0x40] sm:$0xff] %v4219_v30  ;;  %v5452_v34 = vld [vmem:[%s6695_s1 + $0x230] sm:$0xff]   ;;  %v1003_v47 = vld [vmem:[%s6696_s2 + $0x38] sm:$0xff] }
  0x91   :  { %817 = vmatmul.mubr.bf16.vlgmr.msra.gmra.mrb[0].mxu0 %v199_v41  ;;  %v207_v36 = vpack.c.bf16 %v4220_v31, %v4219_v30  ;;  %v996_v37 = vld [vmem:[%s6696_s2] sm:$0xff]  ;;  %v997_v38 = vld [vmem:[%s6696_s2 + $0x8] sm:$0xff]  ;;  %v998_v39 = vld [vmem:[%s6696_s2 + $0x10] sm:$0xff] }
  0x92   :  { %858 = vmatmul.mubr.bf16.vlgmr.msra.gmra.mrb[0].mxu1 %v201_v44  ;;  %4560 = vmatpush3.bf16.msra.mxu0 %v5415_v46  ;;  %v5251_v41 = vpack.c.bf16 %v997_v38, %v996_v37  ;;  %v1000_v42 = vld [vmem:[%s6696_s2 + $0x20] sm:$0xff]  ;;  %v1001_v43 = vld [vmem:[%s6696_s2 + $0x28] sm:$0xff]  ;;  %v1002_v46 = vld [vmem:[%s6696_s2 + $0x30] sm:$0xff] }
  0x93   :  { %4582 = vmatpush3.bf16.msra.mxu1 %v5417_v48  ;;  %4561 = vmatprep.subr.bf16.mxu0 %v5418_v49  ;;  %v5257_v45 = vpack.c.bf16 %v1001_v43, %v1000_v42  ;;  %v5260_v48 = vpack.c.bf16 %v1003_v47, %v1002_v46  ;;  %v1004_v49 = vld [vmem:[%s6696_s2 + $0x40] sm:$0xff]  ;;  %v5459_v46 = vld [vmem:[#allocation6 + $0xc8] sm:$0xff]  }
  0x94   :  { %4583 = vmatprep.subr.bf16.mxu1 %v5420_v51  ;;  %898 = vmatprep.mubr.bf16.mxu0 %v204_v15  ;;  %v5456_v43 = vld [vmem:[#allocation6] sm:$0xff]   ;;  %v5460_v47 = vld [vmem:[#allocation6 + $0x8] sm:$0xff]  }
  0x95   :  { %939 = vmatprep.mubr.bf16.mxu1 %v206_v22 }
  0x96   :  { %4562 = vmatpush3.bf16.msra.mxu0 %v5419_v50  ;;  %v1005_v50 = vld [vmem:[%s6696_s2 + $0x48] sm:$0xff] }
  0x97   :  { %4584 = vmatpush3.bf16.msra.mxu1 %v5421_v52  ;;  %4563 = vmatprep.subr.bf16.mxu0 %v5422_v53  ;;  %v5263_v51 = vpack.c.bf16 %v1005_v50, %v1004_v49  ;;  %v1006_v52 = vld [vmem:[%s6696_s2 + $0x50] sm:$0xff]  ;;  %v1007_v53 = vld [vmem:[%s6696_s2 + $0x58] sm:$0xff] }
  0x98   :  { %4585 = vmatprep.subr.bf16.mxu1 %v5424_v55  ;;  %v1008_v55 = vld [vmem:[%s6696_s2 + $0x60] sm:$0xff]  ;;  %v5462_v49 = vld [vmem:[#allocation6 + $0x50] sm:$0xff]  }
  0x99   :  { %v5463_v50 = vld [vmem:[#allocation6 + $0xd0] sm:$0xff]  }
  0x9a   :  { %4564 = vmatpush3.bf16.msra.mxu0 %v5423_v54  ;;  %v5266_v54 = vpack.c.bf16 %v1007_v53, %v1006_v52  ;;  %v5465_v52 = vld [vmem:[#allocation6 + $0x90] sm:$0xff]   ;;  %v5466_v53 = vld [vmem:[#allocation6 + $0x58] sm:$0xff]  }
  0x9b   :  { %4586 = vmatpush3.bf16.msra.mxu1 %v5425_v56  ;;  %4565 = vmatprep.subr.bf16.mxu0 %v5426_v57  ;;  %v1009_v56 = vld [vmem:[%s6696_s2 + $0x68] sm:$0xff] }
  0x9c   :  { %4587 = vmatprep.subr.bf16.mxu1 %v5428_v59  ;;  %v5269_v57 = vpack.c.bf16 %v1009_v56, %v1008_v55  ;;  %v1011_v59 = vld [vmem:[%s6696_s2 + $0x78] sm:$0xff] }
  0x9d   :  { %v5468_v55 = vld [vmem:[#allocation6 + $0x18] sm:$0xff]  }
  0x9e   :  { %4566 = vmatpush3.bf16.msra.mxu0 %v5427_v58  ;;  %v1010_v58 = vld [vmem:[%s6696_s2 + $0x70] sm:$0xff]  ;;  %v5469_v56 = vld [vmem:[#allocation6 + $0x98] sm:$0xff]  }
  0x9f   :  { %4588 = vmatpush3.bf16.msra.mxu1 %v5429_v60  ;;  %4567 = vmatprep.subr.bf16.mxu0 %v5430_v61  ;;  %v5272_v60 = vpack.c.bf16 %v1011_v59, %v1010_v58  ;;  %v5454_v61 = vld [vmem:[#allocation6 + $0x40] sm:$0xff]  }
  0xa0   :  { %4589 = vmatprep.subr.bf16.mxu1 %v5432_v63  ;;  %v5471_v58 = vld [vmem:[#allocation6 + $0xe0] sm:$0xff]  }
  0xa1   :  { %v5472_v59 = vld [vmem:[#allocation6 + $0x20] sm:$0xff]  }
  0xa2   :  { %4568 = vmatpush3.bf16.msra.mxu0 %v5431_v62  ;;  %v5455_v62 = vld [vmem:[#allocation6 + $0xc0] sm:$0xff]  }
  0xa3   :  { %4590 = vmatpush3.bf16.msra.mxu1 %v5433_v1  ;;  %4569 = vmatprep.subr.bf16.mxu0 %v5434_v2 }
  0xa4   :  { %4591 = vmatprep.subr.bf16.mxu1 %v5436_v4 }
  0xa6   :  { %4570 = vmatpush3.bf16.msra.mxu0 %v5435_v3 }
  0xa7   :  { %4592 = vmatpush3.bf16.msra.mxu1 %v5437_v5  ;;  %4571 = vmatprep.subr.bf16.mxu0 %v5438_v6 }
  0xa8   :  { %4593 = vmatprep.subr.bf16.mxu1 %v5440_v8 }
  0xaa   :  { %4572 = vmatpush3.bf16.msra.mxu0 %v5439_v7 }
  0xab   :  { %4594 = vmatpush3.bf16.msra.mxu1 %v5441_v9  ;;  %4573 = vmatprep.subr.bf16.mxu0 %v5442_v10 }
  0xac   :  { %4595 = vmatprep.subr.bf16.mxu1 %v5444_v12 }
  0xae   :  { %4574 = vmatpush3.bf16.msra.mxu0 %v5443_v11 }
  0xaf   :  { %4990 = vmatprep.subr.bf16.mxu0 %v5844_v0  ;;  %4596 = vmatpush3.bf16.msra.mxu1 %v5445_v16 }
  0xb0   :  { %5250 = vmatprep.subr.bf16.mxu1 %v5846_v40 }
  0xb1   :  { %899 = vmatmul.mubr.bf16.vlgmr.msra.gmra.mrb[4].mxu0 %v203_v19 }
  0xb2   :  { %4991 = vmatpush3.bf16.msra.mxu0 %v5446_v23  ;;  %5006 = vmatprep.mubr.msk.bf16.mxu0 %vm5845_vm0, %v5844_v0 }
  0xb3   :  { %4992 = vmatprep.subr.bf16.mxu0 %v5844_v0  ;;  %940 = vmatmul.mubr.bf16.vlgmr.msra.gmra.mrb[4].mxu1 %v205_v26 }
  0xb4   :  { %5042 = vmatprep.mubr.msk.f32.mxu1 %vm5845_vm0, %v5844_v0  ;;  %5252 = vmatpush3.bf16.msra.mxu1 %v5251_v41 }
  0xb5   :  { %5253 = vmatprep.subr.bf16.mxu1 %v5846_v40 }
  0xb6   :  { %4993 = vmatpush3.bf16.msra.mxu0 %v5447_v27 }
  0xb7   :  { %4994 = vmatprep.subr.bf16.mxu0 %v5844_v0 }
  0xba   :  { %4995 = vmatpush3.bf16.msra.mxu0 %v5448_v28 }
  0xbb   :  { %4996 = vmatprep.subr.bf16.mxu0 %v5844_v0 }
  0xbe   :  { %4997 = vmatpush3.bf16.msra.mxu0 %v5449_v29 }
  0xbf   :  { %4998 = vmatprep.subr.bf16.mxu0 %v5844_v0 }
  0xc2   :  { %4999 = vmatpush3.bf16.msra.mxu0 %v5450_v32 }
  0xc3   :  { %5000 = vmatprep.subr.bf16.mxu0 %v5844_v0 }
  0xc6   :  { %5001 = vmatpush3.bf16.msra.mxu0 %v5451_v33 }
  0xc7   :  { %5002 = vmatprep.subr.bf16.mxu0 %v5844_v0 }
  0xca   :  { %5003 = vmatpush3.bf16.msra.mxu0 %v5452_v34 }
  0xcb   :  { %5004 = vmatprep.subr.bf16.mxu0 %v5844_v0  ;;  %v999_v0 = vld [vmem:[%s6696_s2 + $0x18] sm:$0xff] }
  0xcc   :  { %v5254_v44 = vpack.c.bf16 %v999_v0, %v998_v39 }
  0xce   :  { %5005 = vmatpush3.bf16.msra.mxu0 %v5453_v35  ;;  %5255 = vmatpush3.bf16.msra.mxu1 %v5254_v44  ;;  %v5457_v44 = vld [vmem:[#allocation6 + $0x80] sm:$0xff]  }
  0xcf   :  { %5256 = vmatprep.subr.bf16.mxu1 %v5846_v40  ;;  %4629 = vmatprep.subr.bf16.mxu0 %v5454_v61  ;;  %v5474_v61 = vld [vmem:[#allocation6 + $0x68] sm:$0xff]  }
  0xd1   :  { %5007 = vmatmul.mubr.bf16.vlgmr.msra.gmra.mrb[8].mxu0 %v207_v36 }
  0xd2   :  { %5258 = vmatpush3.bf16.msra.mxu1 %v5257_v45  ;;  %4630 = vmatpush3.bf16.msra.mxu0 %v5456_v43  ;;  %v5458_v45 = vld [vmem:[#allocation6 + $0x48] sm:$0xff]  }
  0xd3   :  { %5259 = vmatprep.subr.bf16.mxu1 %v5846_v40  ;;  %4631 = vmatprep.subr.bf16.mxu0 %v5458_v45 }
  0xd6   :  { %5261 = vmatpush3.bf16.msra.mxu1 %v5260_v48  ;;  %v5461_v48 = vld [vmem:[#allocation6 + $0x88] sm:$0xff]   ;;  %4632 = vmatpush3.bf16.msra.mxu0 %v5460_v47 }
  0xd7   :  { %5262 = vmatprep.subr.bf16.mxu1 %v5846_v40  ;;  %4633 = vmatprep.subr.bf16.mxu0 %v5462_v49  ;;  %v2105_v49 = vld [vmem:[#allocation4 + $0xd] ss:$2 sm:$0x3] }
  0xda   :  { %5264 = vmatpush3.bf16.msra.mxu1 %v5263_v51  ;;  %v5464_v51 = vld [vmem:[#allocation6 + $0x10] sm:$0xff]  }
  0xdb   :  { %5265 = vmatprep.subr.bf16.mxu1 %v5846_v40  ;;  %4634 = vmatpush3.bf16.msra.mxu0 %v5464_v51 }
  0xdc   :  { %4635 = vmatprep.subr.bf16.mxu0 %v5466_v53 }
  0xde   :  { %5267 = vmatpush3.bf16.msra.mxu1 %v5266_v54  ;;  %v5467_v54 = vld [vmem:[#allocation6 + $0xd8] sm:$0xff]  }
  0xdf   :  { %5268 = vmatprep.subr.bf16.mxu1 %v5846_v40  ;;  %4636 = vmatpush3.bf16.msra.mxu0 %v5468_v55 }
  0xe2   :  { %5270 = vmatpush3.bf16.msra.mxu1 %v5269_v57  ;;  %v5470_v57 = vld [vmem:[#allocation6 + $0x60] sm:$0xff]  }
  0xe3   :  { %5271 = vmatprep.subr.bf16.mxu1 %v5846_v40  ;;  %4637 = vmatprep.subr.bf16.mxu0 %v5470_v57  ;;  %v2102_v57 = vld [vmem:[#allocation4 + $0x1] ss:$2 sm:$0x3] }
  0xe4   :  { %4638 = vmatpush3.bf16.msra.mxu0 %v5472_v59 }
  0xe5   :  { %4639 = vmatprep.subr.bf16.mxu0 %v5474_v61 }
  0xe6   :  { %5273 = vmatpush3.bf16.msra.mxu1 %v5272_v60  ;;  %v5473_v60 = vld [vmem:[#allocation6 + $0xa0] sm:$0xff]  }
  0xe7   :  { %4651 = vmatprep.subr.bf16.mxu1 %v5455_v62  ;;  %v5475_v62 = vld [vmem:[#allocation6 + $0xe8] sm:$0xff]  }
 0x164   :  { %v4531_v63 = vpop.f32.mrb[0].mxu0 }
 0x165   :  { %v4553_v1 = vpop.f32.mrb[0].mxu1  ;;  %v4532_v2 = vpop.f32.mrb[1].mxu0 }
 0x166   :  { %v4533_v3 = vadd.f32 %v4532_v2, %v4531_v63  ;;  %v4554_v4 = vpop.f32.mrb[1].mxu1  ;;  %v4534_v5 = vpop.f32.mrb[2].mxu0  ;;  %v5476_v63 = vld [vmem:[#allocation6 + $0x28] sm:$0xff]   ;;  %v5478_v2 = vld [vmem:[#allocation6 + $0x70] sm:$0xff]  }
 0x167   :  { %v4555_v6 = vadd.f32 %v4554_v4, %v4553_v1  ;;  %v4556_v7 = vpop.f32.mrb[2].mxu1  ;;  %v4535_v8 = vpop.f32.mrb[3].mxu0  ;;  %v5477_v1 = vld [vmem:[#allocation6 + $0xa8] sm:$0xff]   ;;  %4640 = vmatpush3.bf16.msra.mxu0 %v5476_v63  ;;  %v5480_v4 = vld [vmem:[#allocation6 + $0x30] sm:$0xff]  }
 0x168   :  { %v4536_v9 = vadd.f32 %v4535_v8, %v4534_v5  ;;  %v4557_v10 = vpop.f32.mrb[3].mxu1  ;;  %v5481_v5 = vld [vmem:[#allocation6 + $0xb0] sm:$0xff]   ;;  %4641 = vmatprep.subr.bf16.mxu0 %v5478_v2  ;;  %v5484_v8 = vld [vmem:[#allocation6 + $0x38] sm:$0xff]  }
 0x169   :  { %v860_v11 = vadd.f32 %v4555_v6, %v4533_v3  ;;  %v4558_v12 = vadd.f32 %v4557_v10, %v4556_v7  ;;  %v5479_v3 = vld [vmem:[#allocation6 + $0xf0] sm:$0xff]   ;;  %v5482_v6 = vld [vmem:[#allocation6 + $0x78] sm:$0xff]   ;;  %v5486_v10 = vld [vmem:[#allocation6 + $0x140] sm:$0xff]  }
 0x16a   :  { %v5483_v7 = vld [vmem:[#allocation6 + $0xf8] sm:$0xff]  }
 0x16b   :  { %v863_v13 = vadd.f32 %v4558_v12, %v4536_v9  ;;  %4642 = vmatpush3.bf16.msra.mxu0 %v5480_v4  ;;  %v5485_v9 = vld [vmem:[#allocation6 + $0xb8] sm:$0xff]   ;;  %v1082_v12 = vlaneseq }
 0x16c   :  { %4643 = vmatprep.subr.bf16.mxu0 %v5482_v6  ;;  %v2165_v4 = vld [vmem:[#allocation4 + $0x8] ss:$2 sm:$0x3] }
 0x16f   :  { %4644 = vmatpush3.bf16.msra.mxu0 %v5484_v8 }
 0x170   :  { %4673 = vmatprep.subr.bf16.mxu0 %v5486_v10  ;;  %v5490_v10 = vld [vmem:[#allocation6 + $0x148] sm:$0xff]  }
 0x184   :  { %v4575_v14 = vpop.f32.mrb[4].mxu0 }
 0x185   :  { %v4576_v15 = vpop.f32.mrb[5].mxu0 }
 0x186   :  { %v4577_v16 = vadd.f32 %v4576_v15, %v4575_v14  ;;  %v4578_v17 = vpop.f32.mrb[6].mxu0  ;;  %v4597_v18 = vpop.f32.mrb[4].mxu1 }
 0x187   :  { %v4579_v19 = vpop.f32.mrb[7].mxu0  ;;  %v4598_v22 = vpop.f32.mrb[5].mxu1 }
 0x188   :  { %v901_v20 = vadd.f32 %v4577_v16, %v860_v11  ;;  %v4580_v21 = vadd.f32 %v4579_v19, %v4578_v17  ;;  %v4599_v23 = vadd.f32 %v4598_v22, %v4597_v18  ;;  %v4600_v24 = vpop.f32.mrb[6].mxu1  ;;  %v5487_v11 = vld [vmem:[#allocation6 + $0x1c0] sm:$0xff]  }
 0x189   :  { %v4601_v26 = vpop.f32.mrb[7].mxu1  ;;  %v4293_v18 = vld [vmem:[%s6697_s3] ss:$0 sm:$0xff] }
 0x18a   :  { %v904_v25 = vadd.f32 %v4580_v21, %v863_v13  ;;  %v4602_v27 = vadd.f32 %v4601_v26, %v4600_v24  ;;  %v942_v28 = vadd.f32 %v4599_v23, %v901_v20  ;;  %v1083_v13 = vshrl.u32 %v1082_v12, 7 }
 0x18c   :  { %v945_v29 = vadd.f32 %v4602_v27, %v904_v25  ;;  %v6370_v14 = vsub.s32 0, %v1083_v13  ;;  %v5491_v13 = vld [vmem:[#allocation6 + $0x1c8] sm:$0xff]  }
 0x1a4   :  { %v982_v30 = vpop.f32.mrb[8].mxu0 }
 0x1a5   :  { %v6364_v31 = vadd.f32 %v982_v30, %v942_v28  ;;  %v5008_v32 = vpop.f32.mrb[9].mxu0 }
 0x1a6   :  { %v985_v33 = vpop.f32.mrb[10].mxu0 }
 0x1a7   :  { %v6366_v34 = vadd.f32 %v985_v33, %v945_v29  ;;  %v5009_v35 = vpop.f32.mrb[11].mxu0 }
 0x1a9   :  { %v989_v36 = vadd.f32 %v6366_v34, %v6364_v31 }
 0x1ab   :  { %v990_v37 = vrot.slane %v989_v36, 4 }
 0x1ad   :  { %v991_v38 = vadd.f32 %v990_v37, %v989_v36 }
 0x1af   :  { %v992_v39 = vrot.slane %v991_v38, 2 }
 0x1b1   :  { %v993_v41 = vadd.f32 %v992_v39, %v991_v38 }
 0x1b3   :  { %v994_v0 = vrot.slane %v993_v41, 1 }
 0x1b5   :  { %v995_v42 = vadd.f32 %v994_v0, %v993_v41 }
 0x1b7   :  { %5043 = vmatmul.mubr.f32.vlgmr.msra.gmra.mrb[8].mxu1 %v995_v42 }
 0x1b8   :  { %4652 = vmatpush3.bf16.msra.mxu1 %v5457_v44 }
 0x1b9   :  { %4653 = vmatprep.subr.bf16.mxu1 %v5459_v46 }
 0x1bc   :  { %4654 = vmatpush3.bf16.msra.mxu1 %v5461_v48 }
 0x1bd   :  { %4655 = vmatprep.subr.bf16.mxu1 %v5463_v50 }
 0x1c0   :  { %4656 = vmatpush3.bf16.msra.mxu1 %v5465_v52 }
 0x1c1   :  { %4657 = vmatprep.subr.bf16.mxu1 %v5467_v54  ;;  %v2096_v54 = vld [vmem:[#allocation4 + $0xc] ss:$2 sm:$0x3] }
 0x1c4   :  { %4658 = vmatpush3.bf16.msra.mxu1 %v5469_v56  ;;  %v2107_v56 = vrot.slane %v2105_v49, 6  ;;  %v5520_v49 = vld [vmem:[#allocation6 + $0x210] sm:$0xff]  }
 0x1c5   :  { %4659 = vmatprep.subr.bf16.mxu1 %v5471_v58  ;;  %v2098_v58 = vrot.slane %v2096_v54, 6  ;;  %v5525_v54 = vld [vmem:[#allocation6 + $0x238] sm:$0xff]  }
 0x1c8   :  { %4660 = vmatpush3.bf16.msra.mxu1 %v5473_v60  ;;  %v2093_v60 = vld [vmem:[#allocation4] ss:$2 sm:$0x3] }
 0x1c9   :  { %4661 = vmatprep.subr.bf16.mxu1 %v5475_v62  ;;  %v5488_v62 = vld [vmem:[#allocation6 + $0x100] sm:$0xff]  }
 0x1cc   :  { %4662 = vmatpush3.bf16.msra.mxu1 %v5477_v1 }
 0x1cd   :  { %4663 = vmatprep.subr.bf16.mxu1 %v5479_v3 }
 0x1d0   :  { %4664 = vmatpush3.bf16.msra.mxu1 %v5481_v5 }
 0x1d1   :  { %4665 = vmatprep.subr.bf16.mxu1 %v5483_v7  ;;  %v5489_v7 = vld [vmem:[#allocation6 + $0x180] sm:$0xff]  }
 0x1d4   :  { %4666 = vmatpush3.bf16.msra.mxu1 %v5485_v9 }
 0x1d5   :  { %4695 = vmatprep.subr.bf16.mxu1 %v5487_v11 }
 0x28a   :  { %v1078_v15 = vpop.f32.mrb[8].mxu1 }
 0x28b   :  { %v1085_v16 = vrot.slane %v1078_v15, %v6370_v14  ;;  %v5044_v17 = vpop.f32.mrb[9].mxu1 }
 0x28c   :  { %v5493_v17 = vld [vmem:[#allocation6 + $0x188] sm:$0xff]  }
 0x28d   :  { %v1086_v19 = vsub.f32 %v6364_v31, %v1085_v16  ;;  %v1087_v20 = vsub.f32 %v6366_v34, %v1085_v16  ;;  %v5492_v16 = vld [vmem:[#allocation6 + $0x108] sm:$0xff]  }
 0x28f   :  { %v1095_v21 = vadd.f32 %v4293_v18, %v1086_v19  ;;  %v1096_v22 = vadd.f32 %v4293_v18, %v1087_v20  ;;  %v5494_v18 = vld [vmem:[#allocation6 + $0x150] sm:$0xff]  }
 0x290   :  { %v5495_v19 = vld [vmem:[#allocation6 + $0x1d0] sm:$0xff]  }
 0x291   :  { %v1097_v23 = vmul.f32 0.2, %v1095_v21  ;;  %v1098_v24 = vmul.f32 0.2, %v1096_v22  ;;  %v5496_v20 = vld [vmem:[#allocation6 + $0x110] sm:$0xff]  }
 0x293   :  { %v1099_v25 = vmax.f32 %v1095_v21, %v1097_v23  ;;  %v1100_v26 = vmax.f32 %v1096_v22, %v1098_v24  ;;  %v5497_v21 = vld [vmem:[#allocation6 + $0x190] sm:$0xff]   ;;  %v5498_v22 = vld [vmem:[#allocation6 + $0x158] sm:$0xff]  }
 0x294   :  { %v5499_v23 = vld [vmem:[#allocation6 + $0x1d8] sm:$0xff]  }
 0x295   :  { %1105 = vst [vmem:[#allocation3 + $0x4] sm:$0xff] %v1099_v25  ;;  %1106 = vst [vmem:[#allocation3 + $0x14] sm:$0xff] %v1100_v26  ;;  %v5500_v24 = vld [vmem:[#allocation6 + $0x118] sm:$0xff]   ;;  %v5502_v26 = vld [vmem:[#allocation6 + $0x160] sm:$0xff]  }
 0x296   :  { %v5501_v25 = vld [vmem:[#allocation6 + $0x198] sm:$0xff]  }
 0x29c   :  { %v1110_v27 = vld [vmem:[#allocation3 + $0x10] ss:$2 sm:$0xf]  ;;  %v1119_v28 = vld [vmem:[#allocation3 + $0x11] ss:$2 sm:$0xf] }
 0x29d   :  { %v1112_v29 = vrot.slane %v1110_v27, 4  ;;  %v1121_v30 = vrot.slane %v1119_v28, 4  ;;  %v1125_v32 = vld [vmem:[#allocation3 + $0x2] ss:$2 sm:$0xf]  ;;  %v5503_v27 = vld [vmem:[#allocation6 + $0x1e0] sm:$0xff]  }
 0x29e   :  { %v1128_v33 = vld [vmem:[#allocation3 + $0x12] ss:$2 sm:$0xf]  ;;  %v1137_v35 = vld [vmem:[#allocation3 + $0x13] ss:$2 sm:$0xf] }
 0x29f   :  { %1126 = vst [vmem:[#allocation2 + $0x10] sm:$0xf] %v1125_v32  ;;  %v1130_v36 = vrot.slane %v1128_v33, 4  ;;  %v1139_v31 = vrot.slane %v1137_v35, 4  ;;  %1114 = vst [vmem:[#allocation2] sm:$0xf0] %v1112_v29 }
 0x2a0   :  { %v1143_v37 = vld [vmem:[#allocation3 + $0x4] ss:$2 sm:$0xf]  ;;  %1123 = vst [vmem:[#allocation2 + $0x8] sm:$0xf0] %v1121_v30  ;;  %v5504_v28 = vld [vmem:[#allocation6 + $0x120] sm:$0xff]  }
 0x2a1   :  { %v1146_v34 = vld [vmem:[#allocation3 + $0x14] ss:$2 sm:$0xf]  ;;  %v1155_v38 = vld [vmem:[#allocation3 + $0x15] ss:$2 sm:$0xf] }
 0x2a2   :  { %1144 = vst [vmem:[#allocation2 + $0x20] sm:$0xf] %v1143_v37  ;;  %v1148_v39 = vrot.slane %v1146_v34, 4  ;;  %v1157_v41 = vrot.slane %v1155_v38, 4  ;;  %1132 = vst [vmem:[#allocation2 + $0x10] sm:$0xf0] %v1130_v36 }
 0x2a3   :  { %v1161_v0 = vld [vmem:[#allocation3 + $0x6] ss:$2 sm:$0xf]  ;;  %1141 = vst [vmem:[#allocation2 + $0x18] sm:$0xf0] %v1139_v31  ;;  %v5505_v29 = vld [vmem:[#allocation6 + $0x1a0] sm:$0xff]  }
 0x2a4   :  { %v1164_v42 = vld [vmem:[#allocation3 + $0x16] ss:$2 sm:$0xf]  ;;  %v1173_v43 = vld [vmem:[#allocation3 + $0x17] ss:$2 sm:$0xf] }
 0x2a5   :  { %1162 = vst [vmem:[#allocation2 + $0x30] sm:$0xf] %v1161_v0  ;;  %v1166_v44 = vrot.slane %v1164_v42, 4  ;;  %v1175_v45 = vrot.slane %v1173_v43, 4  ;;  %1150 = vst [vmem:[#allocation2 + $0x20] sm:$0xf0] %v1148_v39 }
 0x2a6   :  { %v1182_v46 = vld [vmem:[#allocation3 + $0x18] ss:$2 sm:$0xf]  ;;  %1159 = vst [vmem:[#allocation2 + $0x28] sm:$0xf0] %v1157_v41  ;;  %v5510_v36 = vld [vmem:[#allocation6 + $0x170] sm:$0xff]  }
 0x2a7   :  { %v1184_v47 = vrot.slane %v1182_v46, 4  ;;  %v1116_v48 = vld [vmem:[#allocation3 + $0x1] ss:$2 sm:$0xf]  ;;  %1168 = vst [vmem:[#allocation2 + $0x30] sm:$0xf0] %v1166_v44 }
 0x2a8   :  { %1177 = vst [vmem:[#allocation2 + $0x38] sm:$0xf0] %v1175_v45  ;;  %1117 = vst [vmem:[#allocation2 + $0x8] sm:$0xf] %v1116_v48  ;;  %v5506_v30 = vld [vmem:[#allocation6 + $0x168] sm:$0xff]   ;;  %v5511_v31 = vld [vmem:[#allocation6 + $0x1f0] sm:$0xff]  }
 0x2a9   :  { %v1134_v50 = vld [vmem:[#allocation3 + $0x3] ss:$2 sm:$0xf]  ;;  %v1107_v51 = vld [vmem:[#allocation3] ss:$2 sm:$0xf] }
 0x2aa   :  { %1186 = vst [vmem:[#allocation2 + $0x40] sm:$0xf0] %v1184_v47  ;;  %1135 = vst [vmem:[#allocation2 + $0x18] sm:$0xf] %v1134_v50  ;;  %v1189_v59 = vld [vmem:[#allocation2 + $0x10] sm:$0xff]  ;;  %v5507_v32 = vld [vmem:[#allocation6 + $0x1e8] sm:$0xff]  }
 0x2ab   :  { %1108 = vst [vmem:[#allocation2] sm:$0xf] %v1107_v51  ;;  %v1152_v52 = vld [vmem:[#allocation3 + $0x5] ss:$2 sm:$0xf]  ;;  %v1198_v3 = vpack.c.bf16 %v1189_v59, %v1189_v59  ;;  %v5508_v33 = vld [vmem:[#allocation6 + $0x128] sm:$0xff]  }
 0x2ac   :  { %v1170_v53 = vld [vmem:[#allocation3 + $0x7] ss:$2 sm:$0xf]  ;;  %1153 = vst [vmem:[#allocation2 + $0x28] sm:$0xf] %v1152_v52  ;;  %v5509_v35 = vld [vmem:[#allocation6 + $0x1a8] sm:$0xff]  }
 0x2ad   :  { %1171 = vst [vmem:[#allocation2 + $0x38] sm:$0xf] %v1170_v53  ;;  %v1179_v55 = vld [vmem:[#allocation3 + $0x8] ss:$2 sm:$0xf]  ;;  %v5512_v37 = vld [vmem:[#allocation6 + $0x130] sm:$0xff]  }
 0x2ae   :  { %1180 = vst [vmem:[#allocation2 + $0x40] sm:$0xf] %v1179_v55  ;;  %v5513_v34 = vld [vmem:[#allocation6 + $0x1b0] sm:$0xff]   ;;  %v5514_v38 = vld [vmem:[#allocation6 + $0x178] sm:$0xff]   ;;  %v1191_v42 = vld [vmem:[#allocation2 + $0x20] sm:$0xff] }
 0x2af   :  { %v1188_v61 = vld [vmem:[#allocation2 + $0x8] sm:$0xff]  ;;  %v5515_v39 = vld [vmem:[#allocation6 + $0x1f8] sm:$0xff]   ;;  %v1193_v43 = vld [vmem:[#allocation2 + $0x30] sm:$0xff]  ;;  %v1200_v45 = vpack.c.bf16 %v1191_v42, %v1191_v42 }
 0x2b0   :  { %v1197_v63 = vpack.c.bf16 %v1188_v61, %v1188_v61  ;;  %2103 = vst [vmem:[#allocation2 + $0x8] sm:$0x3] %v2102_v57  ;;  %2109 = vst [vmem:[#allocation2 + $0x8] sm:$0xc] %v2107_v56  ;;  %v5516_v41 = vld [vmem:[#allocation6 + $0x138] sm:$0xff]   ;;  %v5518_v44 = vld [vmem:[#allocation6 + $0x200] sm:$0xff]   ;;  %v1202_v47 = vpack.c.bf16 %v1193_v43, %v1193_v43 }
 0x2b1   :  { %v1190_v1 = vld [vmem:[#allocation2 + $0x18] sm:$0xff]  ;;  %v6380_v46 = vld [vmem:[#allocation4] sm:$0xff]  ;;  %v5519_v48 = vld [vmem:[#allocation6 + $0x208] sm:$0xff]  }
 0x2b2   :  { %v1187_v2 = vld [vmem:[#allocation2] sm:$0xff]  ;;  %v1199_v5 = vpack.c.bf16 %v1190_v1, %v1190_v1  ;;  %1813 = vmatprep.mubr.bf16.mxu0 %v1197_v63  ;;  %v5517_v0 = vld [vmem:[#allocation6 + $0x1b8] sm:$0xff]   ;;  %v5523_v52 = vld [vmem:[#allocation6 + $0x228] sm:$0xff]  }
 0x2b3   :  { %v1196_v6 = vpack.c.bf16 %v1187_v2, %v1187_v2  ;;  %2094 = vst [vmem:[#allocation2] sm:$0x3] %v2093_v60  ;;  %2100 = vst [vmem:[#allocation2] sm:$0xc] %v2098_v58  ;;  %v1192_v8 = vld [vmem:[#allocation2 + $0x28] sm:$0xff]  ;;  %v5521_v50 = vld [vmem:[#allocation6 + $0x218] sm:$0xff]  }
 0x2b4   :  { %v1194_v9 = vld [vmem:[#allocation2 + $0x38] sm:$0xff]  ;;  %1853 = vmatprep.mubr.bf16.mxu1 %v1199_v5  ;;  %v1201_v12 = vpack.c.bf16 %v1192_v8, %v1192_v8  ;;  %v5522_v51 = vld [vmem:[#allocation6 + $0x220] sm:$0xff]   ;;  %v5524_v53 = vld [vmem:[#allocation6 + $0x230] sm:$0xff]  }
 0x2b5   :  { %v6378_v11 = vld [vmem:[#allocation2 + $0x40] sm:$0xff]  ;;  %1814 = vmatmul.mubr.bf16.vlgmr.msra.gmra.mrb[12].mxu0 %v1196_v6  ;;  %1854 = vmatmul.mubr.bf16.vlgmr.msra.gmra.mrb[12].mxu1 %v1198_v3  ;;  %v1203_v15 = vpack.c.bf16 %v1194_v9, %v1194_v9  ;;  %v1988_v57 = vld [vmem:[%s6699_s5 + $0x8] sm:$0xff]  ;;  %v1989_v58 = vld [vmem:[%s6699_s5 + $0x10] sm:$0xff] }
 0x2b6   :  { %2166 = vst [vmem:[#allocation2 + $0x40] sm:$0x3] %v2165_v4  ;;  %4674 = vmatpush3.bf16.msra.mxu0 %v5488_v62  ;;  %4696 = vmatpush3.bf16.msra.mxu1 %v5489_v7  ;;  %v1204_v55 = vpack.c.bf16 %v6378_v11, %v6378_v11  ;;  %v1987_v56 = vld [vmem:[%s6699_s5] sm:$0xff]  ;;  %v1990_v60 = vld [vmem:[%s6699_s5 + $0x18] sm:$0xff]  ;;  %v1992_v63 = vld [vmem:[%s6699_s5 + $0x28] sm:$0xff] }
 0x2b7   :  { %1893 = vmatprep.mubr.bf16.mxu0 %v1201_v12  ;;  %1933 = vmatprep.mubr.bf16.mxu1 %v1203_v15  ;;  %v5275_v59 = vpack.c.bf16 %v1988_v57, %v1987_v56  ;;  %v5278_v61 = vpack.c.bf16 %v1990_v60, %v1989_v58  ;;  %v1991_v62 = vld [vmem:[%s6699_s5 + $0x20] sm:$0xff]  ;;  %v1993_v2 = vld [vmem:[%s6699_s5 + $0x30] sm:$0xff]  ;;  %v1994_v3 = vld [vmem:[%s6699_s5 + $0x38] sm:$0xff] }
 0x2b8   :  { %4675 = vmatprep.subr.bf16.mxu0 %v5490_v10  ;;  %4697 = vmatprep.subr.bf16.mxu1 %v5491_v13  ;;  %v5281_v1 = vpack.c.bf16 %v1992_v63, %v1991_v62  ;;  %v5284_v4 = vpack.c.bf16 %v1994_v3, %v1993_v2  ;;  %v1995_v5 = vld [vmem:[%s6699_s5 + $0x40] sm:$0xff]  ;;  %v1996_v6 = vld [vmem:[%s6699_s5 + $0x48] sm:$0xff]  ;;  %v1997_v8 = vld [vmem:[%s6699_s5 + $0x50] sm:$0xff] }
 0x2b9   :  { %v5287_v7 = vpack.c.bf16 %v1996_v6, %v1995_v5  ;;  %v1998_v9 = vld [vmem:[%s6699_s5 + $0x58] sm:$0xff]  ;;  %v1999_v11 = vld [vmem:[%s6699_s5 + $0x60] sm:$0xff]  ;;  %v2000_v12 = vld [vmem:[%s6699_s5 + $0x68] sm:$0xff] }
 0x2ba   :  { %4676 = vmatpush3.bf16.msra.mxu0 %v5492_v16  ;;  %4698 = vmatpush3.bf16.msra.mxu1 %v5493_v17  ;;  %v5290_v10 = vpack.c.bf16 %v1998_v9, %v1997_v8  ;;  %v5293_v13 = vpack.c.bf16 %v2000_v12, %v1999_v11  ;;  %v2001_v15 = vld [vmem:[%s6699_s5 + $0x70] sm:$0xff]  ;;  %v2002_v16 = vld [vmem:[%s6699_s5 + $0x78] sm:$0xff]  ;;  %v5543_v9 = vld [vmem:[#allocation9 + $0x80] sm:$0xff]  }
 0x2bb   :  { %4677 = vmatprep.subr.bf16.mxu0 %v5494_v18  ;;  %4699 = vmatprep.subr.bf16.mxu1 %v5495_v19  ;;  %v5296_v17 = vpack.c.bf16 %v2002_v16, %v2001_v15  ;;  %v5526_v18 = vld [vmem:[#allocation9 + $0x40] sm:$0xff]   ;;  %v5546_v15 = vld [vmem:[#allocation9 + $0xc8] sm:$0xff]  }
 0x2bc   :  { %v5527_v19 = vld [vmem:[#allocation9] sm:$0xff]   ;;  %v5547_v16 = vld [vmem:[#allocation9 + $0x88] sm:$0xff]  }
 0x2bd   :  { %v2173_v11 = vld [vmem:[#allocation2] sm:$0xf] }
 0x2be   :  { %4678 = vmatpush3.bf16.msra.mxu0 %v5496_v20  ;;  %4700 = vmatpush3.bf16.msra.mxu1 %v5497_v21  ;;  %v5528_v20 = vld [vmem:[#allocation9 + $0x48] sm:$0xff]   ;;  %v5545_v12 = vld [vmem:[#allocation9 + $0x100] sm:$0xff]  }
 0x2bf   :  { %4679 = vmatprep.subr.bf16.mxu0 %v5498_v22  ;;  %4701 = vmatprep.subr.bf16.mxu1 %v5499_v23  ;;  %v5529_v21 = vld [vmem:[#allocation9 + $0x8] sm:$0xff]   ;;  %v5530_v22 = vld [vmem:[#allocation9 + $0x50] sm:$0xff]   ;;  %v5542_v23 = vld [vmem:[#allocation9 + $0xc0] sm:$0xff]  }
 0x2c2   :  { %4680 = vmatpush3.bf16.msra.mxu0 %v5500_v24  ;;  %4702 = vmatpush3.bf16.msra.mxu1 %v5501_v25  ;;  %v5531_v24 = vld [vmem:[#allocation9 + $0x10] sm:$0xff]   ;;  %v5532_v25 = vld [vmem:[#allocation9 + $0x58] sm:$0xff]  }
 0x2c3   :  { %4681 = vmatprep.subr.bf16.mxu0 %v5502_v26  ;;  %4703 = vmatprep.subr.bf16.mxu1 %v5503_v27  ;;  %v5533_v26 = vld [vmem:[#allocation9 + $0x18] sm:$0xff]   ;;  %v5534_v27 = vld [vmem:[#allocation9 + $0x60] sm:$0xff]  }
 0x2c6   :  { %4682 = vmatpush3.bf16.msra.mxu0 %v5504_v28  ;;  %4704 = vmatpush3.bf16.msra.mxu1 %v5505_v29  ;;  %v5535_v28 = vld [vmem:[#allocation9 + $0x20] sm:$0xff]   ;;  %v5536_v29 = vld [vmem:[#allocation9 + $0x68] sm:$0xff]  }
 0x2c7   :  { %4683 = vmatprep.subr.bf16.mxu0 %v5506_v30  ;;  %4705 = vmatprep.subr.bf16.mxu1 %v5507_v32  ;;  %v5537_v30 = vld [vmem:[#allocation9 + $0x28] sm:$0xff]   ;;  %v5538_v32 = vld [vmem:[#allocation9 + $0x70] sm:$0xff]  }
 0x2ca   :  { %4684 = vmatpush3.bf16.msra.mxu0 %v5508_v33  ;;  %4706 = vmatpush3.bf16.msra.mxu1 %v5509_v35  ;;  %v5539_v33 = vld [vmem:[#allocation9 + $0x30] sm:$0xff]   ;;  %v5540_v35 = vld [vmem:[#allocation9 + $0x78] sm:$0xff]  }
 0x2cb   :  { %4685 = vmatprep.subr.bf16.mxu0 %v5510_v36  ;;  %4707 = vmatprep.subr.bf16.mxu1 %v5511_v31  ;;  %v5541_v36 = vld [vmem:[#allocation9 + $0x38] sm:$0xff]  }
 0x2ce   :  { %4686 = vmatpush3.bf16.msra.mxu0 %v5512_v37  ;;  %4708 = vmatpush3.bf16.msra.mxu1 %v5513_v34 }
 0x2cf   :  { %4687 = vmatprep.subr.bf16.mxu0 %v5514_v38  ;;  %4709 = vmatprep.subr.bf16.mxu1 %v5515_v39 }
 0x2d2   :  { %4688 = vmatpush3.bf16.msra.mxu0 %v5516_v41  ;;  %4710 = vmatpush3.bf16.msra.mxu1 %v5517_v0 }
 0x2d3   :  { %5045 = vmatprep.subr.bf16.mxu0 %v6380_v46  ;;  %5274 = vmatprep.subr.bf16.mxu1 %v5846_v40 }
 0x2d5   :  { %1894 = vmatmul.mubr.bf16.vlgmr.msra.gmra.mrb[16].mxu0 %v1200_v45  ;;  %1934 = vmatmul.mubr.bf16.vlgmr.msra.gmra.mrb[16].mxu1 %v1202_v47 }
 0x2d6   :  { %5046 = vmatpush3.bf16.msra.mxu0 %v5518_v44  ;;  %5061 = vmatprep.mubr.msk.bf16.mxu0 %vm5845_vm0, %v6380_v46 }
 0x2d7   :  { %5047 = vmatprep.subr.bf16.mxu0 %v6380_v46  ;;  %5097 = vmatprep.mubr.msk.f32.mxu1 %vm5845_vm0, %v6380_v46 }
 0x2d8   :  { %5276 = vmatpush3.bf16.msra.mxu1 %v5275_v59 }
 0x2d9   :  { %5277 = vmatprep.subr.bf16.mxu1 %v5846_v40 }
 0x2da   :  { %5048 = vmatpush3.bf16.msra.mxu0 %v5519_v48 }
 0x2db   :  { %5049 = vmatprep.subr.bf16.mxu0 %v6380_v46 }
 0x2dc   :  { %5279 = vmatpush3.bf16.msra.mxu1 %v5278_v61 }
 0x2dd   :  { %5280 = vmatprep.subr.bf16.mxu1 %v5846_v40 }
 0x2de   :  { %5050 = vmatpush3.bf16.msra.mxu0 %v5520_v49 }
 0x2df   :  { %5051 = vmatprep.subr.bf16.mxu0 %v6380_v46 }
 0x2e0   :  { %5282 = vmatpush3.bf16.msra.mxu1 %v5281_v1 }
 0x2e1   :  { %5283 = vmatprep.subr.bf16.mxu1 %v5846_v40 }
 0x2e2   :  { %5052 = vmatpush3.bf16.msra.mxu0 %v5521_v50 }
 0x2e3   :  { %5053 = vmatprep.subr.bf16.mxu0 %v6380_v46 }
 0x2e4   :  { %5285 = vmatpush3.bf16.msra.mxu1 %v5284_v4 }
 0x2e5   :  { %5286 = vmatprep.subr.bf16.mxu1 %v5846_v40 }
 0x2e6   :  { %5054 = vmatpush3.bf16.msra.mxu0 %v5522_v51 }
 0x2e7   :  { %5055 = vmatprep.subr.bf16.mxu0 %v6380_v46 }
 0x2e8   :  { %5288 = vmatpush3.bf16.msra.mxu1 %v5287_v7  ;;  %v2174_v7 = vld [vmem:[#allocation2 + $0x8] sm:$0xf] }
 0x2e9   :  { %5289 = vmatprep.subr.bf16.mxu1 %v5846_v40  ;;  %v2183_v8 = vpack.c.bf16 %v2174_v7, %v2174_v7 }
 0x2ea   :  { %5056 = vmatpush3.bf16.msra.mxu0 %v5523_v52 }
 0x2eb   :  { %5057 = vmatprep.subr.bf16.mxu0 %v6380_v46 }
 0x2ec   :  { %5291 = vmatpush3.bf16.msra.mxu1 %v5290_v10  ;;  %v5544_v10 = vld [vmem:[#allocation9 + $0x140] sm:$0xff]  }
 0x2ed   :  { %5292 = vmatprep.subr.bf16.mxu1 %v5846_v40 }
 0x2ee   :  { %5058 = vmatpush3.bf16.msra.mxu0 %v5524_v53 }
 0x2ef   :  { %5059 = vmatprep.subr.bf16.mxu0 %v6380_v46 }
 0x2f0   :  { %5294 = vmatpush3.bf16.msra.mxu1 %v5293_v13  ;;  %v2182_v13 = vpack.c.bf16 %v2173_v11, %v2173_v11 }
 0x2f1   :  { %5295 = vmatprep.subr.bf16.mxu1 %v5846_v40 }
 0x2f2   :  { %5060 = vmatpush3.bf16.msra.mxu0 %v5525_v54 }
 0x2f3   :  { %4743 = vmatprep.subr.bf16.mxu0 %v5526_v18  ;;  %v5549_v18 = vld [vmem:[#allocation9 + $0x108] sm:$0xff]  }
 0x2f4   :  { %5297 = vmatpush3.bf16.msra.mxu1 %v5296_v17  ;;  %v5548_v17 = vld [vmem:[#allocation9 + $0x148] sm:$0xff]  }
 0x2f5   :  { %5062 = vmatmul.mubr.bf16.vlgmr.msra.gmra.mrb[20].mxu0 %v1204_v55  ;;  %4765 = vmatprep.subr.bf16.mxu1 %v5542_v23  ;;  %v5554_v23 = vld [vmem:[#allocation9 + $0xd8] sm:$0xff]  }
 0x2f6   :  { %4744 = vmatpush3.bf16.msra.mxu0 %v5527_v19  ;;  %2799 = vmatprep.mubr.bf16.mxu0 %v2183_v8  ;;  %v5550_v19 = vld [vmem:[#allocation9 + $0xd0] sm:$0xff]  }
 0x2f7   :  { %4745 = vmatprep.subr.bf16.mxu0 %v5528_v20  ;;  %v5551_v20 = vld [vmem:[#allocation9 + $0x90] sm:$0xff]  }
 0x2fa   :  { %4746 = vmatpush3.bf16.msra.mxu0 %v5529_v21  ;;  %v5552_v21 = vld [vmem:[#allocation9 + $0x150] sm:$0xff]  }
 0x2fb   :  { %4747 = vmatprep.subr.bf16.mxu0 %v5530_v22  ;;  %v5553_v22 = vld [vmem:[#allocation9 + $0x110] sm:$0xff]  }
 0x2fe   :  { %4748 = vmatpush3.bf16.msra.mxu0 %v5531_v24  ;;  %v5555_v24 = vld [vmem:[#allocation9 + $0x98] sm:$0xff]  }
 0x2ff   :  { %4749 = vmatprep.subr.bf16.mxu0 %v5532_v25  ;;  %v5556_v25 = vld [vmem:[#allocation9 + $0x158] sm:$0xff]  }
 0x302   :  { %4750 = vmatpush3.bf16.msra.mxu0 %v5533_v26  ;;  %v5557_v26 = vld [vmem:[#allocation9 + $0x118] sm:$0xff]  }
 0x303   :  { %4751 = vmatprep.subr.bf16.mxu0 %v5534_v27  ;;  %v5558_v27 = vld [vmem:[#allocation9 + $0xe0] sm:$0xff]  }
 0x306   :  { %4752 = vmatpush3.bf16.msra.mxu0 %v5535_v28  ;;  %v5559_v28 = vld [vmem:[#allocation9 + $0xa0] sm:$0xff]  }
 0x307   :  { %4753 = vmatprep.subr.bf16.mxu0 %v5536_v29  ;;  %v5560_v29 = vld [vmem:[#allocation9 + $0x160] sm:$0xff]  }
 0x30a   :  { %4754 = vmatpush3.bf16.msra.mxu0 %v5537_v30  ;;  %v5561_v30 = vld [vmem:[#allocation9 + $0x120] sm:$0xff]  }
 0x30b   :  { %4755 = vmatprep.subr.bf16.mxu0 %v5538_v32  ;;  %v5562_v32 = vld [vmem:[#allocation9 + $0xe8] sm:$0xff]  }
 0x30e   :  { %4756 = vmatpush3.bf16.msra.mxu0 %v5539_v33  ;;  %v5563_v33 = vld [vmem:[#allocation9 + $0xa8] sm:$0xff]  }
 0x30f   :  { %4757 = vmatprep.subr.bf16.mxu0 %v5540_v35  ;;  %v5564_v35 = vld [vmem:[#allocation9 + $0x168] sm:$0xff]  }
 0x312   :  { %4758 = vmatpush3.bf16.msra.mxu0 %v5541_v36  ;;  %v2168_v36 = vld [vmem:[#allocation4 + $0x14] ss:$2 sm:$0x3] }
 0x313   :  { %4787 = vmatprep.subr.bf16.mxu0 %v5544_v10 }
 0x315   :  { %2800 = vmatmul.mubr.bf16.vlgmr.msra.gmra.mrb[24].mxu0 %v2182_v13 }
 0x316   :  { %4788 = vmatpush3.bf16.msra.mxu0 %v5545_v12 }
 0x317   :  { %4789 = vmatprep.subr.bf16.mxu0 %v5548_v17 }
 0x31a   :  { %4790 = vmatpush3.bf16.msra.mxu0 %v5549_v18  ;;  %v3093_v18 = vld [vmem:[#allocation5 + $0x3] sm:$0x1] }
 0x31b   :  { %4791 = vmatprep.subr.bf16.mxu0 %v5552_v21  ;;  %v3091_v21 = vld [vmem:[#allocation5 + $0xc] sm:$0x1] }
 0x31e   :  { %4792 = vmatpush3.bf16.msra.mxu0 %v5553_v22 }
 0x31f   :  { %4793 = vmatprep.subr.bf16.mxu0 %v5556_v25 }
 0x322   :  { %4794 = vmatpush3.bf16.msra.mxu0 %v5557_v26  ;;  %v3111_v26 = vld [vmem:[#allocation5 + $0x11] sm:$0x1] }
 0x323   :  { %4795 = vmatprep.subr.bf16.mxu0 %v5560_v29 }
 0x326   :  { %4796 = vmatpush3.bf16.msra.mxu0 %v5561_v30  ;;  %v3105_v30 = vld [vmem:[#allocation5 + $0x6] sm:$0x1] }
 0x327   :  { %4797 = vmatprep.subr.bf16.mxu0 %v5564_v35 }
 0x388   :  { %v4645_v31 = vpop.f32.mrb[12].mxu0  ;;  %v4667_v37 = vpop.f32.mrb[12].mxu1 }
 0x389   :  { %v4646_v34 = vpop.f32.mrb[13].mxu0  ;;  %v4668_v39 = vpop.f32.mrb[13].mxu1 }
 0x38a   :  { %v4647_v38 = vadd.f32 %v4646_v34, %v4645_v31  ;;  %v4648_v41 = vpop.f32.mrb[14].mxu0  ;;  %v4669_v0 = vadd.f32 %v4668_v39, %v4667_v37  ;;  %v4670_v42 = vpop.f32.mrb[14].mxu1  ;;  %v5565_v31 = vld [vmem:[#allocation9 + $0x128] sm:$0xff]   ;;  %v2170_v37 = vrot.slane %v2168_v36, 6  ;;  %v5575_v36 = vld [vmem:[#allocation9 + $0x180] sm:$0xff]  }
 0x38b   :  { %v4649_v43 = vpop.f32.mrb[15].mxu0  ;;  %v4671_v44 = vpop.f32.mrb[15].mxu1  ;;  %v3085_v34 = vld [vmem:[#allocation5 + $0x1] sm:$0x1]  ;;  %v3081_v39 = vld [vmem:[#allocation5] sm:$0x1]  ;;  %4798 = vmatpush3.bf16.msra.mxu0 %v5565_v31 }
 0x38c   :  { %v1856_v45 = vadd.f32 %v4669_v0, %v4647_v38  ;;  %v3087_v38 = vld [vmem:[#allocation5 + $0xb] sm:$0x1]  ;;  %2172 = vst [vmem:[#allocation2 + $0x40] sm:$0xc] %v2170_v37  ;;  %3086 = vst [vmem:[#allocation2 + $0x8] sm:$0x1] %v3085_v34 }
 0x38d   :  { %3088 = vst [vmem:[#allocation2 + $0x9] sm:$0x1] %v3087_v38  ;;  %3082 = vst [vmem:[#allocation2] sm:$0x1] %v3081_v39  ;;  %v3083_v41 = vld [vmem:[#allocation5 + $0xa] sm:$0x1] }
 0x38e   :  { %v5566_v0 = vld [vmem:[#allocation9 + $0xf0] sm:$0xff]   ;;  %3084 = vst [vmem:[#allocation2 + $0x1] sm:$0x1] %v3083_v41  ;;  %v5577_v34 = vld [vmem:[#allocation9 + $0x1c8] sm:$0xff]  }
 0x38f   :  { %v5567_v42 = vld [vmem:[#allocation9 + $0xb0] sm:$0xff]   ;;  %v5579_v41 = vld [vmem:[#allocation9 + $0x208] sm:$0xff]  }
 0x390   :  { %v5568_v43 = vld [vmem:[#allocation9 + $0x170] sm:$0xff]  }
 0x391   :  { %v5569_v44 = vld [vmem:[#allocation9 + $0x130] sm:$0xff]   ;;  %4799 = vmatprep.subr.bf16.mxu0 %v5568_v43 }
 0x392   :  { %4800 = vmatpush3.bf16.msra.mxu0 %v5569_v44  ;;  %v5582_v43 = vld [vmem:[#allocation9 + $0x210] sm:$0xff]  }
 0x393   :  { %v5581_v44 = vld [vmem:[#allocation9 + $0x190] sm:$0xff]  }
 0x3a8   :  { %v4689_v47 = vpop.f32.mrb[16].mxu0  ;;  %v4711_v48 = vpop.f32.mrb[16].mxu1 }
 0x3a9   :  { %v4690_v49 = vpop.f32.mrb[17].mxu0  ;;  %v4712_v51 = vpop.f32.mrb[17].mxu1 }
 0x3aa   :  { %v4691_v50 = vadd.f32 %v4690_v49, %v4689_v47  ;;  %v4692_v52 = vpop.f32.mrb[18].mxu0  ;;  %v4713_v53 = vadd.f32 %v4712_v51, %v4711_v48  ;;  %v4714_v54 = vpop.f32.mrb[18].mxu1  ;;  %v5572_v47 = vld [vmem:[#allocation9 + $0x178] sm:$0xff]   ;;  %v6457_v51 = vld [vmem:[#allocation2 + $0x40] sm:$0xf] }
 0x3ab   :  { %v4693_v55 = vpop.f32.mrb[19].mxu0  ;;  %v4715_v57 = vpop.f32.mrb[19].mxu1  ;;  %v5571_v48 = vld [vmem:[#allocation9 + $0xb8] sm:$0xff]   ;;  %4801 = vmatprep.subr.bf16.mxu0 %v5572_v47  ;;  %v3113_v52 = vld [vmem:[#allocation5 + $0x8] sm:$0x1] }
 0x3ac   :  { %v1896_v56 = vadd.f32 %v4691_v50, %v1856_v45  ;;  %v5570_v45 = vld [vmem:[#allocation9 + $0xf8] sm:$0xff]   ;;  %v5574_v50 = vld [vmem:[#allocation9 + $0x1c0] sm:$0xff]   ;;  %3114 = vst [vmem:[#allocation2 + $0x40] sm:$0x1] %v3113_v52 }
 0x3ad   :  { %v5573_v49 = vld [vmem:[#allocation9 + $0x138] sm:$0xff]   ;;  %v4366_v57 = vld [vmem:[%s6700_s6] ss:$0 sm:$0xff] }
 0x3ae   :  { %v1936_v58 = vadd.f32 %v4713_v53, %v1896_v56  ;;  %4802 = vmatpush3.bf16.msra.mxu0 %v5573_v49  ;;  %v3115_v53 = vld [vmem:[#allocation5 + $0x12] sm:$0x1]  ;;  %v5586_v49 = vld [vmem:[#allocation9 + $0x1e0] sm:$0xff]  }
 0x3af   :  { %5100 = vmatprep.subr.bf16.mxu0 %v6380_v46  ;;  %3116 = vst [vmem:[#allocation2 + $0x41] sm:$0x1] %v3115_v53  ;;  %v5585_v47 = vld [vmem:[#allocation9 + $0x218] sm:$0xff]   ;;  %v5587_v52 = vld [vmem:[#allocation9 + $0x1a0] sm:$0xff]   ;;  %v5589_v53 = vld [vmem:[#allocation9 + $0x1e8] sm:$0xff]  }
 0x3c8   :  { %v1975_v59 = vpop.f32.mrb[20].mxu0 }
 0x3c9   :  { %v6452_v60 = vadd.f32 %v1975_v59, %v1936_v58  ;;  %v5063_v61 = vpop.f32.mrb[21].mxu0 }
 0x3ca   :  { %v1978_v62 = vpop.f32.mrb[22].mxu0 }
 0x3cb   :  { %v1981_v63 = vrot.slane %v6452_v60, 4  ;;  %v5064_v1 = vpop.f32.mrb[23].mxu0 }
 0x3cd   :  { %v1982_v2 = vadd.f32 %v1981_v63, %v6452_v60 }
 0x3cf   :  { %v1983_v3 = vrot.slane %v1982_v2, 2 }
 0x3d1   :  { %v1984_v4 = vadd.f32 %v1983_v3, %v1982_v2 }
 0x3d3   :  { %v1985_v5 = vrot.slane %v1984_v4, 1 }
 0x3d5   :  { %v1986_v6 = vadd.f32 %v1985_v5, %v1984_v4 }
 0x3d7   :  { %5098 = vmatmul.mubr.f32.vlgmr.msra.gmra.mrb[10].mxu1 %v1986_v6 }
 0x3d8   :  { %4766 = vmatpush3.bf16.msra.mxu1 %v5543_v9 }
 0x3d9   :  { %4767 = vmatprep.subr.bf16.mxu1 %v5546_v15 }
 0x3dc   :  { %4768 = vmatpush3.bf16.msra.mxu1 %v5547_v16 }
 0x3dd   :  { %4769 = vmatprep.subr.bf16.mxu1 %v5550_v19  ;;  %v3095_v19 = vld [vmem:[#allocation5 + $0xd] sm:$0x1] }
 0x3e0   :  { %4770 = vmatpush3.bf16.msra.mxu1 %v5551_v20  ;;  %v3089_v20 = vld [vmem:[#allocation5 + $0x2] sm:$0x1] }
 0x3e1   :  { %4771 = vmatprep.subr.bf16.mxu1 %v5554_v23  ;;  %v3109_v23 = vld [vmem:[#allocation5 + $0x7] sm:$0x1] }
 0x3e4   :  { %4772 = vmatpush3.bf16.msra.mxu1 %v5555_v24 }
 0x3e5   :  { %4773 = vmatprep.subr.bf16.mxu1 %v5558_v27  ;;  %v5576_v27 = vld [vmem:[#allocation9 + $0x200] sm:$0xff]  }
 0x3e8   :  { %4774 = vmatpush3.bf16.msra.mxu1 %v5559_v28 }
 0x3e9   :  { %4775 = vmatprep.subr.bf16.mxu1 %v5562_v32  ;;  %v3107_v32 = vld [vmem:[#allocation5 + $0x10] sm:$0x1] }
 0x3ec   :  { %4776 = vmatpush3.bf16.msra.mxu1 %v5563_v33 }
 0x3ed   :  { %4777 = vmatprep.subr.bf16.mxu1 %v5566_v0  ;;  %v5578_v0 = vld [vmem:[#allocation9 + $0x188] sm:$0xff]  }
 0x3f0   :  { %4778 = vmatpush3.bf16.msra.mxu1 %v5567_v42  ;;  %v5580_v42 = vld [vmem:[#allocation9 + $0x1d0] sm:$0xff]  }
 0x3f1   :  { %4779 = vmatprep.subr.bf16.mxu1 %v5570_v45  ;;  %v5583_v45 = vld [vmem:[#allocation9 + $0x1d8] sm:$0xff]  }
 0x3f4   :  { %4780 = vmatpush3.bf16.msra.mxu1 %v5571_v48  ;;  %v5584_v48 = vld [vmem:[#allocation9 + $0x198] sm:$0xff]  }
 0x3f5   :  { %4809 = vmatprep.subr.bf16.mxu1 %v5574_v50  ;;  %v5588_v50 = vld [vmem:[#allocation9 + $0x220] sm:$0xff]  }
 0x4aa   :  { %v2069_v54 = vpop.f32.mrb[10].mxu1 }
 0x4ab   :  { %v2076_v55 = vrot.slane %v2069_v54, %v6370_v14  ;;  %v5099_v56 = vpop.f32.mrb[11].mxu1  ;;  %v5591_v54 = vld [vmem:[#allocation9 + $0x228] sm:$0xff]  }
 0x4ac   :  { %v5592_v56 = vld [vmem:[#allocation9 + $0x1f0] sm:$0xff]  }
 0x4ad   :  { %v2077_v58 = vsub.f32 %v6452_v60, %v2076_v55  ;;  %v5590_v55 = vld [vmem:[#allocation9 + $0x1a8] sm:$0xff]  }
 0x4af   :  { %v2085_v59 = vadd.f32 %v4366_v57, %v2077_v58  ;;  %v5594_v57 = vld [vmem:[#allocation9 + $0x230] sm:$0xff]  }
 0x4b0   :  { %v5593_v58 = vld [vmem:[#allocation9 + $0x1b0] sm:$0xff]  }
 0x4b1   :  { %v2086_v61 = vmul.f32 0.2, %v2085_v59 }
 0x4b3   :  { %v2087_v62 = vmax.f32 %v2085_v59, %v2086_v61  ;;  %v5595_v59 = vld [vmem:[#allocation9 + $0x1f8] sm:$0xff]  }
 0x4b4   :  { %v5597_v61 = vld [vmem:[#allocation9 + $0x238] sm:$0xff]  }
 0x4b5   :  { %2091 = vst [vmem:[#allocation4 + $0x4] ss:$12 sps:$4 sm:$0xff] %v2087_v62   ;;  %v5596_v62 = vld [vmem:[#allocation9 + $0x1b8] sm:$0xff]  }
 0x4bc   :  { %v2114_v63 = vld [vmem:[#allocation4 + $0xe] ss:$2 sm:$0x3]  ;;  %v2123_v1 = vld [vmem:[#allocation4 + $0xf] ss:$2 sm:$0x3] }
 0x4bd   :  { %v2116_v2 = vrot.slane %v2114_v63, 6  ;;  %v2125_v3 = vrot.slane %v2123_v1, 6  ;;  %v2129_v4 = vld [vmem:[#allocation4 + $0x4] ss:$2 sm:$0x3]  ;;  %v2190_v63 = vpack.c.bf16 %v6457_v51, %v6457_v51  ;;  %v2975_v51 = vld [vmem:[%s6702_s8] sm:$0xff] }
 0x4be   :  { %v2132_v5 = vld [vmem:[#allocation4 + $0x10] ss:$2 sm:$0x3]  ;;  %v2138_v6 = vld [vmem:[#allocation4 + $0x5] ss:$2 sm:$0x3] }
 0x4bf   :  { %2130 = vst [vmem:[#allocation2 + $0x20] sm:$0x3] %v2129_v4  ;;  %v2134_v7 = vrot.slane %v2132_v5, 6  ;;  %v2141_v8 = vld [vmem:[#allocation4 + $0x11] ss:$2 sm:$0x3] }
 0x4c0   :  { %2118 = vst [vmem:[#allocation2 + $0x10] sm:$0xc] %v2116_v2  ;;  %2127 = vst [vmem:[#allocation2 + $0x18] sm:$0xc] %v2125_v3  ;;  %v2143_v9 = vrot.slane %v2141_v8, 6  ;;  %v4759_v2 = vpop.f32.mrb[24].mxu0 }
 0x4c1   :  { %2139 = vst [vmem:[#allocation2 + $0x28] sm:$0x3] %v2138_v6  ;;  %v2150_v10 = vld [vmem:[#allocation4 + $0x12] ss:$2 sm:$0x3]  ;;  %v4760_v3 = vpop.f32.mrb[25].mxu0 }
 0x4c2   :  { %v2152_v60 = vrot.slane %v2150_v10, 6  ;;  %v2159_v11 = vld [vmem:[#allocation4 + $0x13] ss:$2 sm:$0x3]  ;;  %2136 = vst [vmem:[#allocation2 + $0x20] sm:$0xc] %v2134_v7  ;;  %v6482_v4 = vadd.f32 %v4760_v3, %v4759_v2 }
 0x4c3   :  { %v2161_v12 = vrot.slane %v2159_v11, 6  ;;  %2145 = vst [vmem:[#allocation2 + $0x28] sm:$0xc] %v2143_v9  ;;  %v2120_v13 = vld [vmem:[#allocation4 + $0x3] ss:$2 sm:$0x3] }
 0x4c4   :  { %2154 = vst [vmem:[#allocation2 + $0x30] sm:$0xc] %v2152_v60  ;;  %2121 = vst [vmem:[#allocation2 + $0x18] sm:$0x3] %v2120_v13  ;;  %v4762_v5 = vpop.f32.mrb[26].mxu0  ;;  %v2976_v7 = vld [vmem:[%s6702_s8 + $0x8] sm:$0xff] }
 0x4c5   :  { %v2111_v15 = vld [vmem:[#allocation4 + $0x2] ss:$2 sm:$0x3]  ;;  %v2156_v16 = vld [vmem:[#allocation4 + $0x7] ss:$2 sm:$0x3]  ;;  %v5299_v9 = vpack.c.bf16 %v2976_v7, %v2975_v51 }
 0x4c6   :  { %2163 = vst [vmem:[#allocation2 + $0x38] sm:$0xc] %v2161_v12  ;;  %2112 = vst [vmem:[#allocation2 + $0x10] sm:$0x3] %v2111_v15  ;;  %v4763_v6 = vpop.f32.mrb[27].mxu0  ;;  %v2977_v8 = vld [vmem:[%s6702_s8 + $0x10] sm:$0xff] }
 0x4c7   :  { %2157 = vst [vmem:[#allocation2 + $0x38] sm:$0x3] %v2156_v16  ;;  %v2147_v17 = vld [vmem:[#allocation4 + $0x6] ss:$2 sm:$0x3]  ;;  %v2979_v60 = vld [vmem:[%s6702_s8 + $0x20] sm:$0xff] }
 0x4c8   :  { %2148 = vst [vmem:[#allocation2 + $0x30] sm:$0x3] %v2147_v17  ;;  %v2980_v11 = vld [vmem:[%s6702_s8 + $0x28] sm:$0xff]  ;;  %v2981_v13 = vld [vmem:[%s6702_s8 + $0x30] sm:$0xff]  ;;  %v2982_v15 = vld [vmem:[%s6702_s8 + $0x38] sm:$0xff] }
 0x4c9   :  { %v2177_v22 = vld [vmem:[#allocation2 + $0x20] sm:$0xf]  ;;  %v5305_v12 = vpack.c.bf16 %v2980_v11, %v2979_v60  ;;  %v5308_v16 = vpack.c.bf16 %v2982_v15, %v2981_v13 }
 0x4ca   :  { %v2178_v24 = vld [vmem:[#allocation2 + $0x28] sm:$0xf]  ;;  %v2186_v25 = vpack.c.bf16 %v2177_v22, %v2177_v22  ;;  %v2983_v17 = vld [vmem:[%s6702_s8 + $0x40] sm:$0xff] }
 0x4cb   :  { %v2176_v28 = vld [vmem:[#allocation2 + $0x18] sm:$0xf]  ;;  %v2187_v29 = vpack.c.bf16 %v2178_v24, %v2178_v24  ;;  %v2988_v24 = vld [vmem:[%s6702_s8 + $0x68] sm:$0xff] }
 0x4cc   :  { %v2185_v33 = vpack.c.bf16 %v2176_v28, %v2176_v28  ;;  %3094 = vst [vmem:[#allocation2 + $0x18] sm:$0x1] %v3093_v18  ;;  %3096 = vst [vmem:[#allocation2 + $0x19] sm:$0x1] %v3095_v19  ;;  %v2984_v18 = vld [vmem:[%s6702_s8 + $0x48] sm:$0xff] }
 0x4cd   :  { %v2175_v35 = vld [vmem:[#allocation2 + $0x10] sm:$0xf]  ;;  %2879 = vmatprep.mubr.bf16.mxu0 %v2187_v29  ;;  %v5311_v19 = vpack.c.bf16 %v2984_v18, %v2983_v17  ;;  %v5598_v29 = vld [vmem:[#allocation12 + $0x40] sm:$0xff]  }
 0x4ce   :  { %v2180_v31 = vld [vmem:[#allocation2 + $0x38] sm:$0xf]  ;;  %v2184_v37 = vpack.c.bf16 %v2175_v35, %v2175_v35  ;;  %3090 = vst [vmem:[#allocation2 + $0x10] sm:$0x1] %v3089_v20  ;;  %3092 = vst [vmem:[#allocation2 + $0x11] sm:$0x1] %v3091_v21  ;;  %2839 = vmatprep.mubr.bf16.mxu1 %v2185_v33  ;;  %2880 = vmatmul.mubr.bf16.vlgmr.msra.gmra.mrb[28].mxu0 %v2186_v25 }
 0x4cf   :  { %3110 = vst [vmem:[#allocation2 + $0x38] sm:$0x1] %v3109_v23  ;;  %3112 = vst [vmem:[#allocation2 + $0x39] sm:$0x1] %v3111_v26  ;;  %v6464_v38 = vld [vmem:[#allocation2 + $0x30] sm:$0xf]  ;;  %v2189_v39 = vpack.c.bf16 %v2180_v31, %v2180_v31  ;;  %5101 = vmatpush3.bf16.msra.mxu0 %v5576_v27  ;;  %5116 = vmatprep.mubr.msk.bf16.mxu0 %vm5845_vm0, %v6380_v46 }
 0x4d0   :  { %3106 = vst [vmem:[#allocation2 + $0x30] sm:$0x1] %v3105_v30  ;;  %3108 = vst [vmem:[#allocation2 + $0x31] sm:$0x1] %v3107_v32  ;;  %2840 = vmatmul.mubr.bf16.vlgmr.msra.gmra.mrb[20].mxu1 %v2184_v37  ;;  %5102 = vmatprep.subr.bf16.mxu0 %v6380_v46  ;;  %v2188_v1 = vpack.c.bf16 %v6464_v38, %v6464_v38  ;;  %v2985_v20 = vld [vmem:[%s6702_s8 + $0x50] sm:$0xff]  ;;  %v2986_v21 = vld [vmem:[%s6702_s8 + $0x58] sm:$0xff] }
 0x4d1   :  { %4810 = vmatpush3.bf16.msra.mxu1 %v5575_v36  ;;  %2919 = vmatprep.mubr.bf16.mxu1 %v2189_v39  ;;  %v5314_v22 = vpack.c.bf16 %v2986_v21, %v2985_v20  ;;  %v2987_v23 = vld [vmem:[%s6702_s8 + $0x60] sm:$0xff]  ;;  %v2989_v26 = vld [vmem:[%s6702_s8 + $0x70] sm:$0xff]  ;;  %v2990_v27 = vld [vmem:[%s6702_s8 + $0x78] sm:$0xff] }
 0x4d2   :  { %4811 = vmatprep.subr.bf16.mxu1 %v5577_v34  ;;  %v5317_v25 = vpack.c.bf16 %v2988_v24, %v2987_v23  ;;  %v5320_v28 = vpack.c.bf16 %v2990_v27, %v2989_v26  ;;  %v5599_v30 = vld [vmem:[#allocation12] sm:$0xff]   ;;  %v5602_v33 = vld [vmem:[#allocation12 + $0x48] sm:$0xff]   ;;  %v5606_v36 = vld [vmem:[#allocation12 + $0x50] sm:$0xff]  }
 0x4d3   :  { %5103 = vmatpush3.bf16.msra.mxu0 %v5579_v41  ;;  %v5600_v32 = vld [vmem:[#allocation12 + $0xc0] sm:$0xff]   ;;  %v5603_v35 = vld [vmem:[#allocation12 + $0x8] sm:$0xff]   ;;  %v5607_v31 = vld [vmem:[#allocation12 + $0x10] sm:$0xff]  }
 0x4d4   :  { %5104 = vmatprep.subr.bf16.mxu0 %v6380_v46  ;;  %v5610_v37 = vld [vmem:[#allocation12 + $0x58] sm:$0xff]   ;;  %v5614_v38 = vld [vmem:[#allocation12 + $0x60] sm:$0xff]   ;;  %v5618_v41 = vld [vmem:[#allocation12 + $0x68] sm:$0xff]  }
 0x4d5   :  { %4812 = vmatpush3.bf16.msra.mxu1 %v5578_v0  ;;  %v5611_v34 = vld [vmem:[#allocation12 + $0x18] sm:$0xff]   ;;  %v5615_v39 = vld [vmem:[#allocation12 + $0x20] sm:$0xff]   ;;  %v5619_v0 = vld [vmem:[#allocation12 + $0x28] sm:$0xff]  }
 0x4d6   :  { %4813 = vmatprep.subr.bf16.mxu1 %v5580_v42  ;;  %v5622_v42 = vld [vmem:[#allocation12 + $0x70] sm:$0xff]   ;;  %v5601_v20 = vld [vmem:[#allocation12 + $0x80] sm:$0xff]   ;;  %v5604_v23 = vld [vmem:[#allocation12 + $0xc8] sm:$0xff]  }
 0x4d7   :  { %5105 = vmatpush3.bf16.msra.mxu0 %v5582_v43  ;;  %v5623_v43 = vld [vmem:[#allocation12 + $0x30] sm:$0xff]   ;;  %v5605_v24 = vld [vmem:[#allocation12 + $0x88] sm:$0xff]   ;;  %v5612_v27 = vld [vmem:[#allocation12 + $0xd8] sm:$0xff]  }
 0x4d8   :  { %5106 = vmatprep.subr.bf16.mxu0 %v6380_v46  ;;  %v3120_v18 = vld [vmem:[#allocation2 + $0x18] sm:$0x3] }
 0x4d9   :  { %4814 = vmatpush3.bf16.msra.mxu1 %v5581_v44  ;;  %v5626_v44 = vld [vmem:[#allocation12 + $0x78] sm:$0xff]   ;;  %v3129_v21 = vpack.c.bf16 %v3120_v18, %v3120_v18  ;;  %v5609_v26 = vld [vmem:[#allocation12 + $0x90] sm:$0xff]  }
 0x4da   :  { %4815 = vmatprep.subr.bf16.mxu1 %v5583_v45  ;;  %v3118_v45 = vld [vmem:[#allocation2 + $0x8] sm:$0x3] }
 0x4db   :  { %5107 = vmatpush3.bf16.msra.mxu0 %v5585_v47  ;;  %v5627_v47 = vld [vmem:[#allocation12 + $0x38] sm:$0xff]  }
 0x4dc   :  { %5108 = vmatprep.subr.bf16.mxu0 %v6380_v46 }
 0x4dd   :  { %4816 = vmatpush3.bf16.msra.mxu1 %v5584_v48  ;;  %v3127_v48 = vpack.c.bf16 %v3118_v45, %v3118_v45  ;;  %v5638_v45 = vld [vmem:[#allocation12 + $0x188] sm:$0xff]  }
 0x4de   :  { %4817 = vmatprep.subr.bf16.mxu1 %v5586_v49  ;;  %v3117_v49 = vld [vmem:[#allocation2] sm:$0x3] }
 0x4df   :  { %5109 = vmatpush3.bf16.msra.mxu0 %v5588_v50  ;;  %v3126_v50 = vpack.c.bf16 %v3117_v49, %v3117_v49  ;;  %v5641_v49 = vld [vmem:[#allocation12 + $0x158] sm:$0xff]  }
 0x4e0   :  { %5110 = vmatprep.subr.bf16.mxu0 %v6380_v46 }
 0x4e1   :  { %4818 = vmatpush3.bf16.msra.mxu1 %v5587_v52  ;;  %v5630_v52 = vld [vmem:[#allocation12 + $0x140] sm:$0xff]  }
 0x4e2   :  { %4819 = vmatprep.subr.bf16.mxu1 %v5589_v53  ;;  %v5631_v53 = vld [vmem:[#allocation12 + $0x100] sm:$0xff]  }
 0x4e3   :  { %5111 = vmatpush3.bf16.msra.mxu0 %v5591_v54 }
 0x4e4   :  { %5112 = vmatprep.subr.bf16.mxu0 %v6380_v46 }
 0x4e5   :  { %4820 = vmatpush3.bf16.msra.mxu1 %v5590_v55 }
 0x4e6   :  { %4821 = vmatprep.subr.bf16.mxu1 %v5592_v56 }
 0x4e7   :  { %5113 = vmatpush3.bf16.msra.mxu0 %v5594_v57 }
 0x4e8   :  { %5114 = vmatprep.subr.bf16.mxu0 %v6380_v46 }
 0x4e9   :  { %4822 = vmatpush3.bf16.msra.mxu1 %v5593_v58 }
 0x4ea   :  { %4823 = vmatprep.subr.bf16.mxu1 %v5595_v59 }
 0x4eb   :  { %5115 = vmatpush3.bf16.msra.mxu0 %v5597_v61 }
 0x4ec   :  { %4857 = vmatprep.subr.bf16.mxu0 %v5598_v29  ;;  %v5616_v29 = vld [vmem:[#allocation12 + $0xe0] sm:$0xff]  }
 0x4ed   :  { %4824 = vmatpush3.bf16.msra.mxu1 %v5596_v62 }
 0x4ee   :  { %5298 = vmatprep.subr.bf16.mxu1 %v5846_v40  ;;  %5117 = vmatmul.mubr.bf16.vlgmr.msra.gmra.mrb[32].mxu0 %v2190_v63 }
 0x4ef   :  { %4858 = vmatpush3.bf16.msra.mxu0 %v5599_v30  ;;  %3743 = vmatprep.mubr.bf16.mxu0 %v3127_v48  ;;  %v5617_v30 = vld [vmem:[#allocation12 + $0xa0] sm:$0xff]   ;;  %v5640_v48 = vld [vmem:[#allocation12 + $0x1d0] sm:$0xff]  }
 0x4f0   :  { %2920 = vmatmul.mubr.bf16.vlgmr.msra.gmra.mrb[24].mxu1 %v2188_v1  ;;  %4859 = vmatprep.subr.bf16.mxu0 %v5602_v33  ;;  %v5621_v33 = vld [vmem:[#allocation12 + $0xa8] sm:$0xff]  }
 0x4f1   :  { %5152 = vmatprep.mubr.msk.f32.mxu1 %vm5845_vm0, %v6380_v46  ;;  %v2978_v46 = vld [vmem:[%s6702_s8 + $0x18] sm:$0xff]  ;;  %5300 = vmatpush3.bf16.msra.mxu1 %v5299_v9 }
 0x4f2   :  { %v5302_v10 = vpack.c.bf16 %v2978_v46, %v2977_v8  ;;  %5301 = vmatprep.subr.bf16.mxu1 %v5846_v40 }
 0x4f3   :  { %4860 = vmatpush3.bf16.msra.mxu0 %v5603_v35  ;;  %v5624_v35 = vld [vmem:[#allocation12 + $0xf0] sm:$0xff]  }
 0x4f4   :  { %4861 = vmatprep.subr.bf16.mxu0 %v5606_v36  ;;  %v5625_v36 = vld [vmem:[#allocation12 + $0xb0] sm:$0xff]  }
 0x4f5   :  { %5303 = vmatpush3.bf16.msra.mxu1 %v5302_v10 }
 0x4f6   :  { %5304 = vmatprep.subr.bf16.mxu1 %v5846_v40 }
 0x4f7   :  { %4862 = vmatpush3.bf16.msra.mxu0 %v5607_v31  ;;  %v5628_v31 = vld [vmem:[#allocation12 + $0xf8] sm:$0xff]  }
 0x4f8   :  { %4863 = vmatprep.subr.bf16.mxu0 %v5610_v37  ;;  %v5629_v37 = vld [vmem:[#allocation12 + $0xb8] sm:$0xff]  }
 0x4f9   :  { %5306 = vmatpush3.bf16.msra.mxu1 %v5305_v12 }
 0x4fa   :  { %5307 = vmatprep.subr.bf16.mxu1 %v5846_v40 }
 0x4fb   :  { %4864 = vmatpush3.bf16.msra.mxu0 %v5611_v34  ;;  %v3119_v34 = vld [vmem:[#allocation2 + $0x10] sm:$0x3] }
 0x4fc   :  { %4865 = vmatprep.subr.bf16.mxu0 %v5614_v38  ;;  %v3128_v38 = vpack.c.bf16 %v3119_v34, %v3119_v34 }
 0x4fd   :  { %5309 = vmatpush3.bf16.msra.mxu1 %v5308_v16 }
 0x4fe   :  { %5310 = vmatprep.subr.bf16.mxu1 %v5846_v40 }
 0x4ff   :  { %4866 = vmatpush3.bf16.msra.mxu0 %v5615_v39  ;;  %v5632_v39 = vld [vmem:[#allocation12 + $0x1c0] sm:$0xff]  }
 0x500   :  { %4867 = vmatprep.subr.bf16.mxu0 %v5618_v41  ;;  %v5633_v41 = vld [vmem:[#allocation12 + $0x148] sm:$0xff]  }
 0x501   :  { %5312 = vmatpush3.bf16.msra.mxu1 %v5311_v19 }
 0x502   :  { %5313 = vmatprep.subr.bf16.mxu1 %v5846_v40 }
 0x503   :  { %4868 = vmatpush3.bf16.msra.mxu0 %v5619_v0  ;;  %v5634_v0 = vld [vmem:[#allocation12 + $0x180] sm:$0xff]  }
 0x504   :  { %4869 = vmatprep.subr.bf16.mxu0 %v5622_v42  ;;  %v5635_v42 = vld [vmem:[#allocation12 + $0x108] sm:$0xff]  }
 0x505   :  { %5315 = vmatpush3.bf16.msra.mxu1 %v5314_v22 }
 0x506   :  { %5316 = vmatprep.subr.bf16.mxu1 %v5846_v40 }
 0x507   :  { %4870 = vmatpush3.bf16.msra.mxu0 %v5623_v43  ;;  %v5636_v43 = vld [vmem:[#allocation12 + $0x1c8] sm:$0xff]  }
 0x508   :  { %4871 = vmatprep.subr.bf16.mxu0 %v5626_v44  ;;  %v5637_v44 = vld [vmem:[#allocation12 + $0x150] sm:$0xff]  }
 0x509   :  { %5318 = vmatpush3.bf16.msra.mxu1 %v5317_v25  ;;  %v5608_v25 = vld [vmem:[#allocation12 + $0xd0] sm:$0xff]  }
 0x50a   :  { %5319 = vmatprep.subr.bf16.mxu1 %v5846_v40 }
 0x50b   :  { %4872 = vmatpush3.bf16.msra.mxu0 %v5627_v47  ;;  %v5639_v47 = vld [vmem:[#allocation12 + $0x110] sm:$0xff]  }
 0x50c   :  { %4901 = vmatprep.subr.bf16.mxu0 %v5630_v52  ;;  %v5643_v52 = vld [vmem:[#allocation12 + $0x118] sm:$0xff]  }
 0x50d   :  { %5321 = vmatpush3.bf16.msra.mxu1 %v5320_v28  ;;  %v5613_v28 = vld [vmem:[#allocation12 + $0x98] sm:$0xff]  }
 0x50e   :  { %4879 = vmatprep.subr.bf16.mxu1 %v5600_v32  ;;  %3744 = vmatmul.mubr.bf16.vlgmr.msra.gmra.mrb[36].mxu0 %v3126_v50  ;;  %v5620_v32 = vld [vmem:[#allocation12 + $0xe8] sm:$0xff]   ;;  %v5642_v50 = vld [vmem:[#allocation12 + $0x190] sm:$0xff]  }
 0x50f   :  { %4902 = vmatpush3.bf16.msra.mxu0 %v5631_v53  ;;  %v5644_v53 = vld [vmem:[#allocation12 + $0x1d8] sm:$0xff]  }
 0x510   :  { %4903 = vmatprep.subr.bf16.mxu0 %v5633_v41  ;;  %v5664_v41 = vld [vmem:[#allocation12 + $0x210] sm:$0xff]  }
 0x513   :  { %4904 = vmatpush3.bf16.msra.mxu0 %v5635_v42  ;;  %v5665_v42 = vld [vmem:[#allocation12 + $0x218] sm:$0xff]  }
 0x514   :  { %4905 = vmatprep.subr.bf16.mxu0 %v5637_v44  ;;  %v5667_v44 = vld [vmem:[#allocation12 + $0x228] sm:$0xff]  }
 0x517   :  { %4906 = vmatpush3.bf16.msra.mxu0 %v5639_v47  ;;  %v5669_v47 = vld [vmem:[#allocation12 + $0x238] sm:$0xff]  }
 0x518   :  { %4907 = vmatprep.subr.bf16.mxu0 %v5641_v49 }
 0x51b   :  { %4908 = vmatpush3.bf16.msra.mxu0 %v5643_v52  ;;  %v3919_v52 = vld [vmem:[%s6705_s11] sm:$0xff] }
 0x5a1   :  { %v4803_v54 = vpop.f32.mrb[28].mxu0 }
 0x5a2   :  { %v4804_v56 = vpop.f32.mrb[29].mxu0 }
 0x5a3   :  { %v4781_v55 = vpop.f32.mrb[20].mxu1  ;;  %v4805_v58 = vadd.f32 %v4804_v56, %v4803_v54  ;;  %v4806_v59 = vpop.f32.mrb[30].mxu0  ;;  %v5645_v54 = vld [vmem:[#allocation12 + $0x160] sm:$0xff]  }
 0x5a4   :  { %v4782_v57 = vpop.f32.mrb[21].mxu1  ;;  %v4807_v63 = vpop.f32.mrb[31].mxu0  ;;  %v5647_v56 = vld [vmem:[#allocation12 + $0x120] sm:$0xff]   ;;  %4909 = vmatprep.subr.bf16.mxu0 %v5645_v54  ;;  %v3921_v54 = vld [vmem:[%s6705_s11 + $0x10] sm:$0xff] }
 0x5a5   :  { %v4783_v61 = vadd.f32 %v4782_v57, %v4781_v55  ;;  %v4784_v62 = vpop.f32.mrb[22].mxu1  ;;  %v5646_v55 = vld [vmem:[#allocation12 + $0x198] sm:$0xff]   ;;  %4910 = vmatpush3.bf16.msra.mxu0 %v5647_v56  ;;  %v5648_v57 = vld [vmem:[#allocation12 + $0x1e0] sm:$0xff]   ;;  %v5653_v63 = vld [vmem:[#allocation12 + $0x170] sm:$0xff]  }
 0x5a6   :  { %v4785_v1 = vpop.f32.mrb[23].mxu1  ;;  %v5650_v59 = vld [vmem:[#allocation12 + $0x1a0] sm:$0xff]   ;;  %v5652_v62 = vld [vmem:[#allocation12 + $0x1e8] sm:$0xff]  }
 0x5a7   :  { %v2842_v2 = vadd.f32 %v4783_v61, %v6482_v4  ;;  %v5651_v61 = vld [vmem:[#allocation12 + $0x128] sm:$0xff]  }
 0x5a8   :  { %v5654_v1 = vld [vmem:[#allocation12 + $0x1a8] sm:$0xff]  }
 0x5a9   :  { %v2882_v3 = vadd.f32 %v4805_v58, %v2842_v2  ;;  %v5649_v58 = vld [vmem:[#allocation12 + $0x168] sm:$0xff]   ;;  %v5655_v2 = vld [vmem:[#allocation12 + $0x130] sm:$0xff]  }
 0x5aa   :  { %4911 = vmatprep.subr.bf16.mxu0 %v5649_v58 }
 0x5ab   :  { %4912 = vmatpush3.bf16.msra.mxu0 %v5651_v61 }
 0x5ac   :  { %4913 = vmatprep.subr.bf16.mxu0 %v5653_v63  ;;  %v3923_v63 = vld [vmem:[%s6705_s11 + $0x20] sm:$0xff] }
 0x5af   :  { %4914 = vmatpush3.bf16.msra.mxu0 %v5655_v2 }
 0x5c1   :  { %v2961_v5 = vpop.f32.mrb[32].mxu0 }
 0x5c2   :  { %v5118_v51 = vpop.f32.mrb[33].mxu0 }
 0x5c3   :  { %v4825_v6 = vpop.f32.mrb[24].mxu1  ;;  %v2964_v8 = vpop.f32.mrb[34].mxu0  ;;  %v5659_v51 = vld [vmem:[#allocation12 + $0x138] sm:$0xff]  }
 0x5c4   :  { %v4826_v7 = vpop.f32.mrb[25].mxu1  ;;  %v5119_v10 = vpop.f32.mrb[35].mxu0  ;;  %v5661_v8 = vld [vmem:[#allocation12 + $0x1b8] sm:$0xff]  }
 0x5c5   :  { %v4827_v9 = vadd.f32 %v4826_v7, %v4825_v6  ;;  %v4828_v46 = vpop.f32.mrb[26].mxu1  ;;  %v5658_v6 = vld [vmem:[#allocation12 + $0x1b0] sm:$0xff]   ;;  %v5660_v7 = vld [vmem:[#allocation12 + $0x1f8] sm:$0xff]  }
 0x5c6   :  { %v4829_v60 = vpop.f32.mrb[27].mxu1  ;;  %v3124_v46 = vld [vmem:[#allocation2 + $0x38] sm:$0x3] }
 0x5c7   :  { %v2922_v11 = vadd.f32 %v4827_v9, %v2882_v3  ;;  %v5656_v3 = vld [vmem:[#allocation12 + $0x1f0] sm:$0xff]   ;;  %v3133_v10 = vpack.c.bf16 %v3124_v46, %v3124_v46  ;;  %v3123_v60 = vld [vmem:[#allocation2 + $0x30] sm:$0x3] }
 0x5c8   :  { %v6543_v9 = vld [vmem:[#allocation4 + $0x8] sm:$0xff]  ;;  %v3929_v46 = vld [vmem:[%s6705_s11 + $0x50] sm:$0xff] }
 0x5c9   :  { %v6540_v12 = vadd.f32 %v2961_v5, %v2922_v11  ;;  %v5657_v5 = vld [vmem:[#allocation12 + $0x178] sm:$0xff]   ;;  %v3132_v11 = vpack.c.bf16 %v3123_v60, %v3123_v60 }
 0x5ca   :  { %4915 = vmatprep.subr.bf16.mxu0 %v5657_v5  ;;  %v3926_v5 = vld [vmem:[%s6705_s11 + $0x38] sm:$0xff] }
 0x5cb   :  { %v2968_v13 = vsel %vm2967_vm1, %v6540_v12, 0.0  ;;  %4916 = vmatpush3.bf16.msra.mxu0 %v5659_v51  ;;  %v3927_v51 = vld [vmem:[%s6705_s11 + $0x40] sm:$0xff] }
 0x5cc   :  { %v2969_v15 = vrot.slane %v2968_v13, 4  ;;  %5155 = vmatprep.subr.bf16.mxu0 %v6543_v9 }
 0x5ce   :  { %v2970_v16 = vadd.f32 %v2969_v15, %v2968_v13 }
 0x5d0   :  { %v2971_v17 = vrot.slane %v2970_v16, 2 }
 0x5d2   :  { %v2972_v4 = vadd.f32 %v2971_v17, %v2970_v16 }
 0x5d4   :  { %v2973_v19 = vrot.slane %v2972_v4, 1 }
 0x5d6   :  { %v2974_v22 = vadd.f32 %v2973_v19, %v2972_v4 }
 0x5d8   :  { %5153 = vmatmul.mubr.f32.vlgmr.msra.gmra.mrb[28].mxu1 %v2974_v22 }
 0x5d9   :  { %4880 = vmatpush3.bf16.msra.mxu1 %v5601_v20  ;;  %3783 = vmatprep.mubr.bf16.mxu1 %v3129_v21  ;;  %v4439_v21 = vld [vmem:[#allocation11] ss:$0 sm:$0xff] }
 0x5da   :  { %4881 = vmatprep.subr.bf16.mxu1 %v5604_v23 }
 0x5dd   :  { %4882 = vmatpush3.bf16.msra.mxu1 %v5605_v24 }
 0x5de   :  { %4883 = vmatprep.subr.bf16.mxu1 %v5608_v25 }
 0x5e1   :  { %4884 = vmatpush3.bf16.msra.mxu1 %v5609_v26  ;;  %v4873_v13 = vpop.f32.mrb[36].mxu0 }
 0x5e2   :  { %4885 = vmatprep.subr.bf16.mxu1 %v5612_v27  ;;  %v4874_v15 = vpop.f32.mrb[37].mxu0 }
 0x5e3   :  { %v4875_v16 = vadd.f32 %v4874_v15, %v4873_v13  ;;  %v4876_v17 = vpop.f32.mrb[38].mxu0  ;;  %v3932_v13 = vld [vmem:[%s6705_s11 + $0x68] sm:$0xff] }
 0x5e4   :  { %v4877_v4 = vpop.f32.mrb[39].mxu0  ;;  %v3934_v17 = vld [vmem:[%s6705_s11 + $0x78] sm:$0xff] }
 0x5e5   :  { %4886 = vmatpush3.bf16.msra.mxu1 %v5613_v28 }
 0x5e6   :  { %4887 = vmatprep.subr.bf16.mxu1 %v5616_v29 }
 0x5e9   :  { %4888 = vmatpush3.bf16.msra.mxu1 %v5617_v30 }
 0x5ea   :  { %4889 = vmatprep.subr.bf16.mxu1 %v5620_v32 }
 0x5ed   :  { %4890 = vmatpush3.bf16.msra.mxu1 %v5621_v33 }
 0x5ee   :  { %4891 = vmatprep.subr.bf16.mxu1 %v5624_v35 }
 0x5f1   :  { %4892 = vmatpush3.bf16.msra.mxu1 %v5625_v36  ;;  %v5662_v36 = vld [vmem:[#allocation12 + $0x200] sm:$0xff]  }
 0x5f2   :  { %4893 = vmatprep.subr.bf16.mxu1 %v5628_v31 }
 0x5f5   :  { %4894 = vmatpush3.bf16.msra.mxu1 %v5629_v37 }
 0x5f6   :  { %4923 = vmatprep.subr.bf16.mxu1 %v5632_v39 }
 0x5f8   :  { %3784 = vmatmul.mubr.bf16.vlgmr.msra.gmra.mrb[32].mxu1 %v3128_v38 }
 0x5f9   :  { %4924 = vmatpush3.bf16.msra.mxu1 %v5634_v0  ;;  %3863 = vmatprep.mubr.bf16.mxu1 %v3133_v10  ;;  %v3930_v10 = vld [vmem:[%s6705_s11 + $0x58] sm:$0xff] }
 0x5fa   :  { %4925 = vmatprep.subr.bf16.mxu1 %v5636_v43  ;;  %v5666_v43 = vld [vmem:[#allocation12 + $0x220] sm:$0xff]   ;;  %v5338_v60 = vpack.c.bf16 %v3930_v10, %v3929_v46 }
 0x5fd   :  { %4926 = vmatpush3.bf16.msra.mxu1 %v5638_v45  ;;  %v5668_v45 = vld [vmem:[#allocation12 + $0x230] sm:$0xff]  }
 0x5fe   :  { %4927 = vmatprep.subr.bf16.mxu1 %v5640_v48  ;;  %v3125_v48 = vld [vmem:[#allocation2 + $0x40] sm:$0x3] }
 0x5ff   :  { %v3134_v49 = vpack.c.bf16 %v3125_v48, %v3125_v48  ;;  %v4106_v48 = vld [vmem:[%s6708_s14 + $0x40] sm:$0xff] }
 0x601   :  { %4928 = vmatpush3.bf16.msra.mxu1 %v5642_v50 }
 0x602   :  { %4929 = vmatprep.subr.bf16.mxu1 %v5644_v53  ;;  %v3920_v53 = vld [vmem:[%s6705_s11 + $0x8] sm:$0xff] }
 0x603   :  { %v5323_v56 = vpack.c.bf16 %v3920_v53, %v3919_v52  ;;  %v4108_v52 = vld [vmem:[%s6708_s14 + $0x50] sm:$0xff]  ;;  %v4109_v53 = vld [vmem:[%s6708_s14 + $0x58] sm:$0xff] }
 0x605   :  { %4930 = vmatpush3.bf16.msra.mxu1 %v5646_v55 }
 0x606   :  { %4931 = vmatprep.subr.bf16.mxu1 %v5648_v57  ;;  %v3922_v57 = vld [vmem:[%s6705_s11 + $0x18] sm:$0xff] }
 0x607   :  { %v5326_v61 = vpack.c.bf16 %v3922_v57, %v3921_v54  ;;  %v5362_v54 = vpack.c.bf16 %v4109_v53, %v4108_v52 }
 0x609   :  { %4932 = vmatpush3.bf16.msra.mxu1 %v5650_v59 }
 0x60a   :  { %4933 = vmatprep.subr.bf16.mxu1 %v5652_v62 }
 0x60d   :  { %4934 = vmatpush3.bf16.msra.mxu1 %v5654_v1  ;;  %v3924_v1 = vld [vmem:[%s6705_s11 + $0x28] sm:$0xff] }
 0x60e   :  { %4935 = vmatprep.subr.bf16.mxu1 %v5656_v3  ;;  %v5329_v2 = vpack.c.bf16 %v3924_v1, %v3923_v63  ;;  %v3925_v3 = vld [vmem:[%s6705_s11 + $0x30] sm:$0xff] }
 0x611   :  { %4936 = vmatpush3.bf16.msra.mxu1 %v5658_v6  ;;  %v5332_v6 = vpack.c.bf16 %v3926_v5, %v3925_v3 }
 0x612   :  { %4937 = vmatprep.subr.bf16.mxu1 %v5660_v7  ;;  %v3928_v7 = vld [vmem:[%s6705_s11 + $0x48] sm:$0xff] }
 0x615   :  { %4938 = vmatpush3.bf16.msra.mxu1 %v5661_v8  ;;  %v5335_v8 = vpack.c.bf16 %v3928_v7, %v3927_v51  ;;  %v4020_v7 = vld [vmem:[#allocation15] sm:$0x1] }
 0x616   :  { %5322 = vmatprep.subr.bf16.mxu1 %v5846_v40 }
 0x618   :  { %3864 = vmatmul.mubr.bf16.vlgmr.msra.gmra.mrb[36].mxu1 %v3132_v11  ;;  %v3931_v11 = vld [vmem:[%s6705_s11 + $0x60] sm:$0xff] }
 0x619   :  { %5207 = vmatprep.mubr.msk.f32.mxu1 %vm5845_vm0, %v6543_v9  ;;  %5324 = vmatpush3.bf16.msra.mxu1 %v5323_v56  ;;  %v5341_v15 = vpack.c.bf16 %v3932_v13, %v3931_v11  ;;  %v4111_v56 = vld [vmem:[%s6708_s14 + $0x68] sm:$0xff] }
 0x61a   :  { %5325 = vmatprep.subr.bf16.mxu1 %v5846_v40 }
 0x61d   :  { %5327 = vmatpush3.bf16.msra.mxu1 %v5326_v61 }
 0x61e   :  { %5328 = vmatprep.subr.bf16.mxu1 %v5846_v40 }
 0x621   :  { %5330 = vmatpush3.bf16.msra.mxu1 %v5329_v2  ;;  %v4512_v2 = vld [vmem:[#allocation14] ss:$0 sm:$0xff] }
 0x622   :  { %5331 = vmatprep.subr.bf16.mxu1 %v5846_v40 }
 0x625   :  { %5333 = vmatpush3.bf16.msra.mxu1 %v5332_v6 }
 0x626   :  { %5334 = vmatprep.subr.bf16.mxu1 %v5846_v40 }
 0x629   :  { %5336 = vmatpush3.bf16.msra.mxu1 %v5335_v8 }
 0x62a   :  { %5337 = vmatprep.subr.bf16.mxu1 %v5846_v40 }
 0x62d   :  { %5339 = vmatpush3.bf16.msra.mxu1 %v5338_v60 }
 0x62e   :  { %5340 = vmatprep.subr.bf16.mxu1 %v5846_v40 }
 0x631   :  { %5342 = vmatpush3.bf16.msra.mxu1 %v5341_v15 }
 0x632   :  { %5343 = vmatprep.subr.bf16.mxu1 %v5846_v40 }
 0x6ab   :  { %v3057_v18 = vpop.f32.mrb[28].mxu1 }
 0x6ac   :  { %v3064_v19 = vrot.slane %v3057_v18, %v6370_v14  ;;  %v5154_v20 = vpop.f32.mrb[29].mxu1 }
 0x6ae   :  { %v3065_v22 = vsub.f32 %v6540_v12, %v3064_v19  ;;  %v5663_v12 = vld [vmem:[#allocation12 + $0x208] sm:$0xff]  }
 0x6b0   :  { %v3073_v23 = vadd.f32 %v4439_v21, %v3065_v22 }
 0x6b2   :  { %v3074_v24 = vmul.f32 0.2, %v3073_v23 }
 0x6b4   :  { %v3075_v25 = vmax.f32 %v3073_v23, %v3074_v24 }
 0x6b6   :  { %3079 = vst [vmem:[#allocation5 + $0x4] sm:$0x3] %v3075_v25  ;;  %3080 = vst [vmem:[#allocation5 + $0xc] sm:$0xc] %v3075_v25 }
 0x6bd   :  { %v3097_v26 = vld [vmem:[#allocation5 + $0x4] sm:$0x1]  ;;  %v3099_v27 = vld [vmem:[#allocation5 + $0xe] sm:$0x1]  ;;  %v3101_v28 = vld [vmem:[#allocation5 + $0x5] sm:$0x1] }
 0x6be   :  { %v3103_v29 = vld [vmem:[#allocation5 + $0xf] sm:$0x1]  ;;  %3098 = vst [vmem:[#allocation2 + $0x20] sm:$0x1] %v3097_v26  ;;  %3100 = vst [vmem:[#allocation2 + $0x21] sm:$0x1] %v3099_v27 }
 0x6bf   :  { %3102 = vst [vmem:[#allocation2 + $0x28] sm:$0x1] %v3101_v28  ;;  %3104 = vst [vmem:[#allocation2 + $0x29] sm:$0x1] %v3103_v29 }
 0x6c5   :  { %v3121_v30 = vld [vmem:[#allocation2 + $0x20] sm:$0x3] }
 0x6c6   :  { %v3122_v32 = vld [vmem:[#allocation2 + $0x28] sm:$0x3]  ;;  %v3130_v33 = vpack.c.bf16 %v3121_v30, %v3121_v30 }
 0x6c7   :  { %v3131_v35 = vpack.c.bf16 %v3122_v32, %v3122_v32 }
 0x6c9   :  { %3823 = vmatprep.mubr.bf16.mxu0 %v3131_v35 }
 0x6ca   :  { %3824 = vmatmul.mubr.bf16.vlgmr.msra.gmra.mrb[40].mxu0 %v3130_v33 }
 0x6cb   :  { %5156 = vmatpush3.bf16.msra.mxu0 %v5662_v36  ;;  %5171 = vmatprep.mubr.msk.bf16.mxu0 %vm5845_vm0, %v6543_v9  ;;  %v4895_v31 = vpop.f32.mrb[32].mxu1 }
 0x6cc   :  { %5157 = vmatprep.subr.bf16.mxu0 %v6543_v9  ;;  %v4896_v37 = vpop.f32.mrb[33].mxu1 }
 0x6cd   :  { %v4897_v34 = vadd.f32 %v4896_v37, %v4895_v31  ;;  %v4898_v38 = vpop.f32.mrb[34].mxu1  ;;  %v4098_v37 = vld [vmem:[%s6708_s14] sm:$0xff] }
 0x6ce   :  { %v4899_v39 = vpop.f32.mrb[35].mxu1  ;;  %v4100_v38 = vld [vmem:[%s6708_s14 + $0x10] sm:$0xff] }
 0x6cf   :  { %5158 = vmatpush3.bf16.msra.mxu0 %v5663_v12  ;;  %v6554_v0 = vadd.f32 %v4897_v34, %v4875_v16  ;;  %v3933_v16 = vld [vmem:[%s6705_s11 + $0x70] sm:$0xff]  ;;  %v4099_v34 = vld [vmem:[%s6708_s14 + $0x8] sm:$0xff] }
 0x6d0   :  { %5159 = vmatprep.subr.bf16.mxu0 %v6543_v9  ;;  %v5344_v4 = vpack.c.bf16 %v3934_v17, %v3933_v16  ;;  %v5347_v39 = vpack.c.bf16 %v4099_v34, %v4098_v37 }
 0x6d2   :  { %5345 = vmatpush3.bf16.msra.mxu1 %v5344_v4 }
 0x6d3   :  { %5160 = vmatpush3.bf16.msra.mxu0 %v5664_v41  ;;  %5210 = vmatprep.subr.mxu1 %v6543_v9  ;;  %v4101_v41 = vld [vmem:[%s6708_s14 + $0x18] sm:$0xff] }
 0x6d4   :  { %5161 = vmatprep.subr.bf16.mxu0 %v6543_v9 }
 0x6d7   :  { %5162 = vmatpush3.bf16.msra.mxu0 %v5665_v42  ;;  %v4103_v42 = vld [vmem:[%s6708_s14 + $0x28] sm:$0xff] }
 0x6d8   :  { %5163 = vmatprep.subr.bf16.mxu0 %v6543_v9 }
 0x6db   :  { %5164 = vmatpush3.bf16.msra.mxu0 %v5666_v43 }
 0x6dc   :  { %5165 = vmatprep.subr.bf16.mxu0 %v6543_v9 }
 0x6df   :  { %5166 = vmatpush3.bf16.msra.mxu0 %v5667_v44  ;;  %v4104_v44 = vld [vmem:[%s6708_s14 + $0x30] sm:$0xff] }
 0x6e0   :  { %5167 = vmatprep.subr.bf16.mxu0 %v6543_v9 }
 0x6e3   :  { %5168 = vmatpush3.bf16.msra.mxu0 %v5668_v45  ;;  %v4105_v45 = vld [vmem:[%s6708_s14 + $0x38] sm:$0xff] }
 0x6e4   :  { %5169 = vmatprep.subr.bf16.mxu0 %v6543_v9 }
 0x6e7   :  { %5170 = vmatpush3.bf16.msra.mxu0 %v5669_v47  ;;  %v5356_v47 = vpack.c.bf16 %v4105_v45, %v4104_v44 }
 0x6e8   :  { %5346 = vmatprep.subr.bf16.mxu0 %v5846_v40 }
 0x6ea   :  { %5172 = vmatmul.mubr.bf16.vlgmr.msra.gmra.mrb[44].mxu0 %v3134_v49  ;;  %v4107_v49 = vld [vmem:[%s6708_s14 + $0x48] sm:$0xff] }
 0x6eb   :  { %5247 = vmatprep.mubr.msk.f32.mxu0 %vm5845_vm0, %v6543_v9  ;;  %v4939_v50 = vpop.f32.mrb[36].mxu1  ;;  %5348 = vmatpush3.bf16.msra.mxu0 %v5347_v39 }
 0x6ec   :  { %v4940_v55 = vpop.f32.mrb[37].mxu1  ;;  %5349 = vmatprep.subr.bf16.mxu0 %v5846_v40 }
 0x6ed   :  { %v4941_v58 = vadd.f32 %v4940_v55, %v4939_v50  ;;  %v4942_v59 = vpop.f32.mrb[38].mxu1  ;;  %v5359_v50 = vpack.c.bf16 %v4107_v49, %v4106_v48  ;;  %v4110_v55 = vld [vmem:[%s6708_s14 + $0x60] sm:$0xff] }
 0x6ee   :  { %v4943_v62 = vpop.f32.mrb[39].mxu1  ;;  %v5365_v57 = vpack.c.bf16 %v4111_v56, %v4110_v55  ;;  %v4113_v59 = vld [vmem:[%s6708_s14 + $0x78] sm:$0xff] }
 0x79d   :  { %v4917_v18 = vpop.f32.mrb[40].mxu0 }
 0x79e   :  { %v4918_v19 = vpop.f32.mrb[41].mxu0 }
 0x79f   :  { %v4919_v20 = vadd.f32 %v4918_v19, %v4917_v18  ;;  %v4920_v21 = vpop.f32.mrb[42].mxu0 }
 0x7a0   :  { %v4921_v22 = vpop.f32.mrb[43].mxu0 }
 0x7a1   :  { %v3826_v23 = vadd.f32 %v4919_v20, %v6554_v0  ;;  %v5350_v0 = vpack.c.bf16 %v4101_v41, %v4100_v38 }
 0x7a3   :  { %v3866_v24 = vadd.f32 %v4941_v58, %v3826_v23  ;;  %5351 = vmatpush3.bf16.msra.mxu0 %v5350_v0  ;;  %v4112_v58 = vld [vmem:[%s6708_s14 + $0x70] sm:$0xff] }
 0x7a4   :  { %5352 = vmatprep.subr.bf16.mxu0 %v5846_v40  ;;  %v5368_v61 = vpack.c.bf16 %v4113_v59, %v4112_v58 }
 0x7bd   :  { %v3905_v25 = vpop.f32.mrb[44].mxu0 }
 0x7be   :  { %v3906_v26 = vadd.f32 %v3905_v25, %v3866_v24  ;;  %v5173_v27 = vpop.f32.mrb[45].mxu0 }
 0x7bf   :  { %v3908_v28 = vpop.f32.mrb[46].mxu0 }
 0x7c0   :  { %v3912_v29 = vsel %vm3911_vm2, %v3906_v26, 0.0  ;;  %v5174_v30 = vpop.f32.mrb[47].mxu0 }
 0x7c1   :  { %v3913_v32 = vrot.slane %v3912_v29, 4 }
 0x7c3   :  { %v3914_v33 = vadd.f32 %v3913_v32, %v3912_v29 }
 0x7c5   :  { %v3915_v35 = vrot.slane %v3914_v33, 2 }
 0x7c7   :  { %v3916_v36 = vadd.f32 %v3915_v35, %v3914_v33 }
 0x7c9   :  { %v3917_v12 = vrot.slane %v3916_v36, 1 }
 0x7cb   :  { %v3918_v31 = vadd.f32 %v3917_v12, %v3916_v36 }
 0x7cd   :  { %5208 = vmatmul.mubr.f32.vlgmr.msra.gmra.mrb[30].mxu1 %v3918_v31 }
 0x7ce   :  { %5212 = vmatprep.mubr.msk.f32.mxu1 %vm5845_vm0, %v6543_v9  ;;  %v4102_v9 = vld [vmem:[%s6708_s14 + $0x20] sm:$0xff]  ;;  %s5847_s14 = smov [#allocation17]  }
 0x7cf   :  { %v5353_v43 = vpack.c.bf16 %v4103_v42, %v4102_v9  ;;  %s4192_s16 = sshll.u32 %s5847_s14, 4  ;;  %s4193_s16 = int_to_ptr.vmem [resolvable:$true] %s4192_s16 }
 0x7d0   :  { %s5804_s28 = scalar_lea.vmem %s4193_s16, 16  ;;  %s5808_s21 = scalar_lea.vmem %s4193_s16, 32 }
 0x7d1   :  { %5354 = vmatpush3.bf16.msra.mxu0 %v5353_v43  ;;  %p5805_p6 = scmp.ne.s32.totalorder %s4193_s16, %s5804_s28  ;;  %p5809_p7 = scmp.lt.s32.totalorder %s4193_s16, %s4193_s16 }
 0x7d2   :  { %5355 = vmatprep.subr.bf16.mxu0 %v5846_v40  ;;  %p5810_p8 = scmp.lt.s32.totalorder %s5808_s21, %s5804_s28 }
 0x7d4   :  { %p5811_p9 = por %p5810_p8, %p5809_p7 }
 0x7d5   :  { %5357 = vmatpush3.bf16.msra.mxu0 %v5356_v47 }
 0x7d6   :  { %5358 = vmatprep.subr.bf16.mxu0 %v5846_v40  ;;  %p5812_p10 = pnand %p5811_p9, %p5805_p6 }
 0x7d9   :  { %5360 = vmatpush3.bf16.msra.mxu0 %v5359_v50 }
 0x7da   :  { %5361 = vmatprep.subr.bf16.mxu0 %v5846_v40 }
 0x7dd   :  { %5363 = vmatpush3.bf16.msra.mxu0 %v5362_v54 }
 0x7de   :  { %5364 = vmatprep.subr.bf16.mxu0 %v5846_v40 }
 0x7e1   :  { %5366 = vmatpush3.bf16.msra.mxu0 %v5365_v57 }
 0x7e2   :  { %5367 = vmatprep.subr.bf16.mxu0 %v5846_v40 }
 0x7e5   :  { %5369 = vmatpush3.bf16.msra.mxu0 %v5368_v61 }
 0x8a0   :  { %v4001_v62 = vpop.f32.mrb[30].mxu1 }
 0x8a1   :  { %v4008_v63 = vrot.slane %v4001_v62, %v6370_v14  ;;  %v5209_v1 = vpop.f32.mrb[31].mxu1 }
 0x8a3   :  { %v4009_v3 = vsub.f32 %v3906_v26, %v4008_v63 }
 0x8a5   :  { %v4017_v5 = vadd.f32 %v4512_v2, %v4009_v3 }
 0x8a7   :  { %v4018_v6 = vmul.f32 0.2, %v4017_v5 }
 0x8a9   :  { %v4019_v51 = vmax.f32 %v4017_v5, %v4018_v6 }
 0x8ab   :  { %5211 = vmatpush3.msk.msra.mxu1 %vm3911_vm2, %v4019_v51 }
 0x8ac   :  { %5213 = vmatmul.mubr.msk.f32.vlgmr.msra.gmra.mrb[40].mxu1 %vm4021_vm3, %v4020_v7 }
 0x97f   :  { %v4094_v8 = vpop.f32.mrb[40].mxu1 }
 0x980   :  { %v5214_v46 = vpop.f32.mrb[41].mxu1  ;;  %5248 = vmatmul.mubr.f32.vlgmr.msra.gmra.mrb[48].mxu0 %v4094_v8 }
 0xa53   :  { %v4180_v40 = vpop.f32.mrb[48].mxu0 }
 0xa54   :  { %v5249_v14 = vpop.f32.mrb[49].mxu0  ;;  %4185 = vst.msk [vmem:[#allocation17] sm:$0x1] %vm4184_vm4, %v4180_v40 }
 0xa55   :  { %5815 = shalt.err (!%p5812_p10)
}
 0xa56   :  { %s5816_s19 = scalar_lea.hbm %s6709_s15, 16 }
 0xa57   :  { %p5817_p11 = scmp.ne.s32.totalorder %s6709_s15, %s5816_s19  ;;  %p5820_p12 = scmp.lt.u32.totalorder %s5816_s19, %s6709_s15 }
 0xa59   :  { %p5822_p13 = pnand %p5820_p12, %p5817_p11 }
 0xa5b   :  { %5825 = shalt.err (!%p5822_p13)
}
 0xa5c   :  { %4195 = dma.vmem_to_hbm [thread:$0]  %s4193_s16, 16, %s6709_s15, [#allocation8]  }
 0xa5d   :  { %5834 = dma.done.wait [#allocation8], 16  }
 0xa5e   :  { %5835 = vsyncadd [#allocation8], 4294967280 }
 0xa5f   :  { %4199 = vsyncpa [#allocation7], 1 }
 0xa60   :  { %4200 = vsyncpa [#allocation10], 1 }
 0xa61   :  { %4201 = vsyncpa [#allocation13], 1 }
 0xa62   :  { %4202 = vsyncpa [#allocation16], 1 }
 0xa63   :  { %4203 = vsyncpa [#allocation8], 1 }

</bundles_post_ra>
